<compile_context>
chip_gen: v7x
topology: tpu7x:2x2x1
jax: 0.10.0
libtpu: 0.0.40
codegen_flags: <defaults>
</compile_context>

<pallas_src>
import functools
import math

import jax
import jax.numpy as jnp
from jax.experimental import pallas as pl
from jax.experimental.pallas import tpu as pltpu


_MXU_DTYPE = jnp.bfloat16     # matmul operand dtype (f32 accumulation on MXU)
_LN_EPS = 1e-6


# ------------------------------ kernel helpers ------------------------------


def _layer_norm(x, gamma, beta):
    """LayerNorm over the last dim, eps=1e-6 (f32 math)."""
    mean = jnp.mean(x, axis=-1, keepdims=True)
    var = jnp.mean((x - mean) ** 2, axis=-1, keepdims=True)
    return (x - mean) * jax.lax.rsqrt(var + _LN_EPS) * gamma + beta


def _mha(q, k, v, wq, bq, wk, bk, wv, bv, wo, bo, num_heads):
    """Multi-head attention on 2-D (tokens, C) operands.  f32 in/out.

    Weight matrices arrive in bf16; all matmuls accumulate in f32 on the MXU.
    Per-head contexts are packed lane-wise into one (N, c_int) slab so the
    output projection is a single full-depth matmul (instead of H matmuls with
    a K=d contraction accumulating into an (N, C) f32 buffer).
    """
    mm = _MXU_DTYPE
    qp = jnp.dot(q.astype(mm), wq, preferred_element_type=jnp.float32) + bq
    kp = jnp.dot(k.astype(mm), wk, preferred_element_type=jnp.float32) + bk
    vp = jnp.dot(v.astype(mm), wv, preferred_element_type=jnp.float32) + bv

    c_int = wq.shape[1]
    d = c_int // num_heads
    # Fold the 1/sqrt(d) score scale into q once (whole tensor, not per head).
    qp = qp * (1.0 / math.sqrt(d))

    # Cast MXU operands to bf16 ONCE; the head loop below only slices lanes.
    qb = qp.astype(mm)
    kb = kp.astype(mm)
    vb = vp.astype(mm)

    ctx = []
    for h in range(num_heads):                 # static unroll
        sl = slice(h * d, (h + 1) * d)
        # scores = qh @ kh^T without an explicit transpose.
        s = jax.lax.dot_general(
            qb[:, sl], kb[:, sl], (((1,), (1,)), ((), ())),
            preferred_element_type=jnp.float32)
        s = s - jnp.max(s, axis=-1, keepdims=True)
        e = jnp.exp(s)
        p = e * pl.reciprocal(jnp.sum(e, axis=-1, keepdims=True), approx=True)
        ctx.append(jnp.dot(p.astype(mm), vb[:, sl],
                           preferred_element_type=jnp.float32))
    # At SAM scale the i2t softmax (scores (NK, NQ=8)) should pack all heads'
    # scores lane-dense before exp/normalize; trivial at these demo shapes.

    # Lane-packed head contexts -> single full-depth output projection.
    ctx_slab = jnp.concatenate(ctx, axis=-1).astype(mm)
    return jnp.dot(ctx_slab, wo, preferred_element_type=jnp.float32) + bo


# ------------------------------ fused block kernel ---------------------------


def _two_way_block_kernel(q_ref, k_ref, qpe_ref, kpe_ref, *refs,
                          num_heads, skip_first_layer_pe):
    (sa_wq, sa_bq, sa_wk, sa_bk, sa_wv, sa_bv, sa_wo, sa_bo,
     n1_g, n1_b,
     t_wq, t_bq, t_wk, t_bk, t_wv, t_bv, t_wo, t_bo,
     n2_g, n2_b,
     m_w1, m_b1, m_w2, m_b2,
     n3_g, n3_b,
     i_wq, i_bq, i_wk, i_bk, i_wv, i_bv, i_wo, i_bo,
     n4_g, n4_b,
     out_q_ref, out_k_ref) = refs

    mm = _MXU_DTYPE
    q_in = q_ref[0]          # (NQ, C) f32
    k_in = k_ref[0]          # (NK, C)
    q_pe = qpe_ref[0]        # (NQ, C)   PE adds folded into the kernel
    k_pe = kpe_ref[0]        # (NK, C)

    def attn(q, k, v, wq, bq, wk, bk, wv, bv, wo, bo):
        return _mha(q, k, v, wq[...], bq[...], wk[...], bk[...],
                    wv[...], bv[...], wo[...], bo[...], num_heads)

    # ---- self attention on the tokens --------------------------------------
    if skip_first_layer_pe:
        # queries = norm1(self_attn(queries, queries, queries))  (no residual)
        queries = _layer_norm(
            attn(q_in, q_in, q_in,
                 sa_wq, sa_bq, sa_wk, sa_bk, sa_wv, sa_bv, sa_wo, sa_bo),
            n1_g[...], n1_b[...])
    else:
        q = q_in + q_pe
        queries = _layer_norm(
            q_in + attn(q, q, q_in,
                        sa_wq, sa_bq, sa_wk, sa_bk, sa_wv, sa_bv, sa_wo, sa_bo),
            n1_g[...], n1_b[...])

    # keys + key_pe is shared by both cross-attentions: compute it (and its
    # bf16 MXU-operand copy) exactly once.  (At SAM scale this saves a 1M-elem
    # f32 VPU add and a 1M-elem bf16 pack.)
    k_wpe = k_in + k_pe
    k_wpe_bf = k_wpe.astype(mm)
    k_in_bf = k_in.astype(mm)

    # ---- cross attention: tokens -> image -----------------------------------
    q = queries + q_pe
    queries = _layer_norm(
        queries + attn(q, k_wpe_bf, k_in_bf,
                       t_wq, t_bq, t_wk, t_bk, t_wv, t_bv, t_wo, t_bo),
        n2_g[...], n2_b[...])

    # ---- MLP (Linear -> ReLU -> Linear) -------------------------------------
    h = jnp.dot(queries.astype(mm), m_w1[...],
                preferred_element_type=jnp.float32) + m_b1[...]
    h = jnp.maximum(h, 0.0)
    mlp_out = jnp.dot(h.astype(mm), m_w2[...],
                      preferred_element_type=jnp.float32) + m_b2[...]
    queries = _layer_norm(queries + mlp_out, n3_g[...], n3_b[...])

    # ---- cross attention: image -> tokens -----------------------------------
    q = queries + q_pe
    keys = _layer_norm(
        k_in + attn(k_wpe_bf, q, queries,
                    i_wq, i_bq, i_wk, i_bk, i_wv, i_bv, i_wo, i_bo),
        n4_g[...], n4_b[...])

    out_q_ref[0] = queries.astype(out_q_ref.dtype)
    out_k_ref[0] = keys.astype(out_k_ref.dtype)


# ------------------------------ pallas_call wrapper ---------------------------


def _tok_spec(n, c):
    return pl.BlockSpec((1, n, c), lambda b: (b, 0, 0))


def _param_spec(shape):
    # Constant index_map: the same weight block is reused for every grid step
    # (fetched into VMEM once, not re-DMA'd per batch element).  Since the
    # block never changes, a single pipeline buffer is enough — halves weight
    # VMEM footprint (matters on v7x's 64 MiB VMEM at SAM scale).
    idx = lambda b, _nd=len(shape): (0,) * _nd
    buffered = getattr(pl, "Buffered", None)
    if buffered is not None:
        try:
            return pl.BlockSpec(shape, idx, pipeline_mode=buffered(1))
        except TypeError:
            pass
    return pl.BlockSpec(shape, idx)


_ATTN_KEYS = ("wq", "bq", "wk", "bk", "wv", "bv", "wo", "bo")
_MATRIX_KEYS = frozenset({"wq", "wk", "wv", "wo", "w1", "w2"})


def _as_param(name, p):
    # Weight matrices are streamed in bf16 (halves HBM bytes / VMEM residency);
    # biases and LayerNorm params stay f32.
    return p.astype(_MXU_DTYPE) if name in _MATRIX_KEYS else p


def _flat_params(params):
    flat = [_as_param(k, params["self_attn"][k]) for k in _ATTN_KEYS]
    flat += [params["norm1_g"], params["norm1_b"]]
    flat += [_as_param(k, params["cross_t2i"][k]) for k in _ATTN_KEYS]
    flat += [params["norm2_g"], params["norm2_b"]]
    flat += [_as_param("w1", params["mlp"]["w1"]), params["mlp"]["b1"],
             _as_param("w2", params["mlp"]["w2"]), params["mlp"]["b2"]]
    flat += [params["norm3_g"], params["norm3_b"]]
    flat += [_as_param(k, params["cross_i2t"][k]) for k in _ATTN_KEYS]
    flat += [params["norm4_g"], params["norm4_b"]]
    return flat


@functools.partial(jax.jit, static_argnames=("num_heads", "skip_first_layer_pe"))
def two_way_attention_block(queries, keys, query_pe, key_pe, params,
                            num_heads, skip_first_layer_pe=False):
    """One fused pallas_call per block; grid over the batch axis."""
    b, nq, c = queries.shape
    nk = keys.shape[1]
    flat = _flat_params(params)

    kern = functools.partial(_two_way_block_kernel, num_heads=num_heads,
                             skip_first_layer_pe=skip_first_layer_pe)
    in_specs = ([_tok_spec(nq, c), _tok_spec(nk, c),
                 _tok_spec(nq, c), _tok_spec(nk, c)]
                + [_param_spec(p.shape) for p in flat])

    # At SAM scale (NK=4096, C=256) add a second parallel grid axis tiling NK
    # (online-softmax over NK for the t2i attention) so B=1 still fills both
    # v7x TensorCores; unnecessary at these demo shapes.
    out_q, out_k = pl.pallas_call(
        kern,
        out_shape=(jax.ShapeDtypeStruct((b, nq, c), queries.dtype),
                   jax.ShapeDtypeStruct((b, nk, c), keys.dtype)),
        grid=(b,),
        in_specs=in_specs,
        out_specs=(_tok_spec(nq, c), _tok_spec(nk, c)),
        compiler_params=pltpu.CompilerParams(
            dimension_semantics=("parallel",),     # v7x: split batch over 2 TCs
            vmem_limit_bytes=48 * 1024 * 1024),    # explicit budget (v5e/v7x)
    )(queries, keys, query_pe, key_pe, *flat)
    return out_q, out_k


# ------------------------------ pure-JAX reference ----------------------------


def _attention_ref(q, k, v, p, num_heads, mm):
    def mat(a, b):
        return jnp.dot(a.astype(mm), b.astype(mm),
                       preferred_element_type=jnp.float32)

    c_int = p["wq"].shape[1]
    d = c_int // num_heads
    # Scale folded into the projected q (mathematically identical to scaling
    # the scores; mirrors the kernel so the bf16 reference rounds identically).
    qp = (mat(q, p["wq"]) + p["bq"][0]) * (1.0 / math.sqrt(d))
    kp = mat(k, p["wk"]) + p["bk"][0]
    vp = mat(v, p["wv"]) + p["bv"][0]
    b, nq, _ = qp.shape

    def split(x):
        bb, n, _ = x.shape
        return x.reshape(bb, n, num_heads, d).transpose(0, 2, 1, 3)

    qh, kh, vh = split(qp), split(kp), split(vp)
    s = jnp.einsum("bhqd,bhkd->bhqk", qh.astype(mm), kh.astype(mm),
                   preferred_element_type=jnp.float32)
    a = jax.nn.softmax(s, axis=-1)
    o = jnp.einsum("bhqk,bhkd->bhqd", a.astype(mm), vh.astype(mm),
                   preferred_element_type=jnp.float32)
    o = o.transpose(0, 2, 1, 3).reshape(b, nq, c_int)
    return mat(o, p["wo"]) + p["bo"][0]


def _ln_ref(x, g, bt):
    mean = jnp.mean(x, axis=-1, keepdims=True)
    var = jnp.mean((x - mean) ** 2, axis=-1, keepdims=True)
    return (x - mean) * jax.lax.rsqrt(var + _LN_EPS) * g[0] + bt[0]


def _block_ref(queries, keys, query_pe, key_pe, params, num_heads,
               skip_first_layer_pe=False, mm=jnp.float32):
    if skip_first_layer_pe:
        attn_out = _attention_ref(queries, queries, queries,
                                  params["self_attn"], num_heads, mm)
        queries = _ln_ref(attn_out, params["norm1_g"], params["norm1_b"])
    else:
        q = queries + query_pe
        attn_out = _attention_ref(q, q, queries, params["self_attn"],
                                  num_heads, mm)
        queries = _ln_ref(queries + attn_out,
                          params["norm1_g"], params["norm1_b"])

    q = queries + query_pe
    k = keys + key_pe
    attn_out = _attention_ref(q, k, keys, params["cross_t2i"], num_heads, mm)
    queries = _ln_ref(queries + attn_out, params["norm2_g"], params["norm2_b"])

    mp = params["mlp"]
    hid = jnp.maximum(
        jnp.dot(queries.astype(mm), mp["w1"].astype(mm),
                preferred_element_type=jnp.float32) + mp["b1"][0], 0.0)
    mlp_out = jnp.dot(hid.astype(mm), mp["w2"].astype(mm),
                      preferred_element_type=jnp.float32) + mp["b2"][0]
    queries = _ln_ref(queries + mlp_out, params["norm3_g"], params["norm3_b"])

    q = queries + query_pe
    k = keys + key_pe
    attn_out = _attention_ref(k, q, queries, params["cross_i2t"], num_heads, mm)
    keys = _ln_ref(keys + attn_out, params["norm4_g"], params["norm4_b"])
    return queries, keys


# ---------------------------------- params ------------------------------------


def _init_attn_params(key, c, c_int):
    ks = jax.random.split(key, 8)
    s = 0.05
    return dict(
        wq=s * jax.random.normal(ks[0], (c, c_int), jnp.float32),
        bq=0.01 * jax.random.normal(ks[1], (1, c_int), jnp.float32),
        wk=s * jax.random.normal(ks[2], (c, c_int), jnp.float32),
        bk=0.01 * jax.random.normal(ks[3], (1, c_int), jnp.float32),
        wv=s * jax.random.normal(ks[4], (c, c_int), jnp.float32),
        bv=0.01 * jax.random.normal(ks[5], (1, c_int), jnp.float32),
        wo=s * jax.random.normal(ks[6], (c_int, c), jnp.float32),
        bo=0.01 * jax.random.normal(ks[7], (1, c), jnp.float32),
    )


def init_params(key, c, mlp_dim, attention_downsample_rate=2):
    c_ds = c // attention_downsample_rate
    ks = jax.random.split(key, 8)
    return dict(
        self_attn=_init_attn_params(ks[0], c, c),
        cross_t2i=_init_attn_params(ks[1], c, c_ds),
        cross_i2t=_init_attn_params(ks[2], c, c_ds),
        mlp=dict(
            w1=0.05 * jax.random.normal(ks[3], (c, mlp_dim), jnp.float32),
            b1=0.01 * jax.random.normal(ks[4], (1, mlp_dim), jnp.float32),
            w2=0.05 * jax.random.normal(ks[5], (mlp_dim, c), jnp.float32),
            b2=0.01 * jax.random.normal(ks[6], (1, c), jnp.float32),
        ),
        norm1_g=jnp.ones((1, c), jnp.float32), norm1_b=jnp.zeros((1, c), jnp.float32),
        norm2_g=jnp.ones((1, c), jnp.float32), norm2_b=jnp.zeros((1, c), jnp.float32),
        norm3_g=jnp.ones((1, c), jnp.float32), norm3_b=jnp.zeros((1, c), jnp.float32),
        norm4_g=jnp.ones((1, c), jnp.float32), norm4_b=jnp.zeros((1, c), jnp.float32),
    )


# ------------------------------------ main -------------------------------------


if __name__ == "__main__":
    # NOTE: perf tuning/benchmarking should be done at real SAM shapes
    # (NQ~8-12, NK=4096, C=256, H=8, mlp_dim=2048); these demo shapes are for
    # the correctness check only.
    B, NQ, NK, C = 2, 8, 16, 64
    NUM_HEADS = 4
    MLP_DIM = 128

    root = jax.random.PRNGKey(0)
    k_q, k_k, k_qpe, k_kpe, k_p = jax.random.split(root, 5)

    queries = jax.random.normal(k_q, (B, NQ, C), jnp.float32)
    keys = jax.random.normal(k_k, (B, NK, C), jnp.float32)
    query_pe = jax.random.normal(k_qpe, (B, NQ, C), jnp.float32)
    key_pe = jax.random.normal(k_kpe, (B, NK, C), jnp.float32)

    params = init_params(k_p, C, MLP_DIM, attention_downsample_rate=2)

    for skip in (False, True):
        out_q, out_k = two_way_attention_block(
            queries, keys, query_pe, key_pe, params,
            num_heads=NUM_HEADS, skip_first_layer_pe=skip)
        out_q = jax.block_until_ready(out_q)
        out_k = jax.block_until_ready(out_k)

        assert out_q.shape == (B, NQ, C) and out_k.shape == (B, NK, C)

        # (1) Gating check against a reference that rounds matmul operands to
        #     bf16 like the kernel does (tolerance covers approx-reciprocal
        #     softmax + accumulation-order diffs).
        ref_q, ref_k = _block_ref(queries, keys, query_pe, key_pe, params,
                                  NUM_HEADS, skip_first_layer_pe=skip,
                                  mm=_MXU_DTYPE)
        assert jnp.allclose(out_q, ref_q, atol=1e-2, rtol=1e-2), "queries mismatch (bf16 ref)"
        assert jnp.allclose(out_k, ref_k, atol=1e-2, rtol=1e-2), "keys mismatch (bf16 ref)"

        # (2) Precision sanity check against the pure-f32 reference (tolerance
        #     widened for bf16 matmul operands).
        ref_q32, ref_k32 = _block_ref(queries, keys, query_pe, key_pe, params,
                                      NUM_HEADS, skip_first_layer_pe=skip,
                                      mm=jnp.float32)
        assert jnp.allclose(out_q, ref_q32, atol=1e-1, rtol=1e-1), "queries mismatch (f32 ref)"
        assert jnp.allclose(out_k, ref_k32, atol=1e-1, rtol=1e-1), "keys mismatch (f32 ref)"

    print("KERNEL_OK")
</pallas_src>

<mosaic_0001>
module attributes {stable_mosaic.version = 11 : i64} {
  func.func @_two_way_block_kernel(%arg0: i32, %arg1: memref<1x8x64xf32, #tpu.memory_space<vmem>>, %arg2: memref<1x16x64xf32, #tpu.memory_space<vmem>>, %arg3: memref<1x8x64xf32, #tpu.memory_space<vmem>>, %arg4: memref<1x16x64xf32, #tpu.memory_space<vmem>>, %arg5: memref<64x64xbf16, #tpu.memory_space<vmem>>, %arg6: memref<1x64xf32, #tpu.memory_space<vmem>>, %arg7: memref<64x64xbf16, #tpu.memory_space<vmem>>, %arg8: memref<1x64xf32, #tpu.memory_space<vmem>>, %arg9: memref<64x64xbf16, #tpu.memory_space<vmem>>, %arg10: memref<1x64xf32, #tpu.memory_space<vmem>>, %arg11: memref<64x64xbf16, #tpu.memory_space<vmem>>, %arg12: memref<1x64xf32, #tpu.memory_space<vmem>>, %arg13: memref<1x64xf32, #tpu.memory_space<vmem>>, %arg14: memref<1x64xf32, #tpu.memory_space<vmem>>, %arg15: memref<64x32xbf16, #tpu.memory_space<vmem>>, %arg16: memref<1x32xf32, #tpu.memory_space<vmem>>, %arg17: memref<64x32xbf16, #tpu.memory_space<vmem>>, %arg18: memref<1x32xf32, #tpu.memory_space<vmem>>, %arg19: memref<64x32xbf16, #tpu.memory_space<vmem>>, %arg20: memref<1x32xf32, #tpu.memory_space<vmem>>, %arg21: memref<32x64xbf16, #tpu.memory_space<vmem>>, %arg22: memref<1x64xf32, #tpu.memory_space<vmem>>, %arg23: memref<1x64xf32, #tpu.memory_space<vmem>>, %arg24: memref<1x64xf32, #tpu.memory_space<vmem>>, %arg25: memref<64x128xbf16, #tpu.memory_space<vmem>>, %arg26: memref<1x128xf32, #tpu.memory_space<vmem>>, %arg27: memref<128x64xbf16, #tpu.memory_space<vmem>>, %arg28: memref<1x64xf32, #tpu.memory_space<vmem>>, %arg29: memref<1x64xf32, #tpu.memory_space<vmem>>, %arg30: memref<1x64xf32, #tpu.memory_space<vmem>>, %arg31: memref<64x32xbf16, #tpu.memory_space<vmem>>, %arg32: memref<1x32xf32, #tpu.memory_space<vmem>>, %arg33: memref<64x32xbf16, #tpu.memory_space<vmem>>, %arg34: memref<1x32xf32, #tpu.memory_space<vmem>>, %arg35: memref<64x32xbf16, #tpu.memory_space<vmem>>, %arg36: memref<1x32xf32, #tpu.memory_space<vmem>>, %arg37: memref<32x64xbf16, #tpu.memory_space<vmem>>, %arg38: memref<1x64xf32, #tpu.memory_space<vmem>>, %arg39: memref<1x64xf32, #tpu.memory_space<vmem>>, %arg40: memref<1x64xf32, #tpu.memory_space<vmem>>, %arg41: memref<1x8x64xf32, #tpu.memory_space<vmem>>, %arg42: memref<1x16x64xf32, #tpu.memory_space<vmem>>) attributes {dimension_semantics = [#tpu.dimension_semantics<parallel>], iteration_bounds = array<i64: 2>, scalar_prefetch = 0 : i64, scratch_operands = 0 : i64, tpu.core_type = #tpu.core_type<tc>, window_params = [{transform_indices = @transform_0, window_bounds = array<i64: 1, 8, 64>}, {transform_indices = @transform_1, window_bounds = array<i64: 1, 16, 64>}, {transform_indices = @transform_2, window_bounds = array<i64: 1, 8, 64>}, {transform_indices = @transform_3, window_bounds = array<i64: 1, 16, 64>}, {pipeline_mode = #tpu.pipeline_mode<synchronous>, transform_indices = @transform_4, window_bounds = array<i64: 64, 64>}, {pipeline_mode = #tpu.pipeline_mode<synchronous>, transform_indices = @transform_5, window_bounds = array<i64: 1, 64>}, {pipeline_mode = #tpu.pipeline_mode<synchronous>, transform_indices = @transform_6, window_bounds = array<i64: 64, 64>}, {pipeline_mode = #tpu.pipeline_mode<synchronous>, transform_indices = @transform_7, window_bounds = array<i64: 1, 64>}, {pipeline_mode = #tpu.pipeline_mode<synchronous>, transform_indices = @transform_8, window_bounds = array<i64: 64, 64>}, {pipeline_mode = #tpu.pipeline_mode<synchronous>, transform_indices = @transform_9, window_bounds = array<i64: 1, 64>}, {pipeline_mode = #tpu.pipeline_mode<synchronous>, transform_indices = @transform_10, window_bounds = array<i64: 64, 64>}, {pipeline_mode = #tpu.pipeline_mode<synchronous>, transform_indices = @transform_11, window_bounds = array<i64: 1, 64>}, {pipeline_mode = #tpu.pipeline_mode<synchronous>, transform_indices = @transform_12, window_bounds = array<i64: 1, 64>}, {pipeline_mode = #tpu.pipeline_mode<synchronous>, transform_indices = @transform_13, window_bounds = array<i64: 1, 64>}, {pipeline_mode = #tpu.pipeline_mode<synchronous>, transform_indices = @transform_14, window_bounds = array<i64: 64, 32>}, {pipeline_mode = #tpu.pipeline_mode<synchronous>, transform_indices = @transform_15, window_bounds = array<i64: 1, 32>}, {pipeline_mode = #tpu.pipeline_mode<synchronous>, transform_indices = @transform_16, window_bounds = array<i64: 64, 32>}, {pipeline_mode = #tpu.pipeline_mode<synchronous>, transform_indices = @transform_17, window_bounds = array<i64: 1, 32>}, {pipeline_mode = #tpu.pipeline_mode<synchronous>, transform_indices = @transform_18, window_bounds = array<i64: 64, 32>}, {pipeline_mode = #tpu.pipeline_mode<synchronous>, transform_indices = @transform_19, window_bounds = array<i64: 1, 32>}, {pipeline_mode = #tpu.pipeline_mode<synchronous>, transform_indices = @transform_20, window_bounds = array<i64: 32, 64>}, {pipeline_mode = #tpu.pipeline_mode<synchronous>, transform_indices = @transform_21, window_bounds = array<i64: 1, 64>}, {pipeline_mode = #tpu.pipeline_mode<synchronous>, transform_indices = @transform_22, window_bounds = array<i64: 1, 64>}, {pipeline_mode = #tpu.pipeline_mode<synchronous>, transform_indices = @transform_23, window_bounds = array<i64: 1, 64>}, {pipeline_mode = #tpu.pipeline_mode<synchronous>, transform_indices = @transform_24, window_bounds = array<i64: 64, 128>}, {pipeline_mode = #tpu.pipeline_mode<synchronous>, transform_indices = @transform_25, window_bounds = array<i64: 1, 128>}, {pipeline_mode = #tpu.pipeline_mode<synchronous>, transform_indices = @transform_26, window_bounds = array<i64: 128, 64>}, {pipeline_mode = #tpu.pipeline_mode<synchronous>, transform_indices = @transform_27, window_bounds = array<i64: 1, 64>}, {pipeline_mode = #tpu.pipeline_mode<synchronous>, transform_indices = @transform_28, window_bounds = array<i64: 1, 64>}, {pipeline_mode = #tpu.pipeline_mode<synchronous>, transform_indices = @transform_29, window_bounds = array<i64: 1, 64>}, {pipeline_mode = #tpu.pipeline_mode<synchronous>, transform_indices = @transform_30, window_bounds = array<i64: 64, 32>}, {pipeline_mode = #tpu.pipeline_mode<synchronous>, transform_indices = @transform_31, window_bounds = array<i64: 1, 32>}, {pipeline_mode = #tpu.pipeline_mode<synchronous>, transform_indices = @transform_32, window_bounds = array<i64: 64, 32>}, {pipeline_mode = #tpu.pipeline_mode<synchronous>, transform_indices = @transform_33, window_bounds = array<i64: 1, 32>}, {pipeline_mode = #tpu.pipeline_mode<synchronous>, transform_indices = @transform_34, window_bounds = array<i64: 64, 32>}, {pipeline_mode = #tpu.pipeline_mode<synchronous>, transform_indices = @transform_35, window_bounds = array<i64: 1, 32>}, {pipeline_mode = #tpu.pipeline_mode<synchronous>, transform_indices = @transform_36, window_bounds = array<i64: 32, 64>}, {pipeline_mode = #tpu.pipeline_mode<synchronous>, transform_indices = @transform_37, window_bounds = array<i64: 1, 64>}, {pipeline_mode = #tpu.pipeline_mode<synchronous>, transform_indices = @transform_38, window_bounds = array<i64: 1, 64>}, {pipeline_mode = #tpu.pipeline_mode<synchronous>, transform_indices = @transform_39, window_bounds = array<i64: 1, 64>}, {transform_indices = @transform_40, window_bounds = array<i64: 1, 8, 64>}, {transform_indices = @transform_41, window_bounds = array<i64: 1, 16, 64>}]} {
    %c0 = arith.constant 0 : index
    %c0_0 = arith.constant 0 : index
    %c0_1 = arith.constant 0 : index
    %0 = vector.load %arg1[%c0, %c0_0, %c0_1] : memref<1x8x64xf32, #tpu.memory_space<vmem>>, vector<1x8x64xf32>
    %1 = vector.shape_cast %0 : vector<1x8x64xf32> to vector<8x64xf32>
    %c0_2 = arith.constant 0 : index
    %c0_3 = arith.constant 0 : index
    %c0_4 = arith.constant 0 : index
    %2 = vector.load %arg2[%c0_2, %c0_3, %c0_4] : memref<1x16x64xf32, #tpu.memory_space<vmem>>, vector<1x16x64xf32>
    %3 = vector.shape_cast %2 : vector<1x16x64xf32> to vector<16x64xf32>
    %c0_5 = arith.constant 0 : index
    %c0_6 = arith.constant 0 : index
    %c0_7 = arith.constant 0 : index
    %4 = vector.load %arg3[%c0_5, %c0_6, %c0_7] : memref<1x8x64xf32, #tpu.memory_space<vmem>>, vector<1x8x64xf32>
    %5 = vector.shape_cast %4 : vector<1x8x64xf32> to vector<8x64xf32>
    %c0_8 = arith.constant 0 : index
    %c0_9 = arith.constant 0 : index
    %c0_10 = arith.constant 0 : index
    %6 = vector.load %arg4[%c0_8, %c0_9, %c0_10] : memref<1x16x64xf32, #tpu.memory_space<vmem>>, vector<1x16x64xf32>
    %7 = vector.shape_cast %6 : vector<1x16x64xf32> to vector<16x64xf32>
    %8 = arith.addf %1, %5 : vector<8x64xf32>
    %c0_11 = arith.constant 0 : index
    %c0_12 = arith.constant 0 : index
    %9 = vector.load %arg5[%c0_11, %c0_12] : memref<64x64xbf16, #tpu.memory_space<vmem>>, vector<64x64xbf16>
    %c0_13 = arith.constant 0 : index
    %c0_14 = arith.constant 0 : index
    %10 = vector.load %arg6[%c0_13, %c0_14] : memref<1x64xf32, #tpu.memory_space<vmem>>, vector<1x64xf32>
    %c0_15 = arith.constant 0 : index
    %c0_16 = arith.constant 0 : index
    %11 = vector.load %arg7[%c0_15, %c0_16] : memref<64x64xbf16, #tpu.memory_space<vmem>>, vector<64x64xbf16>
    %c0_17 = arith.constant 0 : index
    %c0_18 = arith.constant 0 : index
    %12 = vector.load %arg8[%c0_17, %c0_18] : memref<1x64xf32, #tpu.memory_space<vmem>>, vector<1x64xf32>
    %c0_19 = arith.constant 0 : index
    %c0_20 = arith.constant 0 : index
    %13 = vector.load %arg9[%c0_19, %c0_20] : memref<64x64xbf16, #tpu.memory_space<vmem>>, vector<64x64xbf16>
    %c0_21 = arith.constant 0 : index
    %c0_22 = arith.constant 0 : index
    %14 = vector.load %arg10[%c0_21, %c0_22] : memref<1x64xf32, #tpu.memory_space<vmem>>, vector<1x64xf32>
    %c0_23 = arith.constant 0 : index
    %c0_24 = arith.constant 0 : index
    %15 = vector.load %arg11[%c0_23, %c0_24] : memref<64x64xbf16, #tpu.memory_space<vmem>>, vector<64x64xbf16>
    %c0_25 = arith.constant 0 : index
    %c0_26 = arith.constant 0 : index
    %16 = vector.load %arg12[%c0_25, %c0_26] : memref<1x64xf32, #tpu.memory_space<vmem>>, vector<1x64xf32>
    %17 = arith.truncf %8 : vector<8x64xf32> to vector<8x64xbf16>
    %cst = arith.constant dense<0.000000e+00> : vector<8x64xf32>
    %18 = tpu.matmul %17, %9, %cst {dimension_numbers = #tpu.dot_dimension_numbers<[1], [0], [0], [1], [0, 0, 1, 1], [], []>} : vector<8x64xbf16>, vector<64x64xbf16>, vector<8x64xf32> -> vector<8x64xf32>
    %19 = vector.broadcast %10 : vector<1x64xf32> to vector<8x64xf32>
    %20 = arith.addf %18, %19 : vector<8x64xf32>
    %21 = arith.truncf %8 : vector<8x64xf32> to vector<8x64xbf16>
    %cst_27 = arith.constant dense<0.000000e+00> : vector<8x64xf32>
    %22 = tpu.matmul %21, %11, %cst_27 {dimension_numbers = #tpu.dot_dimension_numbers<[1], [0], [0], [1], [0, 0, 1, 1], [], []>} : vector<8x64xbf16>, vector<64x64xbf16>, vector<8x64xf32> -> vector<8x64xf32>
    %23 = vector.broadcast %12 : vector<1x64xf32> to vector<8x64xf32>
    %24 = arith.addf %22, %23 : vector<8x64xf32>
    %25 = arith.truncf %1 : vector<8x64xf32> to vector<8x64xbf16>
    %cst_28 = arith.constant dense<0.000000e+00> : vector<8x64xf32>
    %26 = tpu.matmul %25, %13, %cst_28 {dimension_numbers = #tpu.dot_dimension_numbers<[1], [0], [0], [1], [0, 0, 1, 1], [], []>} : vector<8x64xbf16>, vector<64x64xbf16>, vector<8x64xf32> -> vector<8x64xf32>
    %27 = vector.broadcast %14 : vector<1x64xf32> to vector<8x64xf32>
    %28 = arith.addf %26, %27 : vector<8x64xf32>
    %cst_29 = arith.constant 2.500000e-01 : f32
    %29 = vector.broadcast %cst_29 : f32 to vector<8x64xf32>
    %30 = arith.mulf %20, %29 : vector<8x64xf32>
    %31 = arith.truncf %30 : vector<8x64xf32> to vector<8x64xbf16>
    %32 = arith.truncf %24 : vector<8x64xf32> to vector<8x64xbf16>
    %33 = arith.truncf %28 : vector<8x64xf32> to vector<8x64xbf16>
    %34 = vector.extract_strided_slice %31 {offsets = [0, 0], sizes = [8, 16], strides = [1, 1]} : vector<8x64xbf16> to vector<8x16xbf16>
    %35 = vector.extract_strided_slice %32 {offsets = [0, 0], sizes = [8, 16], strides = [1, 1]} : vector<8x64xbf16> to vector<8x16xbf16>
    %cst_30 = arith.constant dense<0.000000e+00> : vector<8x8xf32>
    %36 = tpu.matmul %34, %35, %cst_30 {dimension_numbers = #tpu.dot_dimension_numbers<[1], [1], [0], [0], [0, 0, 1, 0], [], []>} : vector<8x16xbf16>, vector<8x16xbf16>, vector<8x8xf32> -> vector<8x8xf32>
    %cst_31 = arith.constant dense<0xFF800000> : vector<8xf32>
    %37 = vector.multi_reduction <maximumf>, %36, %cst_31 [1] : vector<8x8xf32> to vector<8xf32>
    %38 = vector.shape_cast %37 : vector<8xf32> to vector<8x1xf32>
    %39 = vector.broadcast %38 : vector<8x1xf32> to vector<8x8xf32>
    %40 = arith.subf %36, %39 : vector<8x8xf32>
    %41 = math.exp %40 : vector<8x8xf32>
    %cst_32 = arith.constant dense<0.000000e+00> : vector<8xf32>
    %42 = vector.multi_reduction <add>, %41, %cst_32 [1] : vector<8x8xf32> to vector<8xf32>
    %43 = vector.shape_cast %42 : vector<8xf32> to vector<8x1xf32>
    %44 = tpu.reciprocal %43 {approx = true} : vector<8x1xf32> -> vector<8x1xf32>
    %45 = vector.broadcast %44 : vector<8x1xf32> to vector<8x8xf32>
    %46 = arith.mulf %41, %45 : vector<8x8xf32>
    %47 = arith.truncf %46 : vector<8x8xf32> to vector<8x8xbf16>
    %48 = vector.extract_strided_slice %33 {offsets = [0, 0], sizes = [8, 16], strides = [1, 1]} : vector<8x64xbf16> to vector<8x16xbf16>
    %cst_33 = arith.constant dense<0.000000e+00> : vector<8x16xf32>
    %49 = tpu.matmul %47, %48, %cst_33 {dimension_numbers = #tpu.dot_dimension_numbers<[1], [0], [0], [1], [0, 0, 1, 1], [], []>} : vector<8x8xbf16>, vector<8x16xbf16>, vector<8x16xf32> -> vector<8x16xf32>
    %50 = vector.extract_strided_slice %31 {offsets = [0, 16], sizes = [8, 16], strides = [1, 1]} : vector<8x64xbf16> to vector<8x16xbf16>
    %51 = vector.extract_strided_slice %32 {offsets = [0, 16], sizes = [8, 16], strides = [1, 1]} : vector<8x64xbf16> to vector<8x16xbf16>
    %cst_34 = arith.constant dense<0.000000e+00> : vector<8x8xf32>
    %52 = tpu.matmul %50, %51, %cst_34 {dimension_numbers = #tpu.dot_dimension_numbers<[1], [1], [0], [0], [0, 0, 1, 0], [], []>} : vector<8x16xbf16>, vector<8x16xbf16>, vector<8x8xf32> -> vector<8x8xf32>
    %cst_35 = arith.constant dense<0xFF800000> : vector<8xf32>
    %53 = vector.multi_reduction <maximumf>, %52, %cst_35 [1] : vector<8x8xf32> to vector<8xf32>
    %54 = vector.shape_cast %53 : vector<8xf32> to vector<8x1xf32>
    %55 = vector.broadcast %54 : vector<8x1xf32> to vector<8x8xf32>
    %56 = arith.subf %52, %55 : vector<8x8xf32>
    %57 = math.exp %56 : vector<8x8xf32>
    %cst_36 = arith.constant dense<0.000000e+00> : vector<8xf32>
    %58 = vector.multi_reduction <add>, %57, %cst_36 [1] : vector<8x8xf32> to vector<8xf32>
    %59 = vector.shape_cast %58 : vector<8xf32> to vector<8x1xf32>
    %60 = tpu.reciprocal %59 {approx = true} : vector<8x1xf32> -> vector<8x1xf32>
    %61 = vector.broadcast %60 : vector<8x1xf32> to vector<8x8xf32>
    %62 = arith.mulf %57, %61 : vector<8x8xf32>
    %63 = arith.truncf %62 : vector<8x8xf32> to vector<8x8xbf16>
    %64 = vector.extract_strided_slice %33 {offsets = [0, 16], sizes = [8, 16], strides = [1, 1]} : vector<8x64xbf16> to vector<8x16xbf16>
    %cst_37 = arith.constant dense<0.000000e+00> : vector<8x16xf32>
    %65 = tpu.matmul %63, %64, %cst_37 {dimension_numbers = #tpu.dot_dimension_numbers<[1], [0], [0], [1], [0, 0, 1, 1], [], []>} : vector<8x8xbf16>, vector<8x16xbf16>, vector<8x16xf32> -> vector<8x16xf32>
    %66 = vector.extract_strided_slice %31 {offsets = [0, 32], sizes = [8, 16], strides = [1, 1]} : vector<8x64xbf16> to vector<8x16xbf16>
    %67 = vector.extract_strided_slice %32 {offsets = [0, 32], sizes = [8, 16], strides = [1, 1]} : vector<8x64xbf16> to vector<8x16xbf16>
    %cst_38 = arith.constant dense<0.000000e+00> : vector<8x8xf32>
    %68 = tpu.matmul %66, %67, %cst_38 {dimension_numbers = #tpu.dot_dimension_numbers<[1], [1], [0], [0], [0, 0, 1, 0], [], []>} : vector<8x16xbf16>, vector<8x16xbf16>, vector<8x8xf32> -> vector<8x8xf32>
    %cst_39 = arith.constant dense<0xFF800000> : vector<8xf32>
    %69 = vector.multi_reduction <maximumf>, %68, %cst_39 [1] : vector<8x8xf32> to vector<8xf32>
    %70 = vector.shape_cast %69 : vector<8xf32> to vector<8x1xf32>
    %71 = vector.broadcast %70 : vector<8x1xf32> to vector<8x8xf32>
    %72 = arith.subf %68, %71 : vector<8x8xf32>
    %73 = math.exp %72 : vector<8x8xf32>
    %cst_40 = arith.constant dense<0.000000e+00> : vector<8xf32>
    %74 = vector.multi_reduction <add>, %73, %cst_40 [1] : vector<8x8xf32> to vector<8xf32>
    %75 = vector.shape_cast %74 : vector<8xf32> to vector<8x1xf32>
    %76 = tpu.reciprocal %75 {approx = true} : vector<8x1xf32> -> vector<8x1xf32>
    %77 = vector.broadcast %76 : vector<8x1xf32> to vector<8x8xf32>
    %78 = arith.mulf %73, %77 : vector<8x8xf32>
    %79 = arith.truncf %78 : vector<8x8xf32> to vector<8x8xbf16>
    %80 = vector.extract_strided_slice %33 {offsets = [0, 32], sizes = [8, 16], strides = [1, 1]} : vector<8x64xbf16> to vector<8x16xbf16>
    %cst_41 = arith.constant dense<0.000000e+00> : vector<8x16xf32>
    %81 = tpu.matmul %79, %80, %cst_41 {dimension_numbers = #tpu.dot_dimension_numbers<[1], [0], [0], [1], [0, 0, 1, 1], [], []>} : vector<8x8xbf16>, vector<8x16xbf16>, vector<8x16xf32> -> vector<8x16xf32>
    %82 = vector.extract_strided_slice %31 {offsets = [0, 48], sizes = [8, 16], strides = [1, 1]} : vector<8x64xbf16> to vector<8x16xbf16>
    %83 = vector.extract_strided_slice %32 {offsets = [0, 48], sizes = [8, 16], strides = [1, 1]} : vector<8x64xbf16> to vector<8x16xbf16>
    %cst_42 = arith.constant dense<0.000000e+00> : vector<8x8xf32>
    %84 = tpu.matmul %82, %83, %cst_42 {dimension_numbers = #tpu.dot_dimension_numbers<[1], [1], [0], [0], [0, 0, 1, 0], [], []>} : vector<8x16xbf16>, vector<8x16xbf16>, vector<8x8xf32> -> vector<8x8xf32>
    %cst_43 = arith.constant dense<0xFF800000> : vector<8xf32>
    %85 = vector.multi_reduction <maximumf>, %84, %cst_43 [1] : vector<8x8xf32> to vector<8xf32>
    %86 = vector.shape_cast %85 : vector<8xf32> to vector<8x1xf32>
    %87 = vector.broadcast %86 : vector<8x1xf32> to vector<8x8xf32>
    %88 = arith.subf %84, %87 : vector<8x8xf32>
    %89 = math.exp %88 : vector<8x8xf32>
    %cst_44 = arith.constant dense<0.000000e+00> : vector<8xf32>
    %90 = vector.multi_reduction <add>, %89, %cst_44 [1] : vector<8x8xf32> to vector<8xf32>
    %91 = vector.shape_cast %90 : vector<8xf32> to vector<8x1xf32>
    %92 = tpu.reciprocal %91 {approx = true} : vector<8x1xf32> -> vector<8x1xf32>
    %93 = vector.broadcast %92 : vector<8x1xf32> to vector<8x8xf32>
    %94 = arith.mulf %89, %93 : vector<8x8xf32>
    %95 = arith.truncf %94 : vector<8x8xf32> to vector<8x8xbf16>
    %96 = vector.extract_strided_slice %33 {offsets = [0, 48], sizes = [8, 16], strides = [1, 1]} : vector<8x64xbf16> to vector<8x16xbf16>
    %cst_45 = arith.constant dense<0.000000e+00> : vector<8x16xf32>
    %97 = tpu.matmul %95, %96, %cst_45 {dimension_numbers = #tpu.dot_dimension_numbers<[1], [0], [0], [1], [0, 0, 1, 1], [], []>} : vector<8x8xbf16>, vector<8x16xbf16>, vector<8x16xf32> -> vector<8x16xf32>
    %98 = tpu.concatenate %49, %65, %81, %97 in 1 : vector<8x16xf32>, vector<8x16xf32>, vector<8x16xf32>, vector<8x16xf32> -> vector<8x64xf32>
    %99 = arith.truncf %98 : vector<8x64xf32> to vector<8x64xbf16>
    %cst_46 = arith.constant dense<0.000000e+00> : vector<8x64xf32>
    %100 = tpu.matmul %99, %15, %cst_46 {dimension_numbers = #tpu.dot_dimension_numbers<[1], [0], [0], [1], [0, 0, 1, 1], [], []>} : vector<8x64xbf16>, vector<64x64xbf16>, vector<8x64xf32> -> vector<8x64xf32>
    %101 = vector.broadcast %16 : vector<1x64xf32> to vector<8x64xf32>
    %102 = arith.addf %100, %101 : vector<8x64xf32>
    %103 = arith.addf %1, %102 : vector<8x64xf32>
    %c0_47 = arith.constant 0 : index
    %c0_48 = arith.constant 0 : index
    %104 = vector.load %arg13[%c0_47, %c0_48] : memref<1x64xf32, #tpu.memory_space<vmem>>, vector<1x64xf32>
    %c0_49 = arith.constant 0 : index
    %c0_50 = arith.constant 0 : index
    %105 = vector.load %arg14[%c0_49, %c0_50] : memref<1x64xf32, #tpu.memory_space<vmem>>, vector<1x64xf32>
    %cst_51 = arith.constant dense<0.000000e+00> : vector<8xf32>
    %106 = vector.multi_reduction <add>, %103, %cst_51 [1] : vector<8x64xf32> to vector<8xf32>
    %107 = vector.shape_cast %106 : vector<8xf32> to vector<8x1xf32>
    %cst_52 = arith.constant 6.400000e+01 : f32
    %108 = vector.broadcast %cst_52 : f32 to vector<8x1xf32>
    %109 = arith.divf %107, %108 : vector<8x1xf32>
    %110 = vector.broadcast %109 : vector<8x1xf32> to vector<8x64xf32>
    %111 = arith.subf %103, %110 : vector<8x64xf32>
    %112 = arith.mulf %111, %111 : vector<8x64xf32>
    %cst_53 = arith.constant dense<0.000000e+00> : vector<8xf32>
    %113 = vector.multi_reduction <add>, %112, %cst_53 [1] : vector<8x64xf32> to vector<8xf32>
    %114 = vector.shape_cast %113 : vector<8xf32> to vector<8x1xf32>
    %cst_54 = arith.constant 6.400000e+01 : f32
    %115 = vector.broadcast %cst_54 : f32 to vector<8x1xf32>
    %116 = arith.divf %114, %115 : vector<8x1xf32>
    %117 = vector.broadcast %109 : vector<8x1xf32> to vector<8x64xf32>
    %118 = arith.subf %103, %117 : vector<8x64xf32>
    %cst_55 = arith.constant 9.99999997E-7 : f32
    %119 = vector.broadcast %cst_55 : f32 to vector<8x1xf32>
    %120 = arith.addf %116, %119 : vector<8x1xf32>
    %121 = math.rsqrt %120 : vector<8x1xf32>
    %122 = vector.broadcast %121 : vector<8x1xf32> to vector<8x64xf32>
    %123 = arith.mulf %118, %122 : vector<8x64xf32>
    %124 = vector.broadcast %104 : vector<1x64xf32> to vector<8x64xf32>
    %125 = arith.mulf %123, %124 : vector<8x64xf32>
    %126 = vector.broadcast %105 : vector<1x64xf32> to vector<8x64xf32>
    %127 = arith.addf %125, %126 : vector<8x64xf32>
    %128 = arith.addf %3, %7 : vector<16x64xf32>
    %129 = arith.truncf %128 : vector<16x64xf32> to vector<16x64xbf16>
    %130 = arith.truncf %3 : vector<16x64xf32> to vector<16x64xbf16>
    %131 = arith.addf %127, %5 : vector<8x64xf32>
    %c0_56 = arith.constant 0 : index
    %c0_57 = arith.constant 0 : index
    %132 = vector.load %arg15[%c0_56, %c0_57] : memref<64x32xbf16, #tpu.memory_space<vmem>>, vector<64x32xbf16>
    %c0_58 = arith.constant 0 : index
    %c0_59 = arith.constant 0 : index
    %133 = vector.load %arg16[%c0_58, %c0_59] : memref<1x32xf32, #tpu.memory_space<vmem>>, vector<1x32xf32>
    %c0_60 = arith.constant 0 : index
    %c0_61 = arith.constant 0 : index
    %134 = vector.load %arg17[%c0_60, %c0_61] : memref<64x32xbf16, #tpu.memory_space<vmem>>, vector<64x32xbf16>
    %c0_62 = arith.constant 0 : index
    %c0_63 = arith.constant 0 : index
    %135 = vector.load %arg18[%c0_62, %c0_63] : memref<1x32xf32, #tpu.memory_space<vmem>>, vector<1x32xf32>
    %c0_64 = arith.constant 0 : index
    %c0_65 = arith.constant 0 : index
    %136 = vector.load %arg19[%c0_64, %c0_65] : memref<64x32xbf16, #tpu.memory_space<vmem>>, vector<64x32xbf16>
    %c0_66 = arith.constant 0 : index
    %c0_67 = arith.constant 0 : index
    %137 = vector.load %arg20[%c0_66, %c0_67] : memref<1x32xf32, #tpu.memory_space<vmem>>, vector<1x32xf32>
    %c0_68 = arith.constant 0 : index
    %c0_69 = arith.constant 0 : index
    %138 = vector.load %arg21[%c0_68, %c0_69] : memref<32x64xbf16, #tpu.memory_space<vmem>>, vector<32x64xbf16>
    %c0_70 = arith.constant 0 : index
    %c0_71 = arith.constant 0 : index
    %139 = vector.load %arg22[%c0_70, %c0_71] : memref<1x64xf32, #tpu.memory_space<vmem>>, vector<1x64xf32>
    %140 = arith.truncf %131 : vector<8x64xf32> to vector<8x64xbf16>
    %cst_72 = arith.constant dense<0.000000e+00> : vector<8x32xf32>
    %141 = tpu.matmul %140, %132, %cst_72 {dimension_numbers = #tpu.dot_dimension_numbers<[1], [0], [0], [1], [0, 0, 1, 1], [], []>} : vector<8x64xbf16>, vector<64x32xbf16>, vector<8x32xf32> -> vector<8x32xf32>
    %142 = vector.broadcast %133 : vector<1x32xf32> to vector<8x32xf32>
    %143 = arith.addf %141, %142 : vector<8x32xf32>
    %cst_73 = arith.constant dense<0.000000e+00> : vector<16x32xf32>
    %144 = tpu.matmul %129, %134, %cst_73 {dimension_numbers = #tpu.dot_dimension_numbers<[1], [0], [0], [1], [0, 0, 1, 1], [], []>} : vector<16x64xbf16>, vector<64x32xbf16>, vector<16x32xf32> -> vector<16x32xf32>
    %145 = vector.broadcast %135 : vector<1x32xf32> to vector<16x32xf32>
    %146 = arith.addf %144, %145 : vector<16x32xf32>
    %cst_74 = arith.constant dense<0.000000e+00> : vector<16x32xf32>
    %147 = tpu.matmul %130, %136, %cst_74 {dimension_numbers = #tpu.dot_dimension_numbers<[1], [0], [0], [1], [0, 0, 1, 1], [], []>} : vector<16x64xbf16>, vector<64x32xbf16>, vector<16x32xf32> -> vector<16x32xf32>
    %148 = vector.broadcast %137 : vector<1x32xf32> to vector<16x32xf32>
    %149 = arith.addf %147, %148 : vector<16x32xf32>
    %cst_75 = arith.constant 0.353553385 : f32
    %150 = vector.broadcast %cst_75 : f32 to vector<8x32xf32>
    %151 = arith.mulf %143, %150 : vector<8x32xf32>
    %152 = arith.truncf %151 : vector<8x32xf32> to vector<8x32xbf16>
    %153 = arith.truncf %146 : vector<16x32xf32> to vector<16x32xbf16>
    %154 = arith.truncf %149 : vector<16x32xf32> to vector<16x32xbf16>
    %155 = vector.extract_strided_slice %152 {offsets = [0, 0], sizes = [8, 8], strides = [1, 1]} : vector<8x32xbf16> to vector<8x8xbf16>
    %156 = vector.extract_strided_slice %153 {offsets = [0, 0], sizes = [16, 8], strides = [1, 1]} : vector<16x32xbf16> to vector<16x8xbf16>
    %cst_76 = arith.constant dense<0.000000e+00> : vector<8x16xf32>
    %157 = tpu.matmul %155, %156, %cst_76 {dimension_numbers = #tpu.dot_dimension_numbers<[1], [1], [0], [0], [0, 0, 1, 0], [], []>} : vector<8x8xbf16>, vector<16x8xbf16>, vector<8x16xf32> -> vector<8x16xf32>
    %cst_77 = arith.constant dense<0xFF800000> : vector<8xf32>
    %158 = vector.multi_reduction <maximumf>, %157, %cst_77 [1] : vector<8x16xf32> to vector<8xf32>
    %159 = vector.shape_cast %158 : vector<8xf32> to vector<8x1xf32>
    %160 = vector.broadcast %159 : vector<8x1xf32> to vector<8x16xf32>
    %161 = arith.subf %157, %160 : vector<8x16xf32>
    %162 = math.exp %161 : vector<8x16xf32>
    %cst_78 = arith.constant dense<0.000000e+00> : vector<8xf32>
    %163 = vector.multi_reduction <add>, %162, %cst_78 [1] : vector<8x16xf32> to vector<8xf32>
    %164 = vector.shape_cast %163 : vector<8xf32> to vector<8x1xf32>
    %165 = tpu.reciprocal %164 {approx = true} : vector<8x1xf32> -> vector<8x1xf32>
    %166 = vector.broadcast %165 : vector<8x1xf32> to vector<8x16xf32>
    %167 = arith.mulf %162, %166 : vector<8x16xf32>
    %168 = arith.truncf %167 : vector<8x16xf32> to vector<8x16xbf16>
    %169 = vector.extract_strided_slice %154 {offsets = [0, 0], sizes = [16, 8], strides = [1, 1]} : vector<16x32xbf16> to vector<16x8xbf16>
    %cst_79 = arith.constant dense<0.000000e+00> : vector<8x8xf32>
    %170 = tpu.matmul %168, %169, %cst_79 {dimension_numbers = #tpu.dot_dimension_numbers<[1], [0], [0], [1], [0, 0, 1, 1], [], []>} : vector<8x16xbf16>, vector<16x8xbf16>, vector<8x8xf32> -> vector<8x8xf32>
    %171 = vector.extract_strided_slice %152 {offsets = [0, 8], sizes = [8, 8], strides = [1, 1]} : vector<8x32xbf16> to vector<8x8xbf16>
    %172 = vector.extract_strided_slice %153 {offsets = [0, 8], sizes = [16, 8], strides = [1, 1]} : vector<16x32xbf16> to vector<16x8xbf16>
    %cst_80 = arith.constant dense<0.000000e+00> : vector<8x16xf32>
    %173 = tpu.matmul %171, %172, %cst_80 {dimension_numbers = #tpu.dot_dimension_numbers<[1], [1], [0], [0], [0, 0, 1, 0], [], []>} : vector<8x8xbf16>, vector<16x8xbf16>, vector<8x16xf32> -> vector<8x16xf32>
    %cst_81 = arith.constant dense<0xFF800000> : vector<8xf32>
    %174 = vector.multi_reduction <maximumf>, %173, %cst_81 [1] : vector<8x16xf32> to vector<8xf32>
    %175 = vector.shape_cast %174 : vector<8xf32> to vector<8x1xf32>
    %176 = vector.broadcast %175 : vector<8x1xf32> to vector<8x16xf32>
    %177 = arith.subf %173, %176 : vector<8x16xf32>
    %178 = math.exp %177 : vector<8x16xf32>
    %cst_82 = arith.constant dense<0.000000e+00> : vector<8xf32>
    %179 = vector.multi_reduction <add>, %178, %cst_82 [1] : vector<8x16xf32> to vector<8xf32>
    %180 = vector.shape_cast %179 : vector<8xf32> to vector<8x1xf32>
    %181 = tpu.reciprocal %180 {approx = true} : vector<8x1xf32> -> vector<8x1xf32>
    %182 = vector.broadcast %181 : vector<8x1xf32> to vector<8x16xf32>
    %183 = arith.mulf %178, %182 : vector<8x16xf32>
    %184 = arith.truncf %183 : vector<8x16xf32> to vector<8x16xbf16>
    %185 = vector.extract_strided_slice %154 {offsets = [0, 8], sizes = [16, 8], strides = [1, 1]} : vector<16x32xbf16> to vector<16x8xbf16>
    %cst_83 = arith.constant dense<0.000000e+00> : vector<8x8xf32>
    %186 = tpu.matmul %184, %185, %cst_83 {dimension_numbers = #tpu.dot_dimension_numbers<[1], [0], [0], [1], [0, 0, 1, 1], [], []>} : vector<8x16xbf16>, vector<16x8xbf16>, vector<8x8xf32> -> vector<8x8xf32>
    %187 = vector.extract_strided_slice %152 {offsets = [0, 16], sizes = [8, 8], strides = [1, 1]} : vector<8x32xbf16> to vector<8x8xbf16>
    %188 = vector.extract_strided_slice %153 {offsets = [0, 16], sizes = [16, 8], strides = [1, 1]} : vector<16x32xbf16> to vector<16x8xbf16>
    %cst_84 = arith.constant dense<0.000000e+00> : vector<8x16xf32>
    %189 = tpu.matmul %187, %188, %cst_84 {dimension_numbers = #tpu.dot_dimension_numbers<[1], [1], [0], [0], [0, 0, 1, 0], [], []>} : vector<8x8xbf16>, vector<16x8xbf16>, vector<8x16xf32> -> vector<8x16xf32>
    %cst_85 = arith.constant dense<0xFF800000> : vector<8xf32>
    %190 = vector.multi_reduction <maximumf>, %189, %cst_85 [1] : vector<8x16xf32> to vector<8xf32>
    %191 = vector.shape_cast %190 : vector<8xf32> to vector<8x1xf32>
    %192 = vector.broadcast %191 : vector<8x1xf32> to vector<8x16xf32>
    %193 = arith.subf %189, %192 : vector<8x16xf32>
    %194 = math.exp %193 : vector<8x16xf32>
    %cst_86 = arith.constant dense<0.000000e+00> : vector<8xf32>
    %195 = vector.multi_reduction <add>, %194, %cst_86 [1] : vector<8x16xf32> to vector<8xf32>
    %196 = vector.shape_cast %195 : vector<8xf32> to vector<8x1xf32>
    %197 = tpu.reciprocal %196 {approx = true} : vector<8x1xf32> -> vector<8x1xf32>
    %198 = vector.broadcast %197 : vector<8x1xf32> to vector<8x16xf32>
    %199 = arith.mulf %194, %198 : vector<8x16xf32>
    %200 = arith.truncf %199 : vector<8x16xf32> to vector<8x16xbf16>
    %201 = vector.extract_strided_slice %154 {offsets = [0, 16], sizes = [16, 8], strides = [1, 1]} : vector<16x32xbf16> to vector<16x8xbf16>
    %cst_87 = arith.constant dense<0.000000e+00> : vector<8x8xf32>
    %202 = tpu.matmul %200, %201, %cst_87 {dimension_numbers = #tpu.dot_dimension_numbers<[1], [0], [0], [1], [0, 0, 1, 1], [], []>} : vector<8x16xbf16>, vector<16x8xbf16>, vector<8x8xf32> -> vector<8x8xf32>
    %203 = vector.extract_strided_slice %152 {offsets = [0, 24], sizes = [8, 8], strides = [1, 1]} : vector<8x32xbf16> to vector<8x8xbf16>
    %204 = vector.extract_strided_slice %153 {offsets = [0, 24], sizes = [16, 8], strides = [1, 1]} : vector<16x32xbf16> to vector<16x8xbf16>
    %cst_88 = arith.constant dense<0.000000e+00> : vector<8x16xf32>
    %205 = tpu.matmul %203, %204, %cst_88 {dimension_numbers = #tpu.dot_dimension_numbers<[1], [1], [0], [0], [0, 0, 1, 0], [], []>} : vector<8x8xbf16>, vector<16x8xbf16>, vector<8x16xf32> -> vector<8x16xf32>
    %cst_89 = arith.constant dense<0xFF800000> : vector<8xf32>
    %206 = vector.multi_reduction <maximumf>, %205, %cst_89 [1] : vector<8x16xf32> to vector<8xf32>
    %207 = vector.shape_cast %206 : vector<8xf32> to vector<8x1xf32>
    %208 = vector.broadcast %207 : vector<8x1xf32> to vector<8x16xf32>
    %209 = arith.subf %205, %208 : vector<8x16xf32>
    %210 = math.exp %209 : vector<8x16xf32>
    %cst_90 = arith.constant dense<0.000000e+00> : vector<8xf32>
    %211 = vector.multi_reduction <add>, %210, %cst_90 [1] : vector<8x16xf32> to vector<8xf32>
    %212 = vector.shape_cast %211 : vector<8xf32> to vector<8x1xf32>
    %213 = tpu.reciprocal %212 {approx = true} : vector<8x1xf32> -> vector<8x1xf32>
    %214 = vector.broadcast %213 : vector<8x1xf32> to vector<8x16xf32>
    %215 = arith.mulf %210, %214 : vector<8x16xf32>
    %216 = arith.truncf %215 : vector<8x16xf32> to vector<8x16xbf16>
    %217 = vector.extract_strided_slice %154 {offsets = [0, 24], sizes = [16, 8], strides = [1, 1]} : vector<16x32xbf16> to vector<16x8xbf16>
    %cst_91 = arith.constant dense<0.000000e+00> : vector<8x8xf32>
    %218 = tpu.matmul %216, %217, %cst_91 {dimension_numbers = #tpu.dot_dimension_numbers<[1], [0], [0], [1], [0, 0, 1, 1], [], []>} : vector<8x16xbf16>, vector<16x8xbf16>, vector<8x8xf32> -> vector<8x8xf32>
    %219 = tpu.concatenate %170, %186, %202, %218 in 1 : vector<8x8xf32>, vector<8x8xf32>, vector<8x8xf32>, vector<8x8xf32> -> vector<8x32xf32>
    %220 = arith.truncf %219 : vector<8x32xf32> to vector<8x32xbf16>
    %cst_92 = arith.constant dense<0.000000e+00> : vector<8x64xf32>
    %221 = tpu.matmul %220, %138, %cst_92 {dimension_numbers = #tpu.dot_dimension_numbers<[1], [0], [0], [1], [0, 0, 1, 1], [], []>} : vector<8x32xbf16>, vector<32x64xbf16>, vector<8x64xf32> -> vector<8x64xf32>
    %222 = vector.broadcast %139 : vector<1x64xf32> to vector<8x64xf32>
    %223 = arith.addf %221, %222 : vector<8x64xf32>
    %224 = arith.addf %127, %223 : vector<8x64xf32>
    %c0_93 = arith.constant 0 : index
    %c0_94 = arith.constant 0 : index
    %225 = vector.load %arg23[%c0_93, %c0_94] : memref<1x64xf32, #tpu.memory_space<vmem>>, vector<1x64xf32>
    %c0_95 = arith.constant 0 : index
    %c0_96 = arith.constant 0 : index
    %226 = vector.load %arg24[%c0_95, %c0_96] : memref<1x64xf32, #tpu.memory_space<vmem>>, vector<1x64xf32>
    %cst_97 = arith.constant dense<0.000000e+00> : vector<8xf32>
    %227 = vector.multi_reduction <add>, %224, %cst_97 [1] : vector<8x64xf32> to vector<8xf32>
    %228 = vector.shape_cast %227 : vector<8xf32> to vector<8x1xf32>
    %cst_98 = arith.constant 6.400000e+01 : f32
    %229 = vector.broadcast %cst_98 : f32 to vector<8x1xf32>
    %230 = arith.divf %228, %229 : vector<8x1xf32>
    %231 = vector.broadcast %230 : vector<8x1xf32> to vector<8x64xf32>
    %232 = arith.subf %224, %231 : vector<8x64xf32>
    %233 = arith.mulf %232, %232 : vector<8x64xf32>
    %cst_99 = arith.constant dense<0.000000e+00> : vector<8xf32>
    %234 = vector.multi_reduction <add>, %233, %cst_99 [1] : vector<8x64xf32> to vector<8xf32>
    %235 = vector.shape_cast %234 : vector<8xf32> to vector<8x1xf32>
    %cst_100 = arith.constant 6.400000e+01 : f32
    %236 = vector.broadcast %cst_100 : f32 to vector<8x1xf32>
    %237 = arith.divf %235, %236 : vector<8x1xf32>
    %238 = vector.broadcast %230 : vector<8x1xf32> to vector<8x64xf32>
    %239 = arith.subf %224, %238 : vector<8x64xf32>
    %cst_101 = arith.constant 9.99999997E-7 : f32
    %240 = vector.broadcast %cst_101 : f32 to vector<8x1xf32>
    %241 = arith.addf %237, %240 : vector<8x1xf32>
    %242 = math.rsqrt %241 : vector<8x1xf32>
    %243 = vector.broadcast %242 : vector<8x1xf32> to vector<8x64xf32>
    %244 = arith.mulf %239, %243 : vector<8x64xf32>
    %245 = vector.broadcast %225 : vector<1x64xf32> to vector<8x64xf32>
    %246 = arith.mulf %244, %245 : vector<8x64xf32>
    %247 = vector.broadcast %226 : vector<1x64xf32> to vector<8x64xf32>
    %248 = arith.addf %246, %247 : vector<8x64xf32>
    %249 = arith.truncf %248 : vector<8x64xf32> to vector<8x64xbf16>
    %c0_102 = arith.constant 0 : index
    %c0_103 = arith.constant 0 : index
    %250 = vector.load %arg25[%c0_102, %c0_103] : memref<64x128xbf16, #tpu.memory_space<vmem>>, vector<64x128xbf16>
    %cst_104 = arith.constant dense<0.000000e+00> : vector<8x128xf32>
    %251 = tpu.matmul %249, %250, %cst_104 {dimension_numbers = #tpu.dot_dimension_numbers<[1], [0], [0], [1], [0, 0, 1, 1], [], []>} : vector<8x64xbf16>, vector<64x128xbf16>, vector<8x128xf32> -> vector<8x128xf32>
    %c0_105 = arith.constant 0 : index
    %c0_106 = arith.constant 0 : index
    %252 = vector.load %arg26[%c0_105, %c0_106] : memref<1x128xf32, #tpu.memory_space<vmem>>, vector<1x128xf32>
    %253 = vector.broadcast %252 : vector<1x128xf32> to vector<8x128xf32>
    %254 = arith.addf %251, %253 : vector<8x128xf32>
    %cst_107 = arith.constant 0.000000e+00 : f32
    %255 = vector.broadcast %cst_107 : f32 to vector<8x128xf32>
    %256 = arith.maximumf %254, %255 : vector<8x128xf32>
    %257 = arith.truncf %256 : vector<8x128xf32> to vector<8x128xbf16>
    %c0_108 = arith.constant 0 : index
    %c0_109 = arith.constant 0 : index
    %258 = vector.load %arg27[%c0_108, %c0_109] : memref<128x64xbf16, #tpu.memory_space<vmem>>, vector<128x64xbf16>
    %cst_110 = arith.constant dense<0.000000e+00> : vector<8x64xf32>
    %259 = tpu.matmul %257, %258, %cst_110 {dimension_numbers = #tpu.dot_dimension_numbers<[1], [0], [0], [1], [0, 0, 1, 1], [], []>} : vector<8x128xbf16>, vector<128x64xbf16>, vector<8x64xf32> -> vector<8x64xf32>
    %c0_111 = arith.constant 0 : index
    %c0_112 = arith.constant 0 : index
    %260 = vector.load %arg28[%c0_111, %c0_112] : memref<1x64xf32, #tpu.memory_space<vmem>>, vector<1x64xf32>
    %261 = vector.broadcast %260 : vector<1x64xf32> to vector<8x64xf32>
    %262 = arith.addf %259, %261 : vector<8x64xf32>
    %263 = arith.addf %248, %262 : vector<8x64xf32>
    %c0_113 = arith.constant 0 : index
    %c0_114 = arith.constant 0 : index
    %264 = vector.load %arg29[%c0_113, %c0_114] : memref<1x64xf32, #tpu.memory_space<vmem>>, vector<1x64xf32>
    %c0_115 = arith.constant 0 : index
    %c0_116 = arith.constant 0 : index
    %265 = vector.load %arg30[%c0_115, %c0_116] : memref<1x64xf32, #tpu.memory_space<vmem>>, vector<1x64xf32>
    %cst_117 = arith.constant dense<0.000000e+00> : vector<8xf32>
    %266 = vector.multi_reduction <add>, %263, %cst_117 [1] : vector<8x64xf32> to vector<8xf32>
    %267 = vector.shape_cast %266 : vector<8xf32> to vector<8x1xf32>
    %cst_118 = arith.constant 6.400000e+01 : f32
    %268 = vector.broadcast %cst_118 : f32 to vector<8x1xf32>
    %269 = arith.divf %267, %268 : vector<8x1xf32>
    %270 = vector.broadcast %269 : vector<8x1xf32> to vector<8x64xf32>
    %271 = arith.subf %263, %270 : vector<8x64xf32>
    %272 = arith.mulf %271, %271 : vector<8x64xf32>
    %cst_119 = arith.constant dense<0.000000e+00> : vector<8xf32>
    %273 = vector.multi_reduction <add>, %272, %cst_119 [1] : vector<8x64xf32> to vector<8xf32>
    %274 = vector.shape_cast %273 : vector<8xf32> to vector<8x1xf32>
    %cst_120 = arith.constant 6.400000e+01 : f32
    %275 = vector.broadcast %cst_120 : f32 to vector<8x1xf32>
    %276 = arith.divf %274, %275 : vector<8x1xf32>
    %277 = vector.broadcast %269 : vector<8x1xf32> to vector<8x64xf32>
    %278 = arith.subf %263, %277 : vector<8x64xf32>
    %cst_121 = arith.constant 9.99999997E-7 : f32
    %279 = vector.broadcast %cst_121 : f32 to vector<8x1xf32>
    %280 = arith.addf %276, %279 : vector<8x1xf32>
    %281 = math.rsqrt %280 : vector<8x1xf32>
    %282 = vector.broadcast %281 : vector<8x1xf32> to vector<8x64xf32>
    %283 = arith.mulf %278, %282 : vector<8x64xf32>
    %284 = vector.broadcast %264 : vector<1x64xf32> to vector<8x64xf32>
    %285 = arith.mulf %283, %284 : vector<8x64xf32>
    %286 = vector.broadcast %265 : vector<1x64xf32> to vector<8x64xf32>
    %287 = arith.addf %285, %286 : vector<8x64xf32>
    %288 = arith.addf %287, %5 : vector<8x64xf32>
    %c0_122 = arith.constant 0 : index
    %c0_123 = arith.constant 0 : index
    %289 = vector.load %arg31[%c0_122, %c0_123] : memref<64x32xbf16, #tpu.memory_space<vmem>>, vector<64x32xbf16>
    %c0_124 = arith.constant 0 : index
    %c0_125 = arith.constant 0 : index
    %290 = vector.load %arg32[%c0_124, %c0_125] : memref<1x32xf32, #tpu.memory_space<vmem>>, vector<1x32xf32>
    %c0_126 = arith.constant 0 : index
    %c0_127 = arith.constant 0 : index
    %291 = vector.load %arg33[%c0_126, %c0_127] : memref<64x32xbf16, #tpu.memory_space<vmem>>, vector<64x32xbf16>
    %c0_128 = arith.constant 0 : index
    %c0_129 = arith.constant 0 : index
    %292 = vector.load %arg34[%c0_128, %c0_129] : memref<1x32xf32, #tpu.memory_space<vmem>>, vector<1x32xf32>
    %c0_130 = arith.constant 0 : index
    %c0_131 = arith.constant 0 : index
    %293 = vector.load %arg35[%c0_130, %c0_131] : memref<64x32xbf16, #tpu.memory_space<vmem>>, vector<64x32xbf16>
    %c0_132 = arith.constant 0 : index
    %c0_133 = arith.constant 0 : index
    %294 = vector.load %arg36[%c0_132, %c0_133] : memref<1x32xf32, #tpu.memory_space<vmem>>, vector<1x32xf32>
    %c0_134 = arith.constant 0 : index
    %c0_135 = arith.constant 0 : index
    %295 = vector.load %arg37[%c0_134, %c0_135] : memref<32x64xbf16, #tpu.memory_space<vmem>>, vector<32x64xbf16>
    %c0_136 = arith.constant 0 : index
    %c0_137 = arith.constant 0 : index
    %296 = vector.load %arg38[%c0_136, %c0_137] : memref<1x64xf32, #tpu.memory_space<vmem>>, vector<1x64xf32>
    %cst_138 = arith.constant dense<0.000000e+00> : vector<16x32xf32>
    %297 = tpu.matmul %129, %289, %cst_138 {dimension_numbers = #tpu.dot_dimension_numbers<[1], [0], [0], [1], [0, 0, 1, 1], [], []>} : vector<16x64xbf16>, vector<64x32xbf16>, vector<16x32xf32> -> vector<16x32xf32>
    %298 = vector.broadcast %290 : vector<1x32xf32> to vector<16x32xf32>
    %299 = arith.addf %297, %298 : vector<16x32xf32>
    %300 = arith.truncf %288 : vector<8x64xf32> to vector<8x64xbf16>
    %cst_139 = arith.constant dense<0.000000e+00> : vector<8x32xf32>
    %301 = tpu.matmul %300, %291, %cst_139 {dimension_numbers = #tpu.dot_dimension_numbers<[1], [0], [0], [1], [0, 0, 1, 1], [], []>} : vector<8x64xbf16>, vector<64x32xbf16>, vector<8x32xf32> -> vector<8x32xf32>
    %302 = vector.broadcast %292 : vector<1x32xf32> to vector<8x32xf32>
    %303 = arith.addf %301, %302 : vector<8x32xf32>
    %304 = arith.truncf %287 : vector<8x64xf32> to vector<8x64xbf16>
    %cst_140 = arith.constant dense<0.000000e+00> : vector<8x32xf32>
    %305 = tpu.matmul %304, %293, %cst_140 {dimension_numbers = #tpu.dot_dimension_numbers<[1], [0], [0], [1], [0, 0, 1, 1], [], []>} : vector<8x64xbf16>, vector<64x32xbf16>, vector<8x32xf32> -> vector<8x32xf32>
    %306 = vector.broadcast %294 : vector<1x32xf32> to vector<8x32xf32>
    %307 = arith.addf %305, %306 : vector<8x32xf32>
    %cst_141 = arith.constant 0.353553385 : f32
    %308 = vector.broadcast %cst_141 : f32 to vector<16x32xf32>
    %309 = arith.mulf %299, %308 : vector<16x32xf32>
    %310 = arith.truncf %309 : vector<16x32xf32> to vector<16x32xbf16>
    %311 = arith.truncf %303 : vector<8x32xf32> to vector<8x32xbf16>
    %312 = arith.truncf %307 : vector<8x32xf32> to vector<8x32xbf16>
    %313 = vector.extract_strided_slice %310 {offsets = [0, 0], sizes = [16, 8], strides = [1, 1]} : vector<16x32xbf16> to vector<16x8xbf16>
    %314 = vector.extract_strided_slice %311 {offsets = [0, 0], sizes = [8, 8], strides = [1, 1]} : vector<8x32xbf16> to vector<8x8xbf16>
    %cst_142 = arith.constant dense<0.000000e+00> : vector<16x8xf32>
    %315 = tpu.matmul %313, %314, %cst_142 {dimension_numbers = #tpu.dot_dimension_numbers<[1], [1], [0], [0], [0, 0, 1, 0], [], []>} : vector<16x8xbf16>, vector<8x8xbf16>, vector<16x8xf32> -> vector<16x8xf32>
    %cst_143 = arith.constant dense<0xFF800000> : vector<16xf32>
    %316 = vector.multi_reduction <maximumf>, %315, %cst_143 [1] : vector<16x8xf32> to vector<16xf32>
    %317 = vector.shape_cast %316 : vector<16xf32> to vector<16x1xf32>
    %318 = vector.broadcast %317 : vector<16x1xf32> to vector<16x8xf32>
    %319 = arith.subf %315, %318 : vector<16x8xf32>
    %320 = math.exp %319 : vector<16x8xf32>
    %cst_144 = arith.constant dense<0.000000e+00> : vector<16xf32>
    %321 = vector.multi_reduction <add>, %320, %cst_144 [1] : vector<16x8xf32> to vector<16xf32>
    %322 = vector.shape_cast %321 : vector<16xf32> to vector<16x1xf32>
    %323 = tpu.reciprocal %322 {approx = true} : vector<16x1xf32> -> vector<16x1xf32>
    %324 = vector.broadcast %323 : vector<16x1xf32> to vector<16x8xf32>
    %325 = arith.mulf %320, %324 : vector<16x8xf32>
    %326 = arith.truncf %325 : vector<16x8xf32> to vector<16x8xbf16>
    %327 = vector.extract_strided_slice %312 {offsets = [0, 0], sizes = [8, 8], strides = [1, 1]} : vector<8x32xbf16> to vector<8x8xbf16>
    %cst_145 = arith.constant dense<0.000000e+00> : vector<16x8xf32>
    %328 = tpu.matmul %326, %327, %cst_145 {dimension_numbers = #tpu.dot_dimension_numbers<[1], [0], [0], [1], [0, 0, 1, 1], [], []>} : vector<16x8xbf16>, vector<8x8xbf16>, vector<16x8xf32> -> vector<16x8xf32>
    %329 = vector.extract_strided_slice %310 {offsets = [0, 8], sizes = [16, 8], strides = [1, 1]} : vector<16x32xbf16> to vector<16x8xbf16>
    %330 = vector.extract_strided_slice %311 {offsets = [0, 8], sizes = [8, 8], strides = [1, 1]} : vector<8x32xbf16> to vector<8x8xbf16>
    %cst_146 = arith.constant dense<0.000000e+00> : vector<16x8xf32>
    %331 = tpu.matmul %329, %330, %cst_146 {dimension_numbers = #tpu.dot_dimension_numbers<[1], [1], [0], [0], [0, 0, 1, 0], [], []>} : vector<16x8xbf16>, vector<8x8xbf16>, vector<16x8xf32> -> vector<16x8xf32>
    %cst_147 = arith.constant dense<0xFF800000> : vector<16xf32>
    %332 = vector.multi_reduction <maximumf>, %331, %cst_147 [1] : vector<16x8xf32> to vector<16xf32>
    %333 = vector.shape_cast %332 : vector<16xf32> to vector<16x1xf32>
    %334 = vector.broadcast %333 : vector<16x1xf32> to vector<16x8xf32>
    %335 = arith.subf %331, %334 : vector<16x8xf32>
    %336 = math.exp %335 : vector<16x8xf32>
    %cst_148 = arith.constant dense<0.000000e+00> : vector<16xf32>
    %337 = vector.multi_reduction <add>, %336, %cst_148 [1] : vector<16x8xf32> to vector<16xf32>
    %338 = vector.shape_cast %337 : vector<16xf32> to vector<16x1xf32>
    %339 = tpu.reciprocal %338 {approx = true} : vector<16x1xf32> -> vector<16x1xf32>
    %340 = vector.broadcast %339 : vector<16x1xf32> to vector<16x8xf32>
    %341 = arith.mulf %336, %340 : vector<16x8xf32>
    %342 = arith.truncf %341 : vector<16x8xf32> to vector<16x8xbf16>
    %343 = vector.extract_strided_slice %312 {offsets = [0, 8], sizes = [8, 8], strides = [1, 1]} : vector<8x32xbf16> to vector<8x8xbf16>
    %cst_149 = arith.constant dense<0.000000e+00> : vector<16x8xf32>
    %344 = tpu.matmul %342, %343, %cst_149 {dimension_numbers = #tpu.dot_dimension_numbers<[1], [0], [0], [1], [0, 0, 1, 1], [], []>} : vector<16x8xbf16>, vector<8x8xbf16>, vector<16x8xf32> -> vector<16x8xf32>
    %345 = vector.extract_strided_slice %310 {offsets = [0, 16], sizes = [16, 8], strides = [1, 1]} : vector<16x32xbf16> to vector<16x8xbf16>
    %346 = vector.extract_strided_slice %311 {offsets = [0, 16], sizes = [8, 8], strides = [1, 1]} : vector<8x32xbf16> to vector<8x8xbf16>
    %cst_150 = arith.constant dense<0.000000e+00> : vector<16x8xf32>
    %347 = tpu.matmul %345, %346, %cst_150 {dimension_numbers = #tpu.dot_dimension_numbers<[1], [1], [0], [0], [0, 0, 1, 0], [], []>} : vector<16x8xbf16>, vector<8x8xbf16>, vector<16x8xf32> -> vector<16x8xf32>
    %cst_151 = arith.constant dense<0xFF800000> : vector<16xf32>
    %348 = vector.multi_reduction <maximumf>, %347, %cst_151 [1] : vector<16x8xf32> to vector<16xf32>
    %349 = vector.shape_cast %348 : vector<16xf32> to vector<16x1xf32>
    %350 = vector.broadcast %349 : vector<16x1xf32> to vector<16x8xf32>
    %351 = arith.subf %347, %350 : vector<16x8xf32>
    %352 = math.exp %351 : vector<16x8xf32>
    %cst_152 = arith.constant dense<0.000000e+00> : vector<16xf32>
    %353 = vector.multi_reduction <add>, %352, %cst_152 [1] : vector<16x8xf32> to vector<16xf32>
    %354 = vector.shape_cast %353 : vector<16xf32> to vector<16x1xf32>
    %355 = tpu.reciprocal %354 {approx = true} : vector<16x1xf32> -> vector<16x1xf32>
    %356 = vector.broadcast %355 : vector<16x1xf32> to vector<16x8xf32>
    %357 = arith.mulf %352, %356 : vector<16x8xf32>
    %358 = arith.truncf %357 : vector<16x8xf32> to vector<16x8xbf16>
    %359 = vector.extract_strided_slice %312 {offsets = [0, 16], sizes = [8, 8], strides = [1, 1]} : vector<8x32xbf16> to vector<8x8xbf16>
    %cst_153 = arith.constant dense<0.000000e+00> : vector<16x8xf32>
    %360 = tpu.matmul %358, %359, %cst_153 {dimension_numbers = #tpu.dot_dimension_numbers<[1], [0], [0], [1], [0, 0, 1, 1], [], []>} : vector<16x8xbf16>, vector<8x8xbf16>, vector<16x8xf32> -> vector<16x8xf32>
    %361 = vector.extract_strided_slice %310 {offsets = [0, 24], sizes = [16, 8], strides = [1, 1]} : vector<16x32xbf16> to vector<16x8xbf16>
    %362 = vector.extract_strided_slice %311 {offsets = [0, 24], sizes = [8, 8], strides = [1, 1]} : vector<8x32xbf16> to vector<8x8xbf16>
    %cst_154 = arith.constant dense<0.000000e+00> : vector<16x8xf32>
    %363 = tpu.matmul %361, %362, %cst_154 {dimension_numbers = #tpu.dot_dimension_numbers<[1], [1], [0], [0], [0, 0, 1, 0], [], []>} : vector<16x8xbf16>, vector<8x8xbf16>, vector<16x8xf32> -> vector<16x8xf32>
    %cst_155 = arith.constant dense<0xFF800000> : vector<16xf32>
    %364 = vector.multi_reduction <maximumf>, %363, %cst_155 [1] : vector<16x8xf32> to vector<16xf32>
    %365 = vector.shape_cast %364 : vector<16xf32> to vector<16x1xf32>
    %366 = vector.broadcast %365 : vector<16x1xf32> to vector<16x8xf32>
    %367 = arith.subf %363, %366 : vector<16x8xf32>
    %368 = math.exp %367 : vector<16x8xf32>
    %cst_156 = arith.constant dense<0.000000e+00> : vector<16xf32>
    %369 = vector.multi_reduction <add>, %368, %cst_156 [1] : vector<16x8xf32> to vector<16xf32>
    %370 = vector.shape_cast %369 : vector<16xf32> to vector<16x1xf32>
    %371 = tpu.reciprocal %370 {approx = true} : vector<16x1xf32> -> vector<16x1xf32>
    %372 = vector.broadcast %371 : vector<16x1xf32> to vector<16x8xf32>
    %373 = arith.mulf %368, %372 : vector<16x8xf32>
    %374 = arith.truncf %373 : vector<16x8xf32> to vector<16x8xbf16>
    %375 = vector.extract_strided_slice %312 {offsets = [0, 24], sizes = [8, 8], strides = [1, 1]} : vector<8x32xbf16> to vector<8x8xbf16>
    %cst_157 = arith.constant dense<0.000000e+00> : vector<16x8xf32>
    %376 = tpu.matmul %374, %375, %cst_157 {dimension_numbers = #tpu.dot_dimension_numbers<[1], [0], [0], [1], [0, 0, 1, 1], [], []>} : vector<16x8xbf16>, vector<8x8xbf16>, vector<16x8xf32> -> vector<16x8xf32>
    %377 = tpu.concatenate %328, %344, %360, %376 in 1 : vector<16x8xf32>, vector<16x8xf32>, vector<16x8xf32>, vector<16x8xf32> -> vector<16x32xf32>
    %378 = arith.truncf %377 : vector<16x32xf32> to vector<16x32xbf16>
    %cst_158 = arith.constant dense<0.000000e+00> : vector<16x64xf32>
    %379 = tpu.matmul %378, %295, %cst_158 {dimension_numbers = #tpu.dot_dimension_numbers<[1], [0], [0], [1], [0, 0, 1, 1], [], []>} : vector<16x32xbf16>, vector<32x64xbf16>, vector<16x64xf32> -> vector<16x64xf32>
    %380 = vector.broadcast %296 : vector<1x64xf32> to vector<16x64xf32>
    %381 = arith.addf %379, %380 : vector<16x64xf32>
    %382 = arith.addf %3, %381 : vector<16x64xf32>
    %c0_159 = arith.constant 0 : index
    %c0_160 = arith.constant 0 : index
    %383 = vector.load %arg39[%c0_159, %c0_160] : memref<1x64xf32, #tpu.memory_space<vmem>>, vector<1x64xf32>
    %c0_161 = arith.constant 0 : index
    %c0_162 = arith.constant 0 : index
    %384 = vector.load %arg40[%c0_161, %c0_162] : memref<1x64xf32, #tpu.memory_space<vmem>>, vector<1x64xf32>
    %cst_163 = arith.constant dense<0.000000e+00> : vector<16xf32>
    %385 = vector.multi_reduction <add>, %382, %cst_163 [1] : vector<16x64xf32> to vector<16xf32>
    %386 = vector.shape_cast %385 : vector<16xf32> to vector<16x1xf32>
    %cst_164 = arith.constant 6.400000e+01 : f32
    %387 = vector.broadcast %cst_164 : f32 to vector<16x1xf32>
    %388 = arith.divf %386, %387 : vector<16x1xf32>
    %389 = vector.broadcast %388 : vector<16x1xf32> to vector<16x64xf32>
    %390 = arith.subf %382, %389 : vector<16x64xf32>
    %391 = arith.mulf %390, %390 : vector<16x64xf32>
    %cst_165 = arith.constant dense<0.000000e+00> : vector<16xf32>
    %392 = vector.multi_reduction <add>, %391, %cst_165 [1] : vector<16x64xf32> to vector<16xf32>
    %393 = vector.shape_cast %392 : vector<16xf32> to vector<16x1xf32>
    %cst_166 = arith.constant 6.400000e+01 : f32
    %394 = vector.broadcast %cst_166 : f32 to vector<16x1xf32>
    %395 = arith.divf %393, %394 : vector<16x1xf32>
    %396 = vector.broadcast %388 : vector<16x1xf32> to vector<16x64xf32>
    %397 = arith.subf %382, %396 : vector<16x64xf32>
    %cst_167 = arith.constant 9.99999997E-7 : f32
    %398 = vector.broadcast %cst_167 : f32 to vector<16x1xf32>
    %399 = arith.addf %395, %398 : vector<16x1xf32>
    %400 = math.rsqrt %399 : vector<16x1xf32>
    %401 = vector.broadcast %400 : vector<16x1xf32> to vector<16x64xf32>
    %402 = arith.mulf %397, %401 : vector<16x64xf32>
    %403 = vector.broadcast %383 : vector<1x64xf32> to vector<16x64xf32>
    %404 = arith.mulf %402, %403 : vector<16x64xf32>
    %405 = vector.broadcast %384 : vector<1x64xf32> to vector<16x64xf32>
    %406 = arith.addf %404, %405 : vector<16x64xf32>
    %c0_168 = arith.constant 0 : index
    %c0_169 = arith.constant 0 : index
    %c0_170 = arith.constant 0 : index
    %407 = vector.load %arg41[%c0_168, %c0_169, %c0_170] : memref<1x8x64xf32, #tpu.memory_space<vmem>>, vector<1x8x64xf32>
    %408 = vector.shape_cast %407 : vector<1x8x64xf32> to vector<8x64xf32>
    %409 = vector.shape_cast %287 : vector<8x64xf32> to vector<1x8x64xf32>
    tpu.vector_store %arg41[%c0_168, %c0_169, %c0_170], %409 {strides = array<i32>} : memref<1x8x64xf32, #tpu.memory_space<vmem>>, vector<1x8x64xf32>,
    %c0_171 = arith.constant 0 : index
    %c0_172 = arith.constant 0 : index
    %c0_173 = arith.constant 0 : index
    %410 = vector.load %arg42[%c0_171, %c0_172, %c0_173] : memref<1x16x64xf32, #tpu.memory_space<vmem>>, vector<1x16x64xf32>
    %411 = vector.shape_cast %410 : vector<1x16x64xf32> to vector<16x64xf32>
    %412 = vector.shape_cast %406 : vector<16x64xf32> to vector<1x16x64xf32>
    tpu.vector_store %arg42[%c0_171, %c0_172, %c0_173], %412 {strides = array<i32>} : memref<1x16x64xf32, #tpu.memory_space<vmem>>, vector<1x16x64xf32>,
    return
  }
  func.func @transform_0(%arg0: i32) -> (i32, i32, i32) {
    %c0_i32 = arith.constant 0 : i32
    %c0_i32_0 = arith.constant 0 : i32
    %c0_i32_1 = arith.constant 0 : i32
    return %arg0, %c0_i32, %c0_i32_0 : i32, i32, i32
  }
  func.func @transform_1(%arg0: i32) -> (i32, i32, i32) {
    %c0_i32 = arith.constant 0 : i32
    %c0_i32_0 = arith.constant 0 : i32
    %c0_i32_1 = arith.constant 0 : i32
    return %arg0, %c0_i32, %c0_i32_0 : i32, i32, i32
  }
  func.func @transform_2(%arg0: i32) -> (i32, i32, i32) {
    %c0_i32 = arith.constant 0 : i32
    %c0_i32_0 = arith.constant 0 : i32
    %c0_i32_1 = arith.constant 0 : i32
    return %arg0, %c0_i32, %c0_i32_0 : i32, i32, i32
  }
  func.func @transform_3(%arg0: i32) -> (i32, i32, i32) {
    %c0_i32 = arith.constant 0 : i32
    %c0_i32_0 = arith.constant 0 : i32
    %c0_i32_1 = arith.constant 0 : i32
    return %arg0, %c0_i32, %c0_i32_0 : i32, i32, i32
  }
  func.func @transform_4(%arg0: i32) -> (i32, i32) {
    %c0_i32 = arith.constant 0 : i32
    %c0_i32_0 = arith.constant 0 : i32
    %c0_i32_1 = arith.constant 0 : i32
    return %c0_i32, %c0_i32_0 : i32, i32
  }
  func.func @transform_5(%arg0: i32) -> (i32, i32) {
    %c0_i32 = arith.constant 0 : i32
    %c0_i32_0 = arith.constant 0 : i32
    %c0_i32_1 = arith.constant 0 : i32
    return %c0_i32, %c0_i32_0 : i32, i32
  }
  func.func @transform_6(%arg0: i32) -> (i32, i32) {
    %c0_i32 = arith.constant 0 : i32
    %c0_i32_0 = arith.constant 0 : i32
    %c0_i32_1 = arith.constant 0 : i32
    return %c0_i32, %c0_i32_0 : i32, i32
  }
  func.func @transform_7(%arg0: i32) -> (i32, i32) {
    %c0_i32 = arith.constant 0 : i32
    %c0_i32_0 = arith.constant 0 : i32
    %c0_i32_1 = arith.constant 0 : i32
    return %c0_i32, %c0_i32_0 : i32, i32
  }
  func.func @transform_8(%arg0: i32) -> (i32, i32) {
    %c0_i32 = arith.constant 0 : i32
    %c0_i32_0 = arith.constant 0 : i32
    %c0_i32_1 = arith.constant 0 : i32
    return %c0_i32, %c0_i32_0 : i32, i32
  }
  func.func @transform_9(%arg0: i32) -> (i32, i32) {
    %c0_i32 = arith.constant 0 : i32
    %c0_i32_0 = arith.constant 0 : i32
    %c0_i32_1 = arith.constant 0 : i32
    return %c0_i32, %c0_i32_0 : i32, i32
  }
  func.func @transform_10(%arg0: i32) -> (i32, i32) {
    %c0_i32 = arith.constant 0 : i32
    %c0_i32_0 = arith.constant 0 : i32
    %c0_i32_1 = arith.constant 0 : i32
    return %c0_i32, %c0_i32_0 : i32, i32
  }
  func.func @transform_11(%arg0: i32) -> (i32, i32) {
    %c0_i32 = arith.constant 0 : i32
    %c0_i32_0 = arith.constant 0 : i32
    %c0_i32_1 = arith.constant 0 : i32
    return %c0_i32, %c0_i32_0 : i32, i32
  }
  func.func @transform_12(%arg0: i32) -> (i32, i32) {
    %c0_i32 = arith.constant 0 : i32
    %c0_i32_0 = arith.constant 0 : i32
    %c0_i32_1 = arith.constant 0 : i32
    return %c0_i32, %c0_i32_0 : i32, i32
  }
  func.func @transform_13(%arg0: i32) -> (i32, i32) {
    %c0_i32 = arith.constant 0 : i32
    %c0_i32_0 = arith.constant 0 : i32
    %c0_i32_1 = arith.constant 0 : i32
    return %c0_i32, %c0_i32_0 : i32, i32
  }
  func.func @transform_14(%arg0: i32) -> (i32, i32) {
    %c0_i32 = arith.constant 0 : i32
    %c0_i32_0 = arith.constant 0 : i32
    %c0_i32_1 = arith.constant 0 : i32
    return %c0_i32, %c0_i32_0 : i32, i32
  }
  func.func @transform_15(%arg0: i32) -> (i32, i32) {
    %c0_i32 = arith.constant 0 : i32
    %c0_i32_0 = arith.constant 0 : i32
    %c0_i32_1 = arith.constant 0 : i32
    return %c0_i32, %c0_i32_0 : i32, i32
  }
  func.func @transform_16(%arg0: i32) -> (i32, i32) {
    %c0_i32 = arith.constant 0 : i32
    %c0_i32_0 = arith.constant 0 : i32
    %c0_i32_1 = arith.constant 0 : i32
    return %c0_i32, %c0_i32_0 : i32, i32
  }
  func.func @transform_17(%arg0: i32) -> (i32, i32) {
    %c0_i32 = arith.constant 0 : i32
    %c0_i32_0 = arith.constant 0 : i32
    %c0_i32_1 = arith.constant 0 : i32
    return %c0_i32, %c0_i32_0 : i32, i32
  }
  func.func @transform_18(%arg0: i32) -> (i32, i32) {
    %c0_i32 = arith.constant 0 : i32
    %c0_i32_0 = arith.constant 0 : i32
    %c0_i32_1 = arith.constant 0 : i32
    return %c0_i32, %c0_i32_0 : i32, i32
  }
  func.func @transform_19(%arg0: i32) -> (i32, i32) {
    %c0_i32 = arith.constant 0 : i32
    %c0_i32_0 = arith.constant 0 : i32
    %c0_i32_1 = arith.constant 0 : i32
    return %c0_i32, %c0_i32_0 : i32, i32
  }
  func.func @transform_20(%arg0: i32) -> (i32, i32) {
    %c0_i32 = arith.constant 0 : i32
    %c0_i32_0 = arith.constant 0 : i32
    %c0_i32_1 = arith.constant 0 : i32
    return %c0_i32, %c0_i32_0 : i32, i32
  }
  func.func @transform_21(%arg0: i32) -> (i32, i32) {
    %c0_i32 = arith.constant 0 : i32
    %c0_i32_0 = arith.constant 0 : i32
    %c0_i32_1 = arith.constant 0 : i32
    return %c0_i32, %c0_i32_0 : i32, i32
  }
  func.func @transform_22(%arg0: i32) -> (i32, i32) {
    %c0_i32 = arith.constant 0 : i32
    %c0_i32_0 = arith.constant 0 : i32
    %c0_i32_1 = arith.constant 0 : i32
    return %c0_i32, %c0_i32_0 : i32, i32
  }
  func.func @transform_23(%arg0: i32) -> (i32, i32) {
    %c0_i32 = arith.constant 0 : i32
    %c0_i32_0 = arith.constant 0 : i32
    %c0_i32_1 = arith.constant 0 : i32
    return %c0_i32, %c0_i32_0 : i32, i32
  }
  func.func @transform_24(%arg0: i32) -> (i32, i32) {
    %c0_i32 = arith.constant 0 : i32
    %c0_i32_0 = arith.constant 0 : i32
    %c0_i32_1 = arith.constant 0 : i32
    return %c0_i32, %c0_i32_0 : i32, i32
  }
  func.func @transform_25(%arg0: i32) -> (i32, i32) {
    %c0_i32 = arith.constant 0 : i32
    %c0_i32_0 = arith.constant 0 : i32
    %c0_i32_1 = arith.constant 0 : i32
    return %c0_i32, %c0_i32_0 : i32, i32
  }
  func.func @transform_26(%arg0: i32) -> (i32, i32) {
    %c0_i32 = arith.constant 0 : i32
    %c0_i32_0 = arith.constant 0 : i32
    %c0_i32_1 = arith.constant 0 : i32
    return %c0_i32, %c0_i32_0 : i32, i32
  }
  func.func @transform_27(%arg0: i32) -> (i32, i32) {
    %c0_i32 = arith.constant 0 : i32
    %c0_i32_0 = arith.constant 0 : i32
    %c0_i32_1 = arith.constant 0 : i32
    return %c0_i32, %c0_i32_0 : i32, i32
  }
  func.func @transform_28(%arg0: i32) -> (i32, i32) {
    %c0_i32 = arith.constant 0 : i32
    %c0_i32_0 = arith.constant 0 : i32
    %c0_i32_1 = arith.constant 0 : i32
    return %c0_i32, %c0_i32_0 : i32, i32
  }
  func.func @transform_29(%arg0: i32) -> (i32, i32) {
    %c0_i32 = arith.constant 0 : i32
    %c0_i32_0 = arith.constant 0 : i32
    %c0_i32_1 = arith.constant 0 : i32
    return %c0_i32, %c0_i32_0 : i32, i32
  }
  func.func @transform_30(%arg0: i32) -> (i32, i32) {
    %c0_i32 = arith.constant 0 : i32
    %c0_i32_0 = arith.constant 0 : i32
    %c0_i32_1 = arith.constant 0 : i32
    return %c0_i32, %c0_i32_0 : i32, i32
  }
  func.func @transform_31(%arg0: i32) -> (i32, i32) {
    %c0_i32 = arith.constant 0 : i32
    %c0_i32_0 = arith.constant 0 : i32
    %c0_i32_1 = arith.constant 0 : i32
    return %c0_i32, %c0_i32_0 : i32, i32
  }
  func.func @transform_32(%arg0: i32) -> (i32, i32) {
    %c0_i32 = arith.constant 0 : i32
    %c0_i32_0 = arith.constant 0 : i32
    %c0_i32_1 = arith.constant 0 : i32
    return %c0_i32, %c0_i32_0 : i32, i32
  }
  func.func @transform_33(%arg0: i32) -> (i32, i32) {
    %c0_i32 = arith.constant 0 : i32
    %c0_i32_0 = arith.constant 0 : i32
    %c0_i32_1 = arith.constant 0 : i32
    return %c0_i32, %c0_i32_0 : i32, i32
  }
  func.func @transform_34(%arg0: i32) -> (i32, i32) {
    %c0_i32 = arith.constant 0 : i32
    %c0_i32_0 = arith.constant 0 : i32
    %c0_i32_1 = arith.constant 0 : i32
    return %c0_i32, %c0_i32_0 : i32, i32
  }
  func.func @transform_35(%arg0: i32) -> (i32, i32) {
    %c0_i32 = arith.constant 0 : i32
    %c0_i32_0 = arith.constant 0 : i32
    %c0_i32_1 = arith.constant 0 : i32
    return %c0_i32, %c0_i32_0 : i32, i32
  }
  func.func @transform_36(%arg0: i32) -> (i32, i32) {
    %c0_i32 = arith.constant 0 : i32
    %c0_i32_0 = arith.constant 0 : i32
    %c0_i32_1 = arith.constant 0 : i32
    return %c0_i32, %c0_i32_0 : i32, i32
  }
  func.func @transform_37(%arg0: i32) -> (i32, i32) {
    %c0_i32 = arith.constant 0 : i32
    %c0_i32_0 = arith.constant 0 : i32
    %c0_i32_1 = arith.constant 0 : i32
    return %c0_i32, %c0_i32_0 : i32, i32
  }
  func.func @transform_38(%arg0: i32) -> (i32, i32) {
    %c0_i32 = arith.constant 0 : i32
    %c0_i32_0 = arith.constant 0 : i32
    %c0_i32_1 = arith.constant 0 : i32
    return %c0_i32, %c0_i32_0 : i32, i32
  }
  func.func @transform_39(%arg0: i32) -> (i32, i32) {
    %c0_i32 = arith.constant 0 : i32
    %c0_i32_0 = arith.constant 0 : i32
    %c0_i32_1 = arith.constant 0 : i32
    return %c0_i32, %c0_i32_0 : i32, i32
  }
  func.func @transform_40(%arg0: i32) -> (i32, i32, i32) {
    %c0_i32 = arith.constant 0 : i32
    %c0_i32_0 = arith.constant 0 : i32
    %c0_i32_1 = arith.constant 0 : i32
    return %arg0, %c0_i32, %c0_i32_0 : i32, i32, i32
  }
  func.func @transform_41(%arg0: i32) -> (i32, i32, i32) {
    %c0_i32 = arith.constant 0 : i32
    %c0_i32_0 = arith.constant 0 : i32
    %c0_i32_1 = arith.constant 0 : i32
    return %arg0, %c0_i32, %c0_i32_0 : i32, i32, i32
  }
}

</mosaic_0001>

<bundles_post_ra>
// kernel: two_way_attention_block.1
= control target key start
LH: loop header
LB: loop body
LE: loop exit
PB: predicated region body
PF: predicated region fallthrough
CT: control target
= control target key end

     0   :  { %s5156_s6 = smov 1   ;;  %s5157_s10 = smov 2   ;;  %s5985_s0 = inlined_call_operand.smem [shape: u32[42], index: -1, kind: input, shape index: {}] }
   0x1   :  { %s5220_s5 = sld [smem:[%s5985_s0]]   ;;  %s5158_s14 = smov 3  }
   0x2   :  { %s5225_s9 = sld [smem:[%s5985_s0 + %s5156_s6]]   ;;  %s5159_s18 = smov 4  }
   0x3   :  { %s5230_s13 = sld [smem:[%s5985_s0 + %s5157_s10]]   ;;  %s5160_s22 = smov 5  }
   0x4   :  { %s5235_s17 = sld [smem:[%s5985_s0 + %s5158_s14]]   ;;  %s5161_s26 = smov 6  }
   0x5   :  { %s5240_s21 = sld [smem:[%s5985_s0 + %s5159_s18]]   ;;  %s5162_s30 = smov 7  }
   0x6   :  { %s5245_s25 = sld [smem:[%s5985_s0 + %s5160_s22]]   ;;  %s5163_s4 = smov 8  }
   0x7   :  { %6014 = sst [smem:[#allocation8_spill]] %s5220_s5  ;;  %s5164_s10 = smov 9  }
   0x8   :  { %6015 = sst [smem:[#allocation9_spill]] %s5225_s9  ;;  %s5165_s15 = smov 10  }
   0x9   :  { %6016 = sst [smem:[#allocation10_spill]] %s5230_s13  ;;  %s5166_s20 = smov 11  }
   0xa   :  { %6017 = sst [smem:[#allocation11_spill]] %s5235_s17  ;;  %s5168_s1 = smov 13  }
   0xb   :  { %s5250_s29 = sld [smem:[%s5985_s0 + %s5161_s26]]   ;;  %s5167_s26 = smov 12  }
   0xc   :  { %s5255_s3 = sld [smem:[%s5985_s0 + %s5162_s30]]   ;;  %s5169_s7 = smov 14  }
   0xd   :  { %s5260_s8 = sld [smem:[%s5985_s0 + %s5163_s4]]   ;;  %s5171_s22 = smov 16  }
   0xe   :  { %s5265_s14 = sld [smem:[%s5985_s0 + %s5164_s10]]   ;;  %s5172_s28 = smov 17  }
   0xf   :  { %s5270_s19 = sld [smem:[%s5985_s0 + %s5165_s15]]   ;;  %s5170_s15 = smov 15  }
  0x10   :  { %s5275_s24 = sld [smem:[%s5985_s0 + %s5166_s20]]  }
  0x11   :  { %s5280_s30 = sld [smem:[%s5985_s0 + %s5167_s26]]  }
  0x12   :  { %6018 = sst [smem:[#allocation12_spill]] %s5255_s3 }
  0x13   :  { %6019 = sst [smem:[#allocation13_spill]] %s5260_s8 }
  0x14   :  { %6020 = sst [smem:[#allocation14_spill]] %s5265_s14 }
  0x15   :  { %s5285_s6 = sld [smem:[%s5985_s0 + %s5168_s1]]  }
  0x16   :  { %s5290_s12 = sld [smem:[%s5985_s0 + %s5169_s7]]   ;;  %s5173_s7 = smov 18  }
  0x17   :  { %6021 = sst [smem:[#allocation15_spill]] %s5280_s30 }
  0x18   :  { %s5295_s20 = sld [smem:[%s5985_s0 + %s5170_s15]]   ;;  %s5174_s15 = smov 19  }
  0x19   :  { %s5300_s27 = sld [smem:[%s5985_s0 + %s5171_s22]]   ;;  %s5175_s22 = smov 20  }
  0x1a   :  { %s5305_s4 = sld [smem:[%s5985_s0 + %s5172_s28]]   ;;  %s5176_s28 = smov 21  }
  0x1b   :  { %6022 = sst [smem:[#allocation16_spill]] %s5285_s6 }
  0x1c   :  { %6023 = sst [smem:[#allocation17_spill]] %s5290_s12 }
  0x1d   :  { %s5310_s6 = sld [smem:[%s5985_s0 + %s5173_s7]]   ;;  %s5177_s7 = smov 22  }
  0x1e   :  { %6024 = sst [smem:[#allocation18_spill]] %s5295_s20 }
  0x1f   :  { %s5315_s20 = sld [smem:[%s5985_s0 + %s5174_s15]]   ;;  %s5178_s15 = smov 23  }
  0x20   :  { %6025 = sst [smem:[#allocation19_spill]] %s5305_s4 }
  0x21   :  { %s5320_s30 = sld [smem:[%s5985_s0 + %s5175_s22]]   ;;  %s5179_s22 = smov 24  }
  0x22   :  { %s5325_s4 = sld [smem:[%s5985_s0 + %s5176_s28]]   ;;  %s5180_s28 = smov 25  }
  0x23   :  { %6026 = sst [smem:[#allocation20_spill]] %s5310_s6 }
  0x24   :  { %s5330_s6 = sld [smem:[%s5985_s0 + %s5177_s7]]   ;;  %s5181_s7 = smov 26  }
  0x25   :  { %6027 = sst [smem:[#allocation21_spill]] %s5315_s20 }
  0x26   :  { %s5335_s20 = sld [smem:[%s5985_s0 + %s5178_s15]]   ;;  %s5182_s15 = smov 27  }
  0x27   :  { %6028 = sst [smem:[#allocation22_spill]] %s5320_s30 }
  0x28   :  { %6029 = sst [smem:[#allocation23_spill]] %s5325_s4 }
  0x29   :  { %s5340_s30 = sld [smem:[%s5985_s0 + %s5179_s22]]   ;;  %s5183_s22 = smov 28  }
  0x2a   :  { %6030 = sst [smem:[#allocation24_spill]] %s5330_s6 }
  0x2b   :  { %s5345_s4 = sld [smem:[%s5985_s0 + %s5180_s28]]   ;;  %s5184_s28 = smov 29  }
  0x2c   :  { %6031 = sst [smem:[#allocation25_spill]] %s5335_s20 }
  0x2d   :  { %s5350_s6 = sld [smem:[%s5985_s0 + %s5181_s7]]   ;;  %s5185_s7 = smov 30  }
  0x2e   :  { %s5355_s20 = sld [smem:[%s5985_s0 + %s5182_s15]]   ;;  %s5186_s15 = smov 31  }
  0x2f   :  { %6032 = sst [smem:[#allocation26_spill]] %s5340_s30 }
  0x30   :  { %s5360_s30 = sld [smem:[%s5985_s0 + %s5183_s22]]   ;;  %s5187_s22 = smov 32  }
  0x31   :  { %6033 = sst [smem:[#allocation27_spill]] %s5345_s4 }
  0x32   :  { %s5365_s4 = sld [smem:[%s5985_s0 + %s5184_s28]]   ;;  %s5188_s28 = smov 33  }
  0x33   :  { %6034 = sst [smem:[#allocation28_spill]] %s5350_s6 }
  0x34   :  { %6035 = sst [smem:[#allocation29_spill]] %s5355_s20 }
  0x35   :  { %s5370_s6 = sld [smem:[%s5985_s0 + %s5185_s7]]   ;;  %s5189_s7 = smov 34  }
  0x36   :  { %6036 = sst [smem:[#allocation30_spill]] %s5360_s30 }
  0x37   :  { %s5375_s20 = sld [smem:[%s5985_s0 + %s5186_s15]]   ;;  %s5190_s15 = smov 35  }
  0x38   :  { %6037 = sst [smem:[#allocation31_spill]] %s5365_s4 }
  0x39   :  { %s5380_s30 = sld [smem:[%s5985_s0 + %s5187_s22]]   ;;  %s5191_s22 = smov 36  }
  0x3a   :  { %s5385_s4 = sld [smem:[%s5985_s0 + %s5188_s28]]   ;;  %s5192_s28 = smov 37  }
  0x3b   :  { %6038 = sst [smem:[#allocation32_spill]] %s5370_s6 }
  0x3c   :  { %s5390_s6 = sld [smem:[%s5985_s0 + %s5189_s7]]   ;;  %s5193_s7 = smov 38  }
  0x3d   :  { %6039 = sst [smem:[#allocation33_spill]] %s5375_s20 }
  0x3e   :  { %s5395_s20 = sld [smem:[%s5985_s0 + %s5190_s15]]   ;;  %s5194_s15 = smov 39  }
  0x3f   :  { %6040 = sst [smem:[#allocation34_spill]] %s5380_s30 }
  0x40   :  { %6041 = sst [smem:[#allocation35_spill]] %s5385_s4 }
  0x41   :  { %s5400_s30 = sld [smem:[%s5985_s0 + %s5191_s22]]   ;;  %s5195_s22 = smov 40  }
  0x42   :  { %6042 = sst [smem:[#allocation36_spill]] %s5390_s6 }
  0x43   :  { %s5405_s4 = sld [smem:[%s5985_s0 + %s5192_s28]]   ;;  %s5196_s28 = smov 41  }
  0x44   :  { %6043 = sst [smem:[#allocation37_spill]] %s5395_s20 }
  0x45   :  { %s5410_s6 = sld [smem:[%s5985_s0 + %s5193_s7]]  }
  0x46   :  { %s5415_s20 = sld [smem:[%s5985_s0 + %s5194_s15]]  }
  0x47   :  { %6044 = sst [smem:[#allocation38_spill]] %s5400_s30 }
  0x48   :  { %s5420_s30 = sld [smem:[%s5985_s0 + %s5195_s22]]  }
  0x49   :  { %6045 = sst [smem:[#allocation39_spill]] %s5405_s4 }
  0x4a   :  { %s5425_s4 = sld [smem:[%s5985_s0 + %s5196_s28]]  }
  0x4b   :  { %89 = vsyncpa [#allocation3], 0 }
  0x4c   :  { %91 = vsyncpa [#allocation3 + $0x1], 0 }
  0x4d   :  { %92 = vsyncpa [#allocation5], 0 }
  0x4e   :  { %94 = vsyncpa [#allocation5 + $0x1], 0  ;;  %s5427_s7 = smov 0   ;;  %s5429_s10 = smov 0  }
  0x4f   :  { %s5431_s11 = smov 0   ;;  %s5433_s15 = smov 0  }
  0x50 LB: > { %s6046_s12 = sld [smem:[#allocation17_spill]]  ;;  %s6047_s8 = sld [smem:[#allocation13_spill]]  ;;  %s5146_s10 = sphi %s5429_s10, %s6087_s10   ;;  %s5142_s7 = sphi %s5427_s7, %s6086_s7   ;;  %s5154_s15 = sphi %s5433_s15, %s6089_s15   ;;  %s5150_s11 = sphi %s5431_s11, %s6088_s11  }
  0x51   : > { %s5448_s0 = sadd.s32 4294967295, %s5154_s15   ;;  %s4247_s16 = sadd.s32 4294967294, %s5154_s15  }
  0x52   : > { %s5452_s18 = sadd.s32 1, %s5154_s15   ;;  %s967_s22 = sadd.s32 1, %s5150_s11 }
  0x53   : > { %s964_s23 = ssub.s32 %s5154_s15, %s5452_s18  ;;  %p977_p0 = scmp.ne.s32.totalorder %s5150_s11, %s5146_s10 }
  0x54   : > { %p965_p1 = scmp.eq.s32.totalorder %s964_s23, 0  ;;  %p978_p2 = scmp.eq.s32.totalorder %s5448_s0, 1 }
  0x55   : > { %p983_p3 = scmp.ne.s32.totalorder %s5146_s10, %s5142_s7  ;;  %p984_p4 = scmp.eq.s32.totalorder %s4247_s16, 1 }
  0x56   : > { %s5463_s26 = scalar_select %p965_p1, %s5150_s11, %s967_s22  }
  0x57   : > { %p5465_p5 = por %p978_p2, %p977_p0  ;;  %p5469_p6 = por %p984_p4, %p983_p3 }
  0x58   : > { %p4250_p7 = scmp.ge.s32.totalorder %s5154_s15, 1  ;;  %p1166_p8 = scmp.lt.s32.totalorder %s5154_s15, 3 }
  0x5a   : > { %p1167_p9 = pnand %p4250_p7, %p1166_p8 }
  0x5b   : > { %v4927_v0 = vld [vmem:[%s5250_s29] sm:$0xff] (!%p1167_p9)   ;;  %v5197_v1 = vmov (!%p1167_p9), 0.0   ;;  %v4929_v3 = vld [vmem:[%s5250_s29 + $0x8] sm:$0xff] (!%p1167_p9)   ;;  %s6050_s5 = sld [smem:[#allocation8_spill]] (!%p1167_p9)  ;;  %vm5198_vm0 = vmmov (!%p1167_p9), 0   ;;  %p1284_p10 = scmp.lt.s32.totalorder (!%p1167_p9), %s5448_s0, 1 }
  0x5c   : > { %1170 = sbr.rel (%p1167_p9) target bundleno = 6116 (0x17e4), region = 180  ;;  %4514 = vmatprep.subr.bf16.mxu1 (!%p1167_p9), %v5197_v1  ;;  %4502 = vmatprep.subr.bf16.mxu0 (!%p1167_p9), %v5197_v1  ;;  %v4928_v2 = vld [vmem:[%s5240_s21] sm:$0xff] (!%p1167_p9)   ;;  %s6051_s13 = sld [smem:[#allocation10_spill]] (!%p1167_p9)  ;;  %v4930_v4 = vld [vmem:[%s5240_s21 + $0x8] sm:$0xff] (!%p1167_p9)   ;;  %v4931_v5 = vld [vmem:[%s5250_s29 + $0x10] sm:$0xff] (!%p1167_p9)   ;;  %vm1377_vm1 = vcmask (!%p1167_p9), 523264  }
  0x5d   : > { %4515 = vmatpush3.bf16.msra.mxu1 (!%p1167_p9), %v4927_v0  ;;  %4522 = vmatprep.mubr.msk.bf16.mxu1 (!%p1167_p9), %vm5198_vm0, %v5197_v1  ;;  %v4932_v6 = vld [vmem:[%s5240_s21 + $0x10] sm:$0xff] (!%p1167_p9)   ;;  %v4933_v7 = vld [vmem:[%s5250_s29 + $0x18] sm:$0xff] (!%p1167_p9)   ;;  %s6052_s3 = sld [smem:[#allocation12_spill]] (!%p1167_p9)  ;;  %v4935_v13 = vld [vmem:[%s6047_s8] sm:$0xff] (!%p1167_p9)   ;;  %vm1569_vm2 = vcmask (!%p1167_p9), 130048   ;;  %s6053_s14 = sld [smem:[#allocation14_spill]] (!%p1167_p9) }
  0x5e   : > { %4503 = vmatpush3.bf16.msra.mxu0 (!%p1167_p9), %v4928_v2  ;;  %4516 = vmatprep.subr.bf16.mxu1 (!%p1167_p9), %v5197_v1  ;;  %v4934_v9 = vld [vmem:[%s5240_s21 + $0x18] sm:$0xff] (!%p1167_p9)   ;;  %v4936_v14 = vld [vmem:[%s6047_s8 + $0x8] sm:$0xff] (!%p1167_p9)   ;;  %v4937_v15 = vld [vmem:[%s6047_s8 + $0x10] sm:$0xff] (!%p1167_p9)   ;;  %vm1632_vm3 = vcmask (!%p1167_p9), 1043456   ;;  %vm1616_vm4 = vcmask (!%p1167_p9), 64512   ;;  %vm2022_vm5 = vcmask (!%p1167_p9), 261120  }
  0x5f   : > { %4504 = vmatprep.subr.bf16.mxu0 (!%p1167_p9), %v5197_v1  ;;  %4510 = vmatprep.mubr.msk.bf16.mxu0 (!%p1167_p9), %vm5198_vm0, %v5197_v1  ;;  %v4938_v16 = vld [vmem:[%s6047_s8 + $0x18] sm:$0xff] (!%p1167_p9)   ;;  %v4259_v19 = vld [vmem:[%s5245_s25] ss:$0 sm:$0xff] (!%p1167_p9)  ;;  %vm2024_vm6 = vcmask (!%p1167_p9), 392192   ;;  %s6054_s9 = sld [smem:[#allocation9_spill]] (!%p1167_p9)  ;;  %s6055_s17 = sld [smem:[#allocation11_spill]] (!%p1167_p9) }
  0x60   : > { %s5999_s8 = smov (!%p1167_p9), 104   ;;  %vm2836_vm7 = vcmask (!%p1167_p9), 195584  }
  0x61   : > { %4517 = vmatpush3.bf16.msra.mxu1 (!%p1167_p9), %v4929_v3 }
  0x62   : > { %4505 = vmatpush3.bf16.msra.mxu0 (!%p1167_p9), %v4930_v4  ;;  %4518 = vmatprep.subr.bf16.mxu1 (!%p1167_p9), %v5197_v1 }
  0x63   : > { %s5487_s2 = scalar_select %p1284_p10, %s5448_s0, 1  ;;  %4506 = vmatprep.subr.bf16.mxu0 %v5197_v1  ;;  %v4265_v18 = vld [vmem:[%s6052_s3] ss:$0 sm:$0xff] }
  0x64   : > { %s5201_s3 = smov 80   ;;  %v4271_v34 = vld [vmem:[%s6053_s14] ss:$0 sm:$0xff] }
  0x65   : > { %s4253_s16 = sshll.u32 %s5487_s2, 3  ;;  %4519 = vmatpush3.bf16.msra.mxu1 %v4931_v5 }
  0x66   : > { %s1287_s22 = scalar_lea.vmem %s6050_s5, %s4253_s16  ;;  %s5499_s23 = scalar_lea.vmem %s6051_s13, %s4253_s16  ;;  %4507 = vmatpush3.bf16.msra.mxu0 %v4932_v6  ;;  %4520 = vmatprep.subr.bf16.mxu1 %v5197_v1 }
  0x67   : > { %v5501_v8 = vld [vmem:[%s1287_s22] sm:$0xff]  ;;  %4508 = vmatprep.subr.bf16.mxu0 %v5197_v1  ;;  %s5199_s16 = smov 96   ;;  %s5994_s22 = smov 112  }
  0x68   : > { %v5505_v10 = vld [vmem:[%s5499_s23] sm:$0xff]  ;;  %v1491_v17 = vpack.c.bf16 %v5501_v8, %v5501_v8  ;;  %s6059_s5 = sld [smem:[#allocation18_spill]]  ;;  %s6071_s13 = sld [smem:[#allocation29_spill]] }
  0x69   : > { %v1309_v11 = vadd.f32 %v5505_v10, %v5501_v8  ;;  %4521 = vmatpush3.bf16.msra.mxu1 %v4933_v7 }
  0x6a   : > { %4509 = vmatpush3.bf16.msra.mxu0 %v4934_v9  ;;  %4538 = vmatprep.subr.bf16.mxu1 %v5197_v1 }
  0x6b   : > { %v1346_v12 = vpack.c.bf16 %v1309_v11, %v1309_v11  ;;  %4526 = vmatprep.subr.bf16.mxu0 %v5197_v1 }
  0x6d   : > { %4523 = vmatmul.mubr.msk.bf16.vlgmr.msra.gmra.mrb[0].mxu1 %vm1377_vm1, %v1346_v12  ;;  %4511 = vmatmul.mubr.msk.bf16.vlgmr.msra.gmra.mrb[0].mxu0 %vm1377_vm1, %v1346_v12 }
  0x6e   : > { %4540 = vmatprep.mubr.msk.bf16.mxu1 %vm5198_vm0, %v5197_v1  ;;  %4534 = vmatprep.mubr.msk.bf16.mxu0 %vm5198_vm0, %v5197_v1 }
  0x6f   : > { %4527 = vmatpush3.bf16.msra.mxu0 %v4935_v13 }
  0x70   : > { %4528 = vmatprep.subr.bf16.mxu0 %v5197_v1 }
  0x73   : > { %4529 = vmatpush3.bf16.msra.mxu0 %v4936_v14 }
  0x74   : > { %4530 = vmatprep.subr.bf16.mxu0 %v5197_v1 }
  0x77   : > { %4531 = vmatpush3.bf16.msra.mxu0 %v4937_v15 }
  0x78   : > { %4532 = vmatprep.subr.bf16.mxu0 %v5197_v1 }
  0x7b   : > { %4533 = vmatpush3.bf16.msra.mxu0 %v4938_v16 }
  0x7c   : > { %4550 = vmatprep.subr.bf16.mxu0 %v5197_v1 }
  0x7e   : > { %4535 = vmatmul.mubr.msk.bf16.vlgmr.msra.gmra.mrb[4].mxu0 %vm1377_vm1, %v1491_v17 }
  0x7f   : > { %4552 = vmatprep.mubr.msk.bf16.mxu0 %vm5198_vm0, %v5197_v1 }
 0x140   : > { %v1485_v20 = vpop.f32.mrb[0].mxu1  ;;  %v1415_v23 = vpop.f32.mrb[0].mxu0 }
 0x141   : > { %v1486_v21 = vadd.f32 %v4265_v18, %v1485_v20  ;;  %v4524_v22 = vpop.f32.mrb[1].mxu1  ;;  %v1416_v24 = vadd.f32 %v4259_v19, %v1415_v23  ;;  %v4512_v26 = vpop.f32.mrb[1].mxu0 }
 0x142   : > { %v1488_v25 = vpop.f32.mrb[2].mxu1  ;;  %v1418_v29 = vpop.f32.mrb[2].mxu0 }
 0x143   : > { %v1567_v27 = vpack.c.bf16 %v1486_v21, %v1486_v21  ;;  %v4525_v28 = vpop.f32.mrb[3].mxu1  ;;  %v1565_v30 = vmul.f32 0.25, %v1416_v24  ;;  %v4513_v31 = vpop.f32.mrb[3].mxu0 }
 0x145   : > { %1791 = vrot.lane.b32.xlu1 %v1567_v27, %s5199_s16  ;;  %1680 = vrot.lane.b32.xlu0 %v1567_v27, %s5994_s22  ;;  %v1574_v32 = vsel %vm1569_vm2, %v1567_v27, 0  ;;  %v1566_v33 = vpack.c.bf16 %v1565_v30, %v1565_v30 }
 0x146   : > { %4539 = vmatpush3.bf16.xpose.msra.mxu1 %v1574_v32 }
 0x147   : > { %4544 = vmatprep.subr.bf16.mxu1 %v5197_v1 }
 0x149   : > { %1789 = vrot.lane.b32.xlu1 %v1566_v33, %s5199_s16  ;;  %1677 = vrot.lane.b32.xlu0 %v1566_v33, %s5994_s22 }
 0x14d   : > { %1899 = vrot.lane.b32.xlu1 %v1566_v33, %s5201_s3  ;;  %1901 = vrot.lane.b32.xlu0 %v1567_v27, %s5201_s3 }
 0x14e   : > { %4541 = vmatmul.mubr.msk.bf16.vlgmr.msra.gmra.mrb[4].mxu1 %vm1569_vm2, %v1566_v33 }
 0x14f   : > { %4546 = vmatprep.mubr.msk.bf16.mxu1 %vm5198_vm0, %v5197_v1 }
 0x151   : > { %v1559_v35 = vpop.f32.mrb[4].mxu0 }
 0x152   : > { %v1560_v36 = vadd.f32 %v4271_v34, %v1559_v35  ;;  %v4536_v37 = vpop.f32.mrb[5].mxu0 }
 0x153   : > { %v1562_v38 = vpop.f32.mrb[6].mxu0 }
 0x154   : > { %v5546_v39 = vpack.c.bf16 %v1560_v36, %v1560_v36  ;;  %v4537_v40 = vpop.f32.mrb[7].mxu0 }
 0x156   : > { %v1634_v42 = vsel %vm1632_vm3, %v5546_v39, 0 }
 0x157   : > { %4545 = vmatpush3.bf16.msra.mxu1 %v1634_v42 }
 0x158   : > { %4556 = vmatprep.subr.bf16.mxu1 %v5197_v1 }
 0x1b7   : > { %v1681_v41 = vpop.permute.xlu0 %1680  ;;  %v1792_v44 = vpop.permute.xlu1 %1791 }
 0x1b8   : > { %v1686_v43 = vsel %vm1569_vm2, %v1681_v41, 0  ;;  %v1797_v46 = vsel %vm1569_vm2, %v1792_v44, 0 }
 0x1b9   : > { %4551 = vmatpush3.bf16.xpose.msra.mxu0 %v1686_v43 }
 0x1ba   : > { %4562 = vmatprep.subr.bf16.mxu0 %v5197_v1 }
 0x1bb   : > { %v1678_v45 = vpop.permute.xlu0 %1677  ;;  %v1790_v48 = vpop.permute.xlu1 %1789 }
 0x1bf   : > { %v1902_v47 = vpop.permute.xlu0 %1901  ;;  %v1900_v50 = vpop.permute.xlu1 %1899 }
 0x1c0   : > { %4553 = vmatmul.mubr.msk.bf16.vlgmr.msra.gmra.mrb[8].mxu0 %vm1569_vm2, %v1678_v45  ;;  %v1907_v49 = vsel %vm1569_vm2, %v1902_v47, 0 }
 0x1c1   : > { %4563 = vmatpush3.bf16.xpose.msra.mxu0 %v1797_v46  ;;  %4564 = vmatprep.mubr.msk.bf16.mxu0 %vm5198_vm0, %v5197_v1 }
 0x1c2   : > { %4574 = vmatprep.subr.bf16.mxu0 %v5197_v1 }
 0x1c8   : > { %4565 = vmatmul.mubr.msk.bf16.vlgmr.msra.gmra.mrb[12].mxu0 %vm1569_vm2, %v1790_v48 }
 0x1c9   : > { %4575 = vmatpush3.bf16.xpose.msra.mxu0 %v1907_v49  ;;  %4576 = vmatprep.mubr.msk.bf16.mxu0 %vm5198_vm0, %v5197_v1 }
 0x1ca   : > { %4586 = vmatprep.subr.bf16.mxu0 %v5197_v1 }
 0x1d0   : > { %4577 = vmatmul.mubr.msk.bf16.vlgmr.msra.gmra.mrb[16].mxu0 %vm1569_vm2, %v1900_v50 }
 0x1d1   : > { %4594 = vmatprep.mubr.msk.bf16.mxu0 %vm5198_vm0, %v5197_v1 }
 0x221   : > { %v1610_v51 = vpop.f32.mrb[4].mxu1 }
 0x222   : > { %v4542_v52 = vpop.f32.mrb[5].mxu1  ;;  %v1617_v53 = vsel %vm1616_vm4, %v1610_v51, -inf }
 0x223   : > { %1618 = vmax.xlane.f32.xlu0 %v1617_v53  ;;  %v1613_v54 = vpop.f32.mrb[6].mxu1 }
 0x224   : > { %v4543_v55 = vpop.f32.mrb[7].mxu1 }
 0x293   : > { %v1722_v56 = vpop.f32.mrb[8].mxu0 }
 0x294   : > { %v4554_v57 = vpop.f32.mrb[9].mxu0  ;;  %v1728_v58 = vsel %vm1616_vm4, %v1722_v56, -inf }
 0x295   : > { %1729 = vmax.xlane.f32.xlu1 %v1728_v58  ;;  %v1725_v59 = vpop.f32.mrb[10].mxu0  ;;  %v4940_v57 = vld [vmem:[%s5270_s19 + $0x8] sm:$0xff]   ;;  %v4941_v58 = vld [vmem:[%s5270_s19 + $0x10] sm:$0xff]  }
 0x296   : > { %v4555_v60 = vpop.f32.mrb[11].mxu0 }
 0x29b   : > { %v1833_v61 = vpop.f32.mrb[12].mxu0 }
 0x29c   : > { %v4566_v62 = vpop.f32.mrb[13].mxu0  ;;  %v1839_v63 = vsel %vm1616_vm4, %v1833_v61, -inf }
 0x29d   : > { %1840 = vmax.xlane.f32.xlu0 %v1839_v63  ;;  %v1836_v0 = vpop.f32.mrb[14].mxu0  ;;  %v4942_v63 = vld [vmem:[%s5270_s19 + $0x18] sm:$0xff]  }
 0x29e   : > { %v4567_v2 = vpop.f32.mrb[15].mxu0 }
 0x2a3   : > { %v1943_v3 = vpop.f32.mrb[16].mxu0 }
 0x2a4   : > { %v4578_v4 = vpop.f32.mrb[17].mxu0  ;;  %v1949_v5 = vsel %vm1616_vm4, %v1943_v3, -inf }
 0x2a5   : > { %1950 = vmax.xlane.f32.xlu0 %v1949_v5  ;;  %v1946_v6 = vpop.f32.mrb[18].mxu0 }
 0x2a6   : > { %v4579_v7 = vpop.f32.mrb[19].mxu0 }
 0x2b0   : > { %v1619_v9 = vpop.xlane.xlu0 %1618 }
 0x2b1   : > { %v1620_v11 = vsub.f32 %v1610_v51, %v1619_v9 }
 0x2b3   : > { %v1621_v12 = vmul.f32 1.442695, %v1620_v11 }
 0x2b5   : > { %4983 = vpow2.f32 %v1621_v12 }
 0x2bf   : > { %v4984_v13 = vpop.eup %4983 }
 0x2c0   : > { %v1623_v14 = vsel %vm1616_vm4, %v4984_v13, 0.0 }
 0x2c1   : > { %1624 = vadd.xlane.f32.xlu1 %v1623_v14 }
 0x2d2   : > { %1741 = vrot.lane.b32.xlu1 %v5546_v39, %s5994_s22  ;;  %s5204_s22 = smov 48  }
 0x322   : > { %v1730_v15 = vpop.xlane.xlu1 %1729 }
 0x323   : > { %v1731_v16 = vsub.f32 %v1722_v56, %v1730_v15  ;;  %v4939_v56 = vld [vmem:[%s5270_s19] sm:$0xff]  }
 0x324   : > { %4587 = vmatpush3.bf16.msra.mxu0 %v4939_v56 }
 0x325   : > { %v1732_v17 = vmul.f32 1.442695, %v1731_v16  ;;  %4588 = vmatprep.subr.bf16.mxu0 %v5197_v1 }
 0x327   : > { %4985 = vpow2.f32 %v1732_v17 }
 0x328   : > { %4589 = vmatpush3.bf16.msra.mxu0 %v4940_v57 }
 0x329   : > { %4590 = vmatprep.subr.bf16.mxu0 %v5197_v1 }
 0x32a   : > { %v1841_v18 = vpop.xlane.xlu0 %1840 }
 0x32b   : > { %v1842_v19 = vsub.f32 %v1833_v61, %v1841_v18  ;;  %v4285_v18 = vld [vmem:[%s5275_s24] ss:$0 sm:$0xff] }
 0x32c   : > { %4591 = vmatpush3.bf16.msra.mxu0 %v4941_v58 }
 0x32d   : > { %v1843_v20 = vmul.f32 1.442695, %v1842_v19  ;;  %4592 = vmatprep.subr.bf16.mxu0 %v5197_v1 }
 0x32f   : > { %4987 = vpow2.f32 %v1843_v20 }
 0x330   : > { %4593 = vmatpush3.bf16.msra.mxu0 %v4942_v63 }
 0x331   : > { %v4986_v21 = vpop.eup %4985  ;;  %4610 = vmatprep.subr.bf16.mxu0 %v5197_v1 }
 0x332   : > { %v1951_v22 = vpop.xlane.xlu0 %1950  ;;  %v1734_v23 = vsel %vm1616_vm4, %v4986_v21, 0.0 }
 0x333   : > { %v1952_v24 = vsub.f32 %v1943_v3, %v1951_v22  ;;  %1735 = vadd.xlane.f32.xlu0 %v1734_v23 }
 0x335   : > { %v1953_v25 = vmul.f32 1.442695, %v1952_v24 }
 0x337   : > { %4989 = vpow2.f32 %v1953_v25 }
 0x339   : > { %v4988_v26 = vpop.eup %4987 }
 0x33a   : > { %v1845_v27 = vsel %vm1616_vm4, %v4988_v26, 0.0 }
 0x33b   : > { %1846 = vadd.xlane.f32.xlu1 %v1845_v27  ;;  %v4944_v27 = vld [vmem:[%s5300_s27 + $0x8] sm:$0xff]  }
 0x341   : > { %v4990_v28 = vpop.eup %4989 }
 0x342   : > { %v1955_v29 = vsel %vm1616_vm4, %v4990_v28, 0.0 }
 0x343   : > { %1956 = vadd.xlane.f32.xlu0 %v1955_v29 }
 0x34c   : > { %1961 = vrot.lane.b32.xlu1 %v5546_v39, %s5201_s3  ;;  %s5996_s3 = smov 16  }
 0x34e   : > { %v1625_v30 = vpop.xlane.xlu1 %1624 }
 0x34f   : > { %4991 = vrcp.f32 %v1625_v30 }
 0x352   : > { %v1742_v33 = vpop.permute.xlu1 %1741 }
 0x353   : > { %v1747_v35 = vsel %vm1632_vm3, %v1742_v33, 0  ;;  %v4946_v33 = vld [vmem:[%s5300_s27 + $0x18] sm:$0xff]  }
 0x359   : > { %v4992_v31 = vpop.eup %4991  ;;  %1851 = vrot.lane.b32.xlu0 %v5546_v39, %s5199_s16  ;;  %s5203_s16 = smov 32  }
 0x35a   : > { %v1627_v32 = vmul.f32 %v4992_v31, %v4984_v13 }
 0x35c   : > { %v1628_v34 = vpack.c.bf16 %v1627_v32, %v1627_v32  ;;  %v4945_v32 = vld [vmem:[%s5300_s27 + $0x10] sm:$0xff]  }
 0x35e   : > { %4547 = vmatmul.mubr.msk.bf16.vlgmr.msra.gmra.mrb[8].mxu1 %vm1616_vm4, %v1628_v34 }
 0x35f   : > { %4557 = vmatpush3.bf16.msra.mxu1 %v1747_v35  ;;  %4558 = vmatprep.mubr.msk.bf16.mxu1 %vm5198_vm0, %v5197_v1 }
 0x360   : > { %4568 = vmatprep.subr.bf16.mxu1 %v5197_v1 }
 0x3c0   : > { %v1736_v36 = vpop.xlane.xlu0 %1735 }
 0x3c1   : > { %4993 = vrcp.f32 %v1736_v36 }
 0x3c8   : > { %v1847_v37 = vpop.xlane.xlu1 %1846 }
 0x3c9   : > { %4995 = vrcp.f32 %v1847_v37 }
 0x3cb   : > { %v4994_v38 = vpop.eup %4993 }
 0x3cc   : > { %v1738_v40 = vmul.f32 %v4994_v38, %v4986_v21  ;;  %v1962_v46 = vpop.permute.xlu1 %1961 }
 0x3cd   : > { %v1967_v48 = vsel %vm1632_vm3, %v1962_v46, 0 }
 0x3ce   : > { %v1739_v39 = vpack.c.bf16 %v1738_v40, %v1738_v40 }
 0x3d0   : > { %4559 = vmatmul.mubr.msk.bf16.vlgmr.msra.gmra.mrb[12].mxu1 %vm1616_vm4, %v1739_v39  ;;  %v1957_v41 = vpop.xlane.xlu0 %1956 }
 0x3d1   : > { %4997 = vrcp.f32 %v1957_v41  ;;  %4570 = vmatprep.mubr.msk.bf16.mxu1 %vm5198_vm0, %v5197_v1  ;;  %v4947_v41 = vld [vmem:[%s6046_s12] sm:$0xff]  }
 0x3d3   : > { %v4996_v42 = vpop.eup %4995 }
 0x3d4   : > { %v1849_v43 = vmul.f32 %v4996_v42, %v4988_v26  ;;  %v1852_v44 = vpop.permute.xlu0 %1851  ;;  %v4943_v26 = vld [vmem:[%s5300_s27] sm:$0xff]   ;;  %v4948_v42 = vld [vmem:[%s6046_s12 + $0x8] sm:$0xff]  }
 0x3d5   : > { %v1857_v45 = vsel %vm1632_vm3, %v1852_v44, 0  ;;  %v4950_v44 = vld [vmem:[%s6046_s12 + $0x18] sm:$0xff]  }
 0x3d6   : > { %4569 = vmatpush3.bf16.msra.mxu1 %v1857_v45  ;;  %v1850_v47 = vpack.c.bf16 %v1849_v43, %v1849_v43  ;;  %v4949_v43 = vld [vmem:[%s6046_s12 + $0x10] sm:$0xff]   ;;  %s6004_s12 = smov 24  }
 0x3d7   : > { %4580 = vmatprep.subr.bf16.mxu1 %v5197_v1 }
 0x3d9   : > { %4571 = vmatmul.mubr.msk.bf16.vlgmr.msra.gmra.mrb[16].mxu1 %vm1616_vm4, %v1850_v47 }
 0x3da   : > { %4581 = vmatpush3.bf16.msra.mxu1 %v1967_v48  ;;  %4582 = vmatprep.mubr.msk.bf16.mxu1 %vm5198_vm0, %v5197_v1 }
 0x3db   : > { %v4998_v49 = vpop.eup %4997  ;;  %4598 = vmatprep.subr.bf16.mxu1 %v5197_v1 }
 0x3dc   : > { %v1959_v50 = vmul.f32 %v4998_v49, %v4990_v28 }
 0x3de   : > { %v1960_v51 = vpack.c.bf16 %v1959_v50, %v1959_v50 }
 0x3e1   : > { %4583 = vmatmul.mubr.msk.bf16.vlgmr.msra.gmra.mrb[20].mxu1 %vm1616_vm4, %v1960_v51 }
 0x3e2   : > { %4606 = vmatprep.mubr.msk.bf16.mxu1 %vm5198_vm0, %v5197_v1  ;;  %4599 = vmatpush3.bf16.msra.mxu1 %v4947_v41 }
 0x3e3   : > { %4600 = vmatprep.subr.bf16.mxu1 %v5197_v1 }
 0x3e6   : > { %4601 = vmatpush3.bf16.msra.mxu1 %v4948_v42 }
 0x3e7   : > { %4602 = vmatprep.subr.bf16.mxu1 %v5197_v1 }
 0x3ea   : > { %4603 = vmatpush3.bf16.msra.mxu1 %v4949_v43 }
 0x3eb   : > { %4604 = vmatprep.subr.bf16.mxu1 %v5197_v1 }
 0x3ee   : > { %4605 = vmatpush3.bf16.msra.mxu1 %v4950_v44 }
 0x3ef   : > { %4622 = vmatprep.subr.bf16.mxu1 %v5197_v1 }
 0x431   : > { %v1670_v52 = vpop.f32.mrb[8].mxu1 }
 0x432   : > { %v4548_v53 = vpop.f32.mrb[9].mxu1 }
 0x433   : > { %v1673_v54 = vpop.f32.mrb[10].mxu1 }
 0x434   : > { %v4549_v55 = vpop.f32.mrb[11].mxu1 }
 0x4a3   : > { %v1783_v59 = vpop.f32.mrb[12].mxu1 }
 0x4a4   : > { %2010 = vrot.lane.b32.xlu1 %v1783_v59, %s5996_s3  ;;  %v4560_v60 = vpop.f32.mrb[13].mxu1 }
 0x4a5   : > { %v1786_v61 = vpop.f32.mrb[14].mxu1 }
 0x4a6   : > { %v4561_v62 = vpop.f32.mrb[15].mxu1 }
 0x4ac   : > { %v1893_v0 = vpop.f32.mrb[16].mxu1 }
 0x4ad   : > { %2014 = vrot.lane.b32.xlu0 %v1893_v0, %s5203_s16  ;;  %v4572_v2 = vpop.f32.mrb[17].mxu1  ;;  %v4293_v0 = vld [vmem:[%s6059_s5] ss:$0 sm:$0xff]  ;;  %s6062_s5 = sld [smem:[#allocation21_spill]] }
 0x4ae   : > { %v1896_v3 = vpop.f32.mrb[18].mxu1 }
 0x4af   : > { %v4573_v4 = vpop.f32.mrb[19].mxu1 }
 0x4b4   : > { %v2003_v5 = vpop.f32.mrb[20].mxu1 }
 0x4b5   : > { %2018 = vrot.lane.b32.xlu1 %v2003_v5, %s5204_s22  ;;  %v4584_v6 = vpop.f32.mrb[21].mxu1  ;;  %s4381_s22 = sshll.u32 %s5487_s2, 4  ;;  %s6056_s2 = sld [smem:[#allocation15_spill]] }
 0x4b6   : > { %v2006_v7 = vpop.f32.mrb[22].mxu1  ;;  %s5623_s16 = scalar_lea.vmem %s6054_s9, %s4381_s22  ;;  %s1301_s3 = scalar_lea.vmem %s6055_s17, %s4381_s22 }
 0x4b7   : > { %v4585_v9 = vpop.f32.mrb[23].mxu1  ;;  %v5629_v34 = vld [vmem:[%s5623_s16] sm:$0xff]  ;;  %v5632_v35 = vld [vmem:[%s5623_s16 + $0x8] sm:$0xff]  ;;  %s6058_s22 = sld [smem:[#allocation19_spill]]  ;;  %s6065_s9 = sld [smem:[#allocation23_spill]] }
 0x4b8   : > { %v1307_v36 = vld [vmem:[%s1301_s3] sm:$0xff]  ;;  %v1308_v37 = vld [vmem:[%s1301_s3 + $0x8] sm:$0xff]  ;;  %s6057_s3 = sld [smem:[#allocation16_spill]]  ;;  %s6078_s17 = sld [smem:[#allocation37_spill]] }
 0x4b9   : > { %v2131_v38 = vadd.f32 %v1307_v36, %v5629_v34  ;;  %v2132_v40 = vadd.f32 %v1308_v37, %v5632_v35 }
 0x4bb   : > { %v5637_v39 = vpack.c.bf16 %v2132_v40, %v2131_v38  ;;  %v4291_v49 = vld [vmem:[%s6056_s2] ss:$0 sm:$0xff]  ;;  %s6001_s2 = smov 120  }
 0x4bd   : > { %v4299_v56 = vld [vmem:[%s6058_s22] ss:$0 sm:$0xff]  ;;  %s6061_s22 = sld [smem:[#allocation20_spill]] }
 0x4be   : > { %v4292_v51 = vld [vmem:[%s6057_s3] ss:$0 sm:$0xff]  ;;  %s6060_s3 = smov 112  }
 0x516   : > { %v2011_v11 = vpop.permute.xlu1 %2010 }
 0x517   : > { %v2021_v13 = vsel %vm1569_vm2, %v1670_v52, %v2011_v11 }
 0x51f   : > { %v2015_v12 = vpop.permute.xlu0 %2014 }
 0x520   : > { %v2023_v14 = vsel %vm2022_vm5, %v2021_v13, %v2015_v12  ;;  %v4951_v13 = vld [vmem:[%s6061_s22] sm:$0xff]  }
 0x527   : > { %v2019_v15 = vpop.permute.xlu1 %2018 }
 0x528   : > { %v2025_v16 = vsel %vm2024_vm6, %v2023_v14, %v2019_v15  ;;  %v4952_v14 = vld [vmem:[%s6061_s22 + $0x8] sm:$0xff]   ;;  %v4953_v15 = vld [vmem:[%s6061_s22 + $0x10] sm:$0xff]  }
 0x529   : > { %v2026_v17 = vpack.c.bf16 %v2025_v16, %v2025_v16  ;;  %v4954_v16 = vld [vmem:[%s6061_s22 + $0x18] sm:$0xff]  }
 0x52b   : > { %4595 = vmatmul.mubr.msk.bf16.vlgmr.msra.gmra.mrb[20].mxu0 %vm1377_vm1, %v2026_v17  ;;  %v2134_v17 = vpack.c.bf16 %v5632_v35, %v5629_v34 }
 0x52c   : > { %4618 = vmatprep.mubr.msk.bf16.mxu0 %vm5198_vm0, %v5197_v1  ;;  %4611 = vmatpush3.bf16.msra.mxu0 %v4943_v26 }
 0x52d   : > { %4612 = vmatprep.subr.bf16.mxu0 %v5197_v1 }
 0x530   : > { %4613 = vmatpush3.bf16.msra.mxu0 %v4944_v27 }
 0x531   : > { %4614 = vmatprep.subr.bf16.mxu0 %v5197_v1 }
 0x534   : > { %4615 = vmatpush3.bf16.msra.mxu0 %v4945_v32 }
 0x535   : > { %4616 = vmatprep.subr.bf16.mxu0 %v5197_v1 }
 0x538   : > { %4617 = vmatpush3.bf16.msra.mxu0 %v4946_v33 }
 0x539   : > { %4634 = vmatprep.subr.bf16.mxu0 %v5197_v1 }
 0x53b   : > { %4619 = vmatmul.mubr.msk.bf16.vlgmr.msra.gmra.mrb[24].mxu0 %vm1377_vm1, %v5637_v39 }
 0x53c   : > { %4636 = vmatprep.mubr.msk.bf16.mxu0 %vm5198_vm0, %v5197_v1 }
 0x5fe   : > { %v2094_v19 = vpop.f32.mrb[20].mxu0 }
 0x5ff   : > { %v2095_v20 = vadd.f32 %v4285_v18, %v2094_v19  ;;  %v4596_v21 = vpop.f32.mrb[21].mxu0 }
 0x600   : > { %v2097_v22 = vpop.f32.mrb[22].mxu0 }
 0x601   : > { %v4597_v23 = vpop.f32.mrb[23].mxu0  ;;  %v2100_v24 = vadd.f32 %v2095_v20, %v5501_v8 }
 0x603   : > { %v2103_v25 = vsel %vm1377_vm1, %v2100_v24, 0.0 }
 0x604   : > { %2104 = vadd.xlane.f32.xlu0 %v2103_v25 }
 0x60e   : > { %v2309_v57 = vpop.f32.mrb[24].mxu0 }
 0x60f   : > { %v2310_v58 = vadd.f32 %v4299_v56, %v2309_v57  ;;  %v4620_v59 = vpop.f32.mrb[25].mxu0 }
 0x610   : > { %v2312_v60 = vpop.f32.mrb[26].mxu0 }
 0x611   : > { %v2313_v61 = vadd.f32 %v4299_v56, %v2312_v60  ;;  %v4621_v62 = vpop.f32.mrb[27].mxu0 }
 0x613   : > { %v2392_v63 = vpack.c.bf16 %v2313_v61, %v2310_v58 }
 0x61a   : > { %2499 = vrot.lane.b32.xlu0 %v2392_v63, %s6001_s2 }
 0x61e   : > { %2608 = vrot.lane.b32.xlu0 %v2392_v63, %s6060_s3 }
 0x622   : > { %2716 = vrot.lane.b32.xlu0 %v2392_v63, %s5999_s8 }
 0x691   : > { %v2105_v28 = vpop.xlane.xlu0 %2104 }
 0x692   : > { %v2107_v29 = vmul.f32 0.015625, %v2105_v28 }
 0x694   : > { %v2108_v30 = vsub.f32 %v2100_v24, %v2107_v29 }
 0x695   : > { %v2500_v9 = vpop.permute.xlu0 %2499 }
 0x696   : > { %v2109_v31 = vmul.f32 %v2108_v30, %v2108_v30  ;;  %v2505_v12 = vsel %vm1616_vm4, %v2500_v9, 0 }
 0x698   : > { %v2110_v8 = vsel %vm1377_vm1, %v2109_v31, 0.0 }
 0x699   : > { %2111 = vadd.xlane.f32.xlu1 %v2110_v8  ;;  %v2609_v18 = vpop.permute.xlu0 %2608 }
 0x69a   : > { %v2614_v20 = vsel %vm1616_vm4, %v2609_v18, 0 }
 0x69d   : > { %v2717_v21 = vpop.permute.xlu0 %2716 }
 0x69e   : > { %v2722_v23 = vsel %vm1616_vm4, %v2717_v21, 0 }
 0x726   : > { %v2112_v45 = vpop.xlane.xlu1 %2111 }
 0x727   : > { %v2113_v46 = vmul.f32 0.015625, %v2112_v45 }
 0x729   : > { %v2114_v47 = vadd.f32 1e-06, %v2113_v46 }
 0x72b   : > { %4999 = vrsqrt.f32 %v2114_v47 }
 0x735   : > { %v5000_v48 = vpop.eup %4999 }
 0x736   : > { %v2116_v50 = vmul.f32 %v5000_v48, %v2108_v30  ;;  %v4305_v30 = vld [vmem:[%s6062_s5] ss:$0 sm:$0xff]  ;;  %s6063_s5 = sld [smem:[#allocation22_spill]] }
 0x738   : > { %v2123_v52 = vmul.f32 %v4291_v49, %v2116_v50 }
 0x73a   : > { %v5653_v53 = vadd.f32 %v4292_v51, %v2123_v52 }
 0x73c   : > { %v2135_v54 = vadd.f32 %v5653_v53, %v5505_v10  ;;  %v2398_v10 = vsel %vm1616_vm4, %v2392_v63, 0 }
 0x73d   : > { %4635 = vmatpush3.bf16.xpose.msra.mxu0 %v2398_v10 }
 0x73e   : > { %v2168_v55 = vpack.c.bf16 %v2135_v54, %v2135_v54  ;;  %4646 = vmatprep.subr.bf16.mxu0 %v5197_v1 }
 0x740   : > { %4607 = vmatmul.mubr.msk.bf16.vlgmr.msra.gmra.mrb[24].mxu1 %vm1377_vm1, %v2168_v55 }
 0x741   : > { %4630 = vmatprep.mubr.msk.bf16.mxu1 %vm5198_vm0, %v5197_v1  ;;  %4623 = vmatpush3.bf16.msra.mxu1 %v4951_v13 }
 0x742   : > { %4624 = vmatprep.subr.bf16.mxu1 %v5197_v1 }
 0x745   : > { %4625 = vmatpush3.bf16.msra.mxu1 %v4952_v14 }
 0x746   : > { %4626 = vmatprep.subr.bf16.mxu1 %v5197_v1 }
 0x749   : > { %4627 = vmatpush3.bf16.msra.mxu1 %v4953_v15 }
 0x74a   : > { %4628 = vmatprep.subr.bf16.mxu1 %v5197_v1 }
 0x74d   : > { %4629 = vmatpush3.bf16.msra.mxu1 %v4954_v16 }
 0x74e   : > { %4640 = vmatprep.subr.bf16.mxu1 %v5197_v1 }
 0x750   : > { %4631 = vmatmul.mubr.msk.bf16.vlgmr.msra.gmra.mrb[28].mxu1 %vm1377_vm1, %v2134_v17 }
 0x751   : > { %4642 = vmatprep.mubr.msk.bf16.mxu1 %vm5198_vm0, %v5197_v1 }
 0x813   : > { %v2236_v2 = vpop.f32.mrb[24].mxu1 }
 0x814   : > { %v2237_v3 = vadd.f32 %v4293_v0, %v2236_v2  ;;  %v4608_v4 = vpop.f32.mrb[25].mxu1 }
 0x815   : > { %v2239_v5 = vpop.f32.mrb[26].mxu1 }
 0x816   : > { %v2390_v6 = vmul.f32 0.35355338, %v2237_v3  ;;  %v4609_v7 = vpop.f32.mrb[27].mxu1 }
 0x818   : > { %v2391_v11 = vpack.c.bf16 %v2390_v6, %v2390_v6 }
 0x81a   : > { %2496 = vrot.lane.b32.xlu1 %v2391_v11, %s6001_s2  ;;  %4637 = vmatmul.mubr.msk.bf16.vlgmr.msra.gmra.mrb[28].mxu0 %vm1616_vm4, %v2391_v11 }
 0x81b   : > { %4647 = vmatpush3.bf16.xpose.msra.mxu0 %v2505_v12  ;;  %4648 = vmatprep.mubr.msk.bf16.mxu0 %vm5198_vm0, %v5197_v1 }
 0x81c   : > { %4658 = vmatprep.subr.bf16.mxu0 %v5197_v1 }
 0x81e   : > { %2606 = vrot.lane.b32.xlu1 %v2391_v11, %s6060_s3 }
 0x822   : > { %2714 = vrot.lane.b32.xlu1 %v2391_v11, %s5999_s8 }
 0x823   : > { %v2383_v31 = vpop.f32.mrb[28].mxu1 }
 0x824   : > { %v2384_v8 = vadd.f32 %v4305_v30, %v2383_v31  ;;  %v4632_v32 = vpop.f32.mrb[29].mxu1 }
 0x825   : > { %v2386_v33 = vpop.f32.mrb[30].mxu1 }
 0x826   : > { %v2387_v34 = vadd.f32 %v4305_v30, %v2386_v33  ;;  %v4633_v35 = vpop.f32.mrb[31].mxu1 }
 0x828   : > { %v2393_v36 = vpack.c.bf16 %v2387_v34, %v2384_v8  ;;  %v4955_v34 = vld [vmem:[%s6063_s5] sm:$0xff]  }
 0x82a   : > { %4641 = vmatpush3.bf16.msra.mxu1 %v2393_v36 }
 0x82b   : > { %4652 = vmatprep.subr.bf16.mxu1 %v5197_v1 }
 0x88c   : > { %v2497_v19 = vpop.permute.xlu1 %2496 }
 0x88d   : > { %4649 = vmatmul.mubr.msk.bf16.vlgmr.msra.gmra.mrb[32].mxu0 %vm1616_vm4, %v2497_v19 }
 0x88e   : > { %4659 = vmatpush3.bf16.xpose.msra.mxu0 %v2614_v20  ;;  %4660 = vmatprep.mubr.msk.bf16.mxu0 %vm5198_vm0, %v5197_v1 }
 0x88f   : > { %4670 = vmatprep.subr.bf16.mxu0 %v5197_v1 }
 0x890   : > { %v2607_v22 = vpop.permute.xlu1 %2606 }
 0x894   : > { %v2715_v24 = vpop.permute.xlu1 %2714 }
 0x895   : > { %4661 = vmatmul.mubr.msk.bf16.vlgmr.msra.gmra.mrb[36].mxu0 %vm1616_vm4, %v2607_v22 }
 0x896   : > { %4671 = vmatpush3.bf16.xpose.msra.mxu0 %v2722_v23  ;;  %4672 = vmatprep.mubr.msk.bf16.mxu0 %vm5198_vm0, %v5197_v1 }
 0x897   : > { %4682 = vmatprep.subr.bf16.mxu0 %v5197_v1 }
 0x89d   : > { %4673 = vmatmul.mubr.msk.bf16.vlgmr.msra.gmra.mrb[40].mxu0 %vm1616_vm4, %v2715_v24 }
 0x89e   : > { %4686 = vmatprep.mubr.msk.bf16.mxu0 %vm5198_vm0, %v5197_v1  ;;  %4683 = vmatpush3.bf16.msra.mxu0 %v4955_v34 }
 0x89f   : > { %4684 = vmatprep.subr.bf16.mxu0 %v5197_v1 }
 0x8ed   : > { %v2434_v25 = vpop.f32.mrb[28].mxu0 }
 0x8ee   : > { %v4638_v26 = vpop.f32.mrb[29].mxu0  ;;  %v2440_v27 = vsel %vm1569_vm2, %v2434_v25, -inf }
 0x8ef   : > { %2441 = vmax.xlane.f32.xlu0 %v2440_v27  ;;  %v2437_v28 = vpop.f32.mrb[30].mxu0 }
 0x8f0   : > { %v4639_v29 = vpop.f32.mrb[31].mxu0 }
 0x960   : > { %v2541_v37 = vpop.f32.mrb[32].mxu0 }
 0x961   : > { %v4650_v38 = vpop.f32.mrb[33].mxu0  ;;  %v2547_v40 = vsel %vm1569_vm2, %v2541_v37, -inf }
 0x962   : > { %2548 = vmax.xlane.f32.xlu1 %v2547_v40  ;;  %v2544_v41 = vpop.f32.mrb[34].mxu0  ;;  %v4956_v40 = vld [vmem:[%s6063_s5 + $0x8] sm:$0xff]   ;;  %s6069_s5 = sld [smem:[#allocation25_spill]] }
 0x963   : > { %v4651_v42 = vpop.f32.mrb[35].mxu0  ;;  %4685 = vmatpush3.bf16.msra.mxu0 %v4956_v40 }
 0x964   : > { %4702 = vmatprep.subr.bf16.mxu0 %v5197_v1 }
 0x968   : > { %v2650_v43 = vpop.f32.mrb[36].mxu0 }
 0x969   : > { %v4662_v44 = vpop.f32.mrb[37].mxu0  ;;  %v2656_v45 = vsel %vm1569_vm2, %v2650_v43, -inf }
 0x96a   : > { %2657 = vmax.xlane.f32.xlu0 %v2656_v45  ;;  %v2653_v46 = vpop.f32.mrb[38].mxu0 }
 0x96b   : > { %v4663_v47 = vpop.f32.mrb[39].mxu0 }
 0x970   : > { %v2758_v48 = vpop.f32.mrb[40].mxu0 }
 0x971   : > { %v4674_v49 = vpop.f32.mrb[41].mxu0  ;;  %v2764_v50 = vsel %vm1569_vm2, %v2758_v48, -inf }
 0x972   : > { %2765 = vmax.xlane.f32.xlu0 %v2764_v50  ;;  %v2761_v51 = vpop.f32.mrb[42].mxu0 }
 0x973   : > { %v4675_v52 = vpop.f32.mrb[43].mxu0 }
 0x97c   : > { %v2442_v54 = vpop.xlane.xlu0 %2441 }
 0x97d   : > { %v2443_v55 = vsub.f32 %v2434_v25, %v2442_v54 }
 0x97f   : > { %v2444_v56 = vmul.f32 1.442695, %v2443_v55 }
 0x981   : > { %5001 = vpow2.f32 %v2444_v56 }
 0x98b   : > { %v5002_v57 = vpop.eup %5001 }
 0x98c   : > { %v2446_v58 = vsel %vm1569_vm2, %v5002_v57, 0.0 }
 0x98d   : > { %2447 = vadd.xlane.f32.xlu1 %v2446_v58 }
 0x99e   : > { %2560 = vrot.lane.b32.xlu1 %v2393_v36, %s6001_s2  ;;  %s6064_s2 = smov 16  }
 0x9ef   : > { %v2549_v59 = vpop.xlane.xlu1 %2548 }
 0x9f0   : > { %v2550_v60 = vsub.f32 %v2541_v37, %v2549_v59 }
 0x9f2   : > { %v2551_v61 = vmul.f32 1.442695, %v2550_v60 }
 0x9f4   : > { %5003 = vpow2.f32 %v2551_v61 }
 0x9f7   : > { %v2658_v62 = vpop.xlane.xlu0 %2657 }
 0x9f8   : > { %v2659_v63 = vsub.f32 %v2650_v43, %v2658_v62 }
 0x9fa   : > { %v2660_v10 = vmul.f32 1.442695, %v2659_v63 }
 0x9fc   : > { %5005 = vpow2.f32 %v2660_v10 }
 0x9fe   : > { %v5004_v0 = vpop.eup %5003 }
 0x9ff   : > { %v2766_v2 = vpop.xlane.xlu0 %2765  ;;  %v2553_v3 = vsel %vm1569_vm2, %v5004_v0, 0.0 }
 0xa00   : > { %v2767_v4 = vsub.f32 %v2758_v48, %v2766_v2  ;;  %2554 = vadd.xlane.f32.xlu0 %v2553_v3 }
 0xa02   : > { %v2768_v5 = vmul.f32 1.442695, %v2767_v4 }
 0xa04   : > { %5007 = vpow2.f32 %v2768_v5 }
 0xa06   : > { %v5006_v6 = vpop.eup %5005 }
 0xa07   : > { %v2662_v7 = vsel %vm1569_vm2, %v5006_v6, 0.0 }
 0xa08   : > { %2663 = vadd.xlane.f32.xlu1 %v2662_v7 }
 0xa0e   : > { %v5008_v9 = vpop.eup %5007 }
 0xa0f   : > { %v2770_v11 = vsel %vm1569_vm2, %v5008_v9, 0.0 }
 0xa10   : > { %2771 = vadd.xlane.f32.xlu0 %v2770_v11 }
 0xa19   : > { %2776 = vrot.lane.b32.xlu1 %v2393_v36, %s5999_s8  ;;  %s6005_s8 = smov 8  }
 0xa1a   : > { %v2448_v12 = vpop.xlane.xlu1 %2447 }
 0xa1b   : > { %5009 = vrcp.f32 %v2448_v12 }
 0xa1e   : > { %v2561_v16 = vpop.permute.xlu1 %2560 }
 0xa25   : > { %v5010_v13 = vpop.eup %5009 }
 0xa26   : > { %v2450_v14 = vmul.f32 %v5010_v13, %v5002_v57  ;;  %2668 = vrot.lane.b32.xlu0 %v2393_v36, %s6060_s3  ;;  %v4319_v57 = vld [vmem:[%s6065_s9] ss:$0 sm:$0xff]  ;;  %s6068_s9 = sld [smem:[#allocation24_spill]] }
 0xa28   : > { %v2451_v15 = vpack.c.bf16 %v2450_v14, %v2450_v14 }
 0xa2a   : > { %4643 = vmatmul.mubr.msk.bf16.vlgmr.msra.gmra.mrb[32].mxu1 %vm1569_vm2, %v2451_v15 }
 0xa2b   : > { %4653 = vmatpush3.bf16.msra.mxu1 %v2561_v16  ;;  %4654 = vmatprep.mubr.msk.bf16.mxu1 %vm5198_vm0, %v5197_v1 }
 0xa2c   : > { %4664 = vmatprep.subr.bf16.mxu1 %v5197_v1 }
 0xa8d   : > { %v2555_v17 = vpop.xlane.xlu0 %2554 }
 0xa8e   : > { %5011 = vrcp.f32 %v2555_v17 }
 0xa95   : > { %v2664_v18 = vpop.xlane.xlu1 %2663 }
 0xa96   : > { %5013 = vrcp.f32 %v2664_v18 }
 0xa98   : > { %v5012_v19 = vpop.eup %5011 }
 0xa99   : > { %v2557_v20 = vmul.f32 %v5012_v19, %v5004_v0  ;;  %v2777_v27 = vpop.permute.xlu1 %2776 }
 0xa9b   : > { %v2558_v21 = vpack.c.bf16 %v2557_v20, %v2557_v20 }
 0xa9d   : > { %4655 = vmatmul.mubr.msk.bf16.vlgmr.msra.gmra.mrb[36].mxu1 %vm1569_vm2, %v2558_v21  ;;  %v2772_v22 = vpop.xlane.xlu0 %2771  ;;  %v4323_v21 = vld [vmem:[%s6068_s9] ss:$0 sm:$0xff]  ;;  %s6075_s9 = sld [smem:[#allocation30_spill]] }
 0xa9e   : > { %5015 = vrcp.f32 %v2772_v22  ;;  %4666 = vmatprep.mubr.msk.bf16.mxu1 %vm5198_vm0, %v5197_v1 }
 0xaa0   : > { %v5014_v23 = vpop.eup %5013 }
 0xaa1   : > { %v2666_v24 = vmul.f32 %v5014_v23, %v5006_v6  ;;  %v2669_v25 = vpop.permute.xlu0 %2668  ;;  %v4324_v23 = vld [vmem:[%s6069_s5] ss:$0 sm:$0xff]  ;;  %s6072_s5 = sld [smem:[#allocation32_spill]] }
 0xaa2   : > { %4665 = vmatpush3.bf16.msra.mxu1 %v2669_v25 }
 0xaa3   : > { %v2667_v26 = vpack.c.bf16 %v2666_v24, %v2666_v24  ;;  %4676 = vmatprep.subr.bf16.mxu1 %v5197_v1 }
 0xaa5   : > { %4667 = vmatmul.mubr.msk.bf16.vlgmr.msra.gmra.mrb[40].mxu1 %vm1569_vm2, %v2667_v26 }
 0xaa6   : > { %4677 = vmatpush3.bf16.msra.mxu1 %v2777_v27  ;;  %4678 = vmatprep.mubr.msk.bf16.mxu1 %vm5198_vm0, %v5197_v1 }
 0xaa7   : > { %4690 = vmatprep.subr.bf16.mxu1 %v5197_v1 }
 0xaa8   : > { %v5016_v28 = vpop.eup %5015 }
 0xaa9   : > { %v2774_v29 = vmul.f32 %v5016_v28, %v5008_v9 }
 0xaab   : > { %v2775_v30 = vpack.c.bf16 %v2774_v29, %v2774_v29 }
 0xaad   : > { %4679 = vmatmul.mubr.msk.bf16.vlgmr.msra.gmra.mrb[44].mxu1 %vm1569_vm2, %v2775_v30 }
 0xaae   : > { %4698 = vmatprep.mubr.msk.bf16.mxu1 %vm5198_vm0, %v5197_v1 }
 0xafd   : > { %v2489_v31 = vpop.f32.mrb[32].mxu1 }
 0xafe   : > { %v4644_v8 = vpop.f32.mrb[33].mxu1 }
 0xaff   : > { %v2492_v32 = vpop.f32.mrb[34].mxu1 }
 0xb00   : > { %v4645_v33 = vpop.f32.mrb[35].mxu1 }
 0xb70   : > { %v2600_v35 = vpop.f32.mrb[36].mxu1 }
 0xb71   : > { %2823 = vrot.lane.b32.xlu1 %v2600_v35, %s6005_s8  ;;  %v4656_v36 = vpop.f32.mrb[37].mxu1  ;;  %s6067_s8 = sld [smem:[#allocation28_spill]] }
 0xb72   : > { %v2603_v37 = vpop.f32.mrb[38].mxu1  ;;  %v4331_v36 = vld [vmem:[%s6071_s13] ss:$0 sm:$0xff]  ;;  %s6074_s13 = sld [smem:[#allocation34_spill]] }
 0xb73   : > { %v4657_v38 = vpop.f32.mrb[39].mxu1 }
 0xb77   : > { %v4961_v11 = vld [vmem:[%s6067_s8] sm:$0xff]   ;;  %v4962_v12 = vld [vmem:[%s6067_s8 + $0x8] sm:$0xff]   ;;  %v4963_v13 = vld [vmem:[%s6067_s8 + $0x10] sm:$0xff]  }
 0xb78   : > { %v2708_v41 = vpop.f32.mrb[40].mxu1  ;;  %v4964_v14 = vld [vmem:[%s6067_s8 + $0x18] sm:$0xff]   ;;  %v4965_v15 = vld [vmem:[%s6067_s8 + $0x20] sm:$0xff]   ;;  %v4966_v16 = vld [vmem:[%s6067_s8 + $0x28] sm:$0xff]  }
 0xb79   : > { %2827 = vrot.lane.b32.xlu0 %v2708_v41, %s6064_s2  ;;  %v4668_v42 = vpop.f32.mrb[41].mxu1  ;;  %v4967_v27 = vld [vmem:[%s6067_s8 + $0x30] sm:$0xff]   ;;  %v4968_v28 = vld [vmem:[%s6067_s8 + $0x38] sm:$0xff]   ;;  %s5810_s8 = sand.u32 1, %s5146_s10  }
 0xb7a   : > { %v2711_v43 = vpop.f32.mrb[42].mxu1 }
 0xb7b   : > { %v4669_v44 = vpop.f32.mrb[43].mxu1 }
 0xb80   : > { %v2816_v45 = vpop.f32.mrb[44].mxu1 }
 0xb81   : > { %2831 = vrot.lane.b32.xlu1 %v2816_v45, %s6004_s12  ;;  %v4680_v46 = vpop.f32.mrb[45].mxu1  ;;  %s6066_s12 = sld [smem:[#allocation26_spill]]  ;;  %v4969_v45 = vld [vmem:[%s6072_s5] sm:$0xff]  }
 0xb82   : > { %v2819_v47 = vpop.f32.mrb[46].mxu1  ;;  %v4970_v46 = vld [vmem:[%s6072_s5 + $0x8] sm:$0xff]  }
 0xb83   : > { %v4681_v48 = vpop.f32.mrb[47].mxu1 }
 0xb87   : > { %v4957_v6 = vld [vmem:[%s6066_s12] sm:$0xff]   ;;  %v4958_v7 = vld [vmem:[%s6066_s12 + $0x8] sm:$0xff]   ;;  %v4960_v9 = vld [vmem:[%s6066_s12 + $0x18] sm:$0xff]  }
 0xb88   : > { %4691 = vmatpush3.bf16.msra.mxu1 %v4957_v6 }
 0xb89   : > { %4692 = vmatprep.subr.bf16.mxu1 %v5197_v1 }
 0xb8c   : > { %4693 = vmatpush3.bf16.msra.mxu1 %v4958_v7 }
 0xb8d   : > { %4694 = vmatprep.subr.bf16.mxu1 %v5197_v1 }
 0xbe3   : > { %v2824_v49 = vpop.permute.xlu1 %2823 }
 0xbe4   : > { %v2834_v51 = vsel %vm1616_vm4, %v2489_v31, %v2824_v49 }
 0xbeb   : > { %v2828_v50 = vpop.permute.xlu0 %2827 }
 0xbec   : > { %v2835_v52 = vsel %vm1569_vm2, %v2834_v51, %v2828_v50 }
 0xbf3   : > { %v2832_v54 = vpop.permute.xlu1 %2831 }
 0xbf4   : > { %v2837_v55 = vsel %vm2836_vm7, %v2835_v52, %v2832_v54  ;;  %v4971_v52 = vld [vmem:[%s6072_s5 + $0x10] sm:$0xff]   ;;  %v4972_v54 = vld [vmem:[%s6072_s5 + $0x18] sm:$0xff]   ;;  %s6076_s5 = sld [smem:[#allocation31_spill]] }
 0xbf5   : > { %v2838_v56 = vpack.c.bf16 %v2837_v55, %v2837_v55 }
 0xbf7   : > { %4687 = vmatmul.mubr.msk.bf16.vlgmr.msra.gmra.mrb[44].mxu0 %vm2022_vm5, %v2838_v56  ;;  %v4974_v56 = vld [vmem:[%s6074_s13] sm:$0xff]  }
 0xbf8   : > { %4718 = vmatprep.mubr.msk.bf16.mxu0 %vm5198_vm0, %v5197_v1  ;;  %4703 = vmatpush3.bf16.msra.mxu0 %v4961_v11 }
 0xbf9   : > { %4704 = vmatprep.subr.bf16.mxu0 %v5197_v1 }
 0xbfc   : > { %4705 = vmatpush3.bf16.msra.mxu0 %v4962_v12 }
 0xbfd   : > { %4706 = vmatprep.subr.bf16.mxu0 %v5197_v1 }
 0xc00   : > { %4707 = vmatpush3.bf16.msra.mxu0 %v4963_v13 }
 0xc01   : > { %4708 = vmatprep.subr.bf16.mxu0 %v5197_v1 }
 0xc04   : > { %4709 = vmatpush3.bf16.msra.mxu0 %v4964_v14 }
 0xc05   : > { %4710 = vmatprep.subr.bf16.mxu0 %v5197_v1 }
 0xc08   : > { %4711 = vmatpush3.bf16.msra.mxu0 %v4965_v15 }
 0xc09   : > { %4712 = vmatprep.subr.bf16.mxu0 %v5197_v1 }
 0xc0c   : > { %4713 = vmatpush3.bf16.msra.mxu0 %v4966_v16 }
 0xc0d   : > { %4714 = vmatprep.subr.bf16.mxu0 %v5197_v1 }
 0xc10   : > { %4715 = vmatpush3.bf16.msra.mxu0 %v4967_v27 }
 0xc11   : > { %4716 = vmatprep.subr.bf16.mxu0 %v5197_v1 }
 0xc14   : > { %4717 = vmatpush3.bf16.msra.mxu0 %v4968_v28 }
 0xc15   : > { %4746 = vmatprep.subr.bf16.mxu0 %v5197_v1 }
 0xcca   : > { %v2894_v58 = vpop.f32.mrb[44].mxu0 }
 0xccb   : > { %v2895_v59 = vadd.f32 %v4319_v57, %v2894_v58  ;;  %v4688_v60 = vpop.f32.mrb[45].mxu0  ;;  %v4976_v58 = vld [vmem:[%s6074_s13 + $0x8] sm:$0xff]  }
 0xccc   : > { %v2897_v61 = vpop.f32.mrb[46].mxu0 }
 0xccd   : > { %v4689_v62 = vpop.f32.mrb[47].mxu0  ;;  %v2900_v63 = vadd.f32 %v2895_v59, %v5653_v53  ;;  %v4959_v53 = vld [vmem:[%s6066_s12 + $0x10] sm:$0xff]   ;;  %s6070_s12 = sld [smem:[#allocation27_spill]]  ;;  %v4980_v61 = vld [vmem:[%s6074_s13 + $0x18] sm:$0xff]  }
 0xcce   : > { %4695 = vmatpush3.bf16.msra.mxu1 %v4959_v53  ;;  %v5057_v53 = vld [vmem:[%s5499_s23] sm:$0xff]  ;;  %s6080_s23 = smov 120  }
 0xccf   : > { %v2903_v10 = vsel %vm1377_vm1, %v2900_v63, 0.0  ;;  %4696 = vmatprep.subr.bf16.mxu1 %v5197_v1 }
 0xcd0   : > { %2904 = vadd.xlane.f32.xlu0 %v2903_v10 }
 0xcd2   : > { %4697 = vmatpush3.bf16.msra.mxu1 %v4960_v9 }
 0xcd3   : > { %4722 = vmatprep.subr.bf16.mxu1 %v5197_v1  ;;  %v4325_v29 = vld [vmem:[%s6070_s12] ss:$0 sm:$0xff]  ;;  %s6073_s12 = sld [smem:[#allocation36_spill]] }
 0xcd9   : > { %v4973_v55 = vld [vmem:[%s6073_s12] sm:$0xff]   ;;  %v4975_v57 = vld [vmem:[%s6073_s12 + $0x8] sm:$0xff]   ;;  %v4977_v59 = vld [vmem:[%s6073_s12 + $0x10] sm:$0xff]  }
 0xcda   : > { %v4979_v60 = vld [vmem:[%s6073_s12 + $0x18] sm:$0xff]   ;;  %s6077_s12 = sld [smem:[#allocation33_spill]] }
 0xce0   : > { %v4342_v12 = vld [vmem:[%s6077_s12] ss:$0 sm:$0xff]  ;;  %s6084_s12 = smov 24  }
 0xd5d   : > { %v2905_v0 = vpop.xlane.xlu0 %2904 }
 0xd5e   : > { %v2906_v2 = vmul.f32 0.015625, %v2905_v0 }
 0xd60   : > { %v2907_v3 = vsub.f32 %v2900_v63, %v2906_v2  ;;  %v4340_v2 = vld [vmem:[%s6075_s9] ss:$0 sm:$0xff]  ;;  %s6079_s9 = sld [smem:[#allocation35_spill]] }
 0xd62   : > { %v2908_v4 = vmul.f32 %v2907_v3, %v2907_v3 }
 0xd64   : > { %v2909_v5 = vsel %vm1377_vm1, %v2908_v4, 0.0  ;;  %v4341_v4 = vld [vmem:[%s6076_s5] ss:$0 sm:$0xff]  ;;  %s6081_s5 = smov 104  }
 0xd65   : > { %2910 = vadd.xlane.f32.xlu1 %v2909_v5 }
 0xdf2   : > { %v2911_v17 = vpop.xlane.xlu1 %2910 }
 0xdf3   : > { %v2912_v18 = vmul.f32 0.015625, %v2911_v17 }
 0xdf5   : > { %v2913_v19 = vadd.f32 1e-06, %v2912_v18 }
 0xdf7   : > { %5017 = vrsqrt.f32 %v2913_v19 }
 0xe01   : > { %v5018_v20 = vpop.eup %5017 }
 0xe02   : > { %v2915_v22 = vmul.f32 %v5018_v20, %v2907_v3 }
 0xe04   : > { %v2922_v24 = vmul.f32 %v4323_v21, %v2915_v22  ;;  %v4354_v22 = vld [vmem:[%s6078_s17] ss:$0 sm:$0xff]  ;;  %s6082_s17 = sld [smem:[#allocation38_spill]] }
 0xe06   : > { %v2929_v25 = vadd.f32 %v4324_v23, %v2922_v24  ;;  %v4348_v24 = vld [vmem:[%s6079_s9] ss:$0 sm:$0xff] }
 0xe08   : > { %v2930_v26 = vpack.c.bf16 %v2929_v25, %v2929_v25 }
 0xe0a   : > { %4699 = vmatmul.mubr.msk.bf16.vlgmr.msra.gmra.mrb[48].mxu1 %vm1377_vm1, %v2930_v26 }
 0xe0b   : > { %4730 = vmatprep.mubr.msk.bf16.mxu1 %vm5198_vm0, %v5197_v1  ;;  %4723 = vmatpush3.bf16.msra.mxu1 %v4969_v45 }
 0xe0c   : > { %4724 = vmatprep.subr.bf16.mxu1 %v5197_v1 }
 0xe0f   : > { %4725 = vmatpush3.bf16.msra.mxu1 %v4970_v46 }
 0xe10   : > { %4726 = vmatprep.subr.bf16.mxu1 %v5197_v1 }
 0xe13   : > { %4727 = vmatpush3.bf16.msra.mxu1 %v4971_v52 }
 0xe14   : > { %4728 = vmatprep.subr.bf16.mxu1 %v5197_v1 }
 0xe17   : > { %4729 = vmatpush3.bf16.msra.mxu1 %v4972_v54 }
 0xe18   : > { %4734 = vmatprep.subr.bf16.mxu1 %v5197_v1 }
 0xe1a   : > { %4731 = vmatmul.mubr.msk.bf16.vlgmr.msra.gmra.mrb[52].mxu1 %vm1377_vm1, %v5637_v39  ;;  %v4978_v39 = vld [vmem:[%s6074_s13 + $0x10] sm:$0xff]   ;;  %s4251_s13 = sshll.u32 %s5810_s8, 3 }
 0xe1b   : > { %4742 = vmatprep.mubr.msk.bf16.mxu1 %vm5198_vm0, %v5197_v1  ;;  %4735 = vmatpush3.bf16.msra.mxu1 %v4974_v56  ;;  %s5816_s14 = scalar_lea.vmem [#allocation2], %s4251_s13  ;;  %s6085_s13 = sld [smem:[#allocation39_spill]] }
 0xe1c   : > { %4736 = vmatprep.subr.bf16.mxu1 %v5197_v1 }
 0xe1f   : > { %4737 = vmatpush3.bf16.msra.mxu1 %v4976_v58 }
 0xe20   : > { %4738 = vmatprep.subr.bf16.mxu1 %v5197_v1 }
 0xe23   : > { %4739 = vmatpush3.bf16.msra.mxu1 %v4978_v39 }
 0xe24   : > { %4740 = vmatprep.subr.bf16.mxu1 %v5197_v1 }
 0xe27   : > { %4741 = vmatpush3.bf16.msra.mxu1 %v4980_v61 }
 0xe28   : > { %4758 = vmatprep.subr.bf16.mxu1 %v5197_v1 }
 0xedd   : > { %v3007_v30 = vpop.f32.mrb[48].mxu1 }
 0xede   : > { %v3008_v31 = vadd.f32 %v4325_v29, %v3007_v30  ;;  %v4700_v8 = vpop.f32.mrb[49].mxu1 }
 0xedf   : > { %v3010_v32 = vpop.f32.mrb[50].mxu1 }
 0xee0   : > { %v3013_v33 = vmax.f32 %v3008_v31, 0.0  ;;  %v4701_v34 = vpop.f32.mrb[51].mxu1 }
 0xee2   : > { %v3014_v35 = vpack.c.bf16 %v3013_v33, %v3013_v33 }
 0xee4   : > { %4719 = vmatmul.mubr.bf16.vlgmr.msra.gmra.mrb[48].mxu0 %v3014_v35 }
 0xee5   : > { %4754 = vmatprep.mubr.msk.bf16.mxu0 %vm5198_vm0, %v5197_v1  ;;  %4747 = vmatpush3.bf16.msra.mxu0 %v4973_v55 }
 0xee6   : > { %4748 = vmatprep.subr.bf16.mxu0 %v5197_v1 }
 0xee9   : > { %4749 = vmatpush3.bf16.msra.mxu0 %v4975_v57 }
 0xeea   : > { %4750 = vmatprep.subr.bf16.mxu0 %v5197_v1 }
 0xeed   : > { %4751 = vmatpush3.bf16.msra.mxu0 %v4977_v59  ;;  %v3253_v13 = vpop.f32.mrb[52].mxu1 }
 0xeee   : > { %4752 = vmatprep.subr.bf16.mxu0 %v5197_v1  ;;  %v3254_v14 = vadd.f32 %v4342_v12, %v3253_v13  ;;  %v4732_v15 = vpop.f32.mrb[53].mxu1 }
 0xeef   : > { %v3256_v16 = vpop.f32.mrb[54].mxu1 }
 0xef0   : > { %v3408_v17 = vmul.f32 0.35355338, %v3254_v14  ;;  %v3257_v18 = vadd.f32 %v4342_v12, %v3256_v16  ;;  %v4733_v19 = vpop.f32.mrb[55].mxu1 }
 0xef1   : > { %4753 = vmatpush3.bf16.msra.mxu0 %v4979_v60 }
 0xef2   : > { %4764 = vmatprep.subr.bf16.mxu0 %v5197_v1  ;;  %v3409_v20 = vmul.f32 0.35355338, %v3257_v18 }
 0xef4   : > { %v3410_v21 = vpack.c.bf16 %v3409_v20, %v3408_v17 }
 0xfb7   : > { %v3120_v37 = vpop.f32.mrb[48].mxu0 }
 0xfb8   : > { %v3121_v38 = vadd.f32 %v4331_v36, %v3120_v37  ;;  %v4720_v40 = vpop.f32.mrb[49].mxu0 }
 0xfb9   : > { %v3123_v41 = vpop.f32.mrb[50].mxu0 }
 0xfba   : > { %v4721_v42 = vpop.f32.mrb[51].mxu0  ;;  %v3126_v43 = vadd.f32 %v3121_v38, %v2929_v25 }
 0xfbc   : > { %v3129_v44 = vsel %vm1377_vm1, %v3126_v43, 0.0 }
 0xfbd   : > { %3130 = vadd.xlane.f32.xlu0 %v3129_v44 }
0x104a   : > { %v3131_v47 = vpop.xlane.xlu0 %3130 }
0x104b   : > { %v3132_v48 = vmul.f32 0.015625, %v3131_v47 }
0x104d   : > { %v3133_v49 = vsub.f32 %v3126_v43, %v3132_v48 }
0x104f   : > { %v3134_v50 = vmul.f32 %v3133_v49, %v3133_v49 }
0x1051   : > { %v3135_v51 = vsel %vm1377_vm1, %v3134_v50, 0.0 }
0x1052   : > { %3136 = vadd.xlane.f32.xlu0 %v3135_v51 }
0x1068   : > { %3531 = vrot.lane.b32.xlu0 %v3410_v21, %s6080_s23 }
0x10df   : > { %v3137_v62 = vpop.xlane.xlu0 %3136 }
0x10e0   : > { %v3138_v63 = vmul.f32 0.015625, %v3137_v62 }
0x10e2   : > { %v3139_v10 = vadd.f32 1e-06, %v3138_v63 }
0x10e3   : > { %v3532_v41 = vpop.permute.xlu0 %3531 }
0x10e4   : > { %5019 = vrsqrt.f32 %v3139_v10 }
0x10ee   : > { %v5020_v0 = vpop.eup %5019 }
0x10ef   : > { %v3141_v3 = vmul.f32 %v5020_v0, %v3133_v49 }
0x10f1   : > { %v3148_v5 = vmul.f32 %v4340_v2, %v3141_v3 }
0x10f3   : > { %v3155_v6 = vadd.f32 %v4341_v4, %v3148_v5 }
0x10f5   : > { %v3334_v7 = vpack.c.bf16 %v3155_v6, %v3155_v6  ;;  %v3156_v9 = vadd.f32 %v5057_v53, %v3155_v6  ;;  %4041 = vst.msk [vmem:[%s5816_s14] sm:$0xff] %vm1377_vm1, %v3155_v6 }
0x10f7   : > { %4755 = vmatmul.mubr.msk.bf16.vlgmr.msra.gmra.mrb[52].mxu0 %vm1377_vm1, %v3334_v7  ;;  %v3260_v11 = vpack.c.bf16 %v3156_v9, %v3156_v9 }
0x10f8   : > { %4766 = vmatprep.mubr.msk.bf16.mxu0 %vm5198_vm0, %v5197_v1 }
0x10f9   : > { %4743 = vmatmul.mubr.msk.bf16.vlgmr.msra.gmra.mrb[56].mxu1 %vm1377_vm1, %v3260_v11 }
0x10fa   : > { %4760 = vmatprep.mubr.msk.bf16.mxu1 %vm5198_vm0, %v5197_v1 }
0x11ca   : > { %v3402_v23 = vpop.f32.mrb[52].mxu0 }
0x11cb   : > { %v3403_v25 = vadd.f32 %v4354_v22, %v3402_v23  ;;  %v4756_v26 = vpop.f32.mrb[53].mxu0 }
0x11cc   : > { %v3328_v27 = vpop.f32.mrb[56].mxu1  ;;  %v3405_v28 = vpop.f32.mrb[54].mxu0 }
0x11cd   : > { %v5830_v29 = vpack.c.bf16 %v3403_v25, %v3403_v25  ;;  %v3329_v30 = vadd.f32 %v4348_v24, %v3328_v27  ;;  %v4744_v31 = vpop.f32.mrb[57].mxu1  ;;  %v4757_v8 = vpop.f32.mrb[55].mxu0 }
0x11ce   : > { %v3331_v32 = vpop.f32.mrb[58].mxu1 }
0x11cf   : > { %v3411_v33 = vpack.c.bf16 %v3329_v30, %v3329_v30  ;;  %v4745_v34 = vpop.f32.mrb[59].mxu1  ;;  %v3487_v35 = vsel %vm1632_vm3, %v5830_v29, 0 }
0x11d0   : > { %4765 = vmatpush3.bf16.msra.mxu0 %v3487_v35 }
0x11d1   : > { %3781 = vrot.lane.b32.xlu0 %v3411_v33, %s6081_s5  ;;  %3534 = vrot.lane.b32.xlu1 %v3411_v33, %s6080_s23  ;;  %v3417_v36 = vsel %vm1616_vm4, %v3411_v33, 0 }
0x11d2   : > { %4759 = vmatpush3.bf16.xpose.msra.mxu1 %v3417_v36  ;;  %4776 = vmatprep.subr.bf16.mxu0 %v5197_v1 }
0x11d3   : > { %4770 = vmatprep.subr.bf16.mxu1 %v5197_v1 }
0x11d5   : > { %3658 = vrot.lane.b32.xlu1 %v3411_v33, %s6060_s3 }
0x11d9   : > { %3656 = vrot.lane.b32.xlu1 %v3410_v21, %s6060_s3  ;;  %4761 = vmatmul.mubr.msk.bf16.vlgmr.msra.gmra.mrb[60].mxu1 %vm1616_vm4, %v3410_v21 }
0x11da   : > { %4772 = vmatprep.mubr.msk.bf16.mxu1 %vm5198_vm0, %v5197_v1 }
0x11dd   : > { %3779 = vrot.lane.b32.xlu1 %v3410_v21, %s6081_s5 }
0x1243   : > { %v3535_v37 = vpop.permute.xlu1 %3534  ;;  %v3782_v43 = vpop.permute.xlu0 %3781 }
0x1244   : > { %v3540_v38 = vsel %vm1616_vm4, %v3535_v37, 0  ;;  %v3787_v45 = vsel %vm1616_vm4, %v3782_v43, 0 }
0x1245   : > { %4771 = vmatpush3.bf16.xpose.msra.mxu1 %v3540_v38 }
0x1246   : > { %4782 = vmatprep.subr.bf16.mxu1 %v5197_v1 }
0x1247   : > { %v3659_v40 = vpop.permute.xlu1 %3658 }
0x1248   : > { %v3664_v42 = vsel %vm1616_vm4, %v3659_v40, 0 }
0x124b   : > { %v3657_v44 = vpop.permute.xlu1 %3656 }
0x124c   : > { %4773 = vmatmul.mubr.msk.bf16.vlgmr.msra.gmra.mrb[64].mxu1 %vm1616_vm4, %v3532_v41 }
0x124d   : > { %4783 = vmatpush3.bf16.xpose.msra.mxu1 %v3664_v42  ;;  %4784 = vmatprep.mubr.msk.bf16.mxu1 %vm5198_vm0, %v5197_v1 }
0x124e   : > { %4794 = vmatprep.subr.bf16.mxu1 %v5197_v1 }
0x124f   : > { %v3780_v46 = vpop.permute.xlu1 %3779 }
0x1254   : > { %4785 = vmatmul.mubr.msk.bf16.vlgmr.msra.gmra.mrb[68].mxu1 %vm1616_vm4, %v3657_v44 }
0x1255   : > { %4795 = vmatpush3.bf16.xpose.msra.mxu1 %v3787_v45  ;;  %4796 = vmatprep.mubr.msk.bf16.mxu1 %vm5198_vm0, %v5197_v1 }
0x1256   : > { %4806 = vmatprep.subr.bf16.mxu1 %v5197_v1 }
0x125c   : > { %4797 = vmatmul.mubr.msk.bf16.vlgmr.msra.gmra.mrb[72].mxu1 %vm1616_vm4, %v3780_v46 }
0x125d   : > { %4810 = vmatprep.mubr.msk.bf16.mxu1 %vm5198_vm0, %v5197_v1 }
0x12ac   : > { %v3453_v47 = vpop.f32.mrb[60].mxu1 }
0x12ad   : > { %v4762_v48 = vpop.f32.mrb[61].mxu1  ;;  %v3460_v49 = vsel %vm1616_vm4, %v3453_v47, -inf }
0x12ae   : > { %3461 = vmax.xlane.f32.xlu0 %v3460_v49  ;;  %v3456_v50 = vpop.f32.mrb[62].mxu1 }
0x12af   : > { %v4763_v51 = vpop.f32.mrb[63].mxu1  ;;  %v3463_v52 = vsel %vm1616_vm4, %v3456_v50, -inf }
0x12b0   : > { %3464 = vmax.xlane.f32.xlu1 %v3463_v52 }
0x131f   : > { %v3576_v54 = vpop.f32.mrb[64].mxu1 }
0x1320   : > { %v4774_v55 = vpop.f32.mrb[65].mxu1  ;;  %v3583_v56 = vsel %vm1616_vm4, %v3576_v54, -inf }
0x1321   : > { %3584 = vmax.xlane.f32.xlu0 %v3583_v56  ;;  %v3579_v57 = vpop.f32.mrb[66].mxu1 }
0x1322   : > { %v4775_v58 = vpop.f32.mrb[67].mxu1  ;;  %v3586_v59 = vsel %vm1616_vm4, %v3579_v57, -inf }
0x1325   : > { %3587 = vmax.xlane.f32.xlu0 %v3586_v59 }
0x1327   : > { %v3700_v39 = vpop.f32.mrb[68].mxu1 }
0x1328   : > { %v4786_v60 = vpop.f32.mrb[69].mxu1  ;;  %v3707_v61 = vsel %vm1616_vm4, %v3700_v39, -inf }
0x1329   : > { %3708 = vmax.xlane.f32.xlu1 %v3707_v61  ;;  %v3703_v62 = vpop.f32.mrb[70].mxu1 }
0x132a   : > { %v4787_v63 = vpop.f32.mrb[71].mxu1  ;;  %v3710_v10 = vsel %vm1616_vm4, %v3703_v62, -inf }
0x132b   : > { %3711 = vmax.xlane.f32.xlu0 %v3710_v10 }
0x132f   : > { %v3823_v0 = vpop.f32.mrb[72].mxu1 }
0x1330   : > { %v4798_v2 = vpop.f32.mrb[73].mxu1  ;;  %v3830_v3 = vsel %vm1616_vm4, %v3823_v0, -inf }
0x1331   : > { %3831 = vmax.xlane.f32.xlu1 %v3830_v3  ;;  %v3826_v4 = vpop.f32.mrb[74].mxu1 }
0x1332   : > { %v4799_v5 = vpop.f32.mrb[75].mxu1  ;;  %v3833_v6 = vsel %vm1616_vm4, %v3826_v4, -inf }
0x1333   : > { %3834 = vmax.xlane.f32.xlu0 %v3833_v6 }
0x133b   : > { %v3462_v7 = vpop.xlane.xlu0 %3461 }
0x133c   : > { %v3466_v53 = vsub.f32 %v3453_v47, %v3462_v7 }
0x133d   : > { %v3465_v9 = vpop.xlane.xlu1 %3464 }
0x133e   : > { %v3468_v11 = vmul.f32 1.442695, %v3466_v53  ;;  %v3467_v12 = vsub.f32 %v3456_v50, %v3465_v9 }
0x1340   : > { %5021 = vpow2.f32 %v3468_v11  ;;  %v3470_v13 = vmul.f32 1.442695, %v3467_v12 }
0x1342   : > { %5023 = vpow2.f32 %v3470_v13 }
0x134a   : > { %v5022_v14 = vpop.eup %5021 }
0x134b   : > { %v3472_v15 = vsel %vm1616_vm4, %v5022_v14, 0.0 }
0x134c   : > { %v5024_v16 = vpop.eup %5023  ;;  %3473 = vadd.xlane.f32.xlu1 %v3472_v15 }
0x134d   : > { %v3475_v17 = vsel %vm1616_vm4, %v5024_v16, 0.0 }
0x134e   : > { %3476 = vadd.xlane.f32.xlu0 %v3475_v17 }
0x135d   : > { %3607 = vrot.lane.b32.xlu1 %v5830_v29, %s6080_s23  ;;  %s4045_s23 = scalar_lea.sflag [#allocation3], %s5810_s8 }
0x13ae   : > { %v3585_v18 = vpop.xlane.xlu0 %3584 }
0x13af   : > { %v3589_v19 = vsub.f32 %v3576_v54, %v3585_v18 }
0x13b1   : > { %v3591_v20 = vmul.f32 1.442695, %v3589_v19 }
0x13b2   : > { %v3588_v21 = vpop.xlane.xlu0 %3587 }
0x13b3   : > { %5025 = vpow2.f32 %v3591_v20  ;;  %v3590_v22 = vsub.f32 %v3579_v57, %v3588_v21 }
0x13b5   : > { %v3593_v23 = vmul.f32 1.442695, %v3590_v22 }
0x13b6   : > { %v3709_v24 = vpop.xlane.xlu1 %3708 }
0x13b7   : > { %5027 = vpow2.f32 %v3593_v23  ;;  %v3713_v25 = vsub.f32 %v3700_v39, %v3709_v24 }
0x13b8   : > { %v3712_v26 = vpop.xlane.xlu0 %3711 }
0x13b9   : > { %v3715_v27 = vmul.f32 1.442695, %v3713_v25  ;;  %v3714_v28 = vsub.f32 %v3703_v62, %v3712_v26  ;;  %v4981_v26 = vld [vmem:[%s6082_s17] sm:$0xff]  }
0x13ba   : > { %4807 = vmatpush3.bf16.msra.mxu1 %v4981_v26 }
0x13bb   : > { %5029 = vpow2.f32 %v3715_v27  ;;  %v3717_v30 = vmul.f32 1.442695, %v3714_v28  ;;  %4808 = vmatprep.subr.bf16.mxu1 %v5197_v1 }
0x13bd   : > { %v5026_v31 = vpop.eup %5025  ;;  %5031 = vpow2.f32 %v3717_v30 }
0x13be   : > { %v3832_v8 = vpop.xlane.xlu1 %3831  ;;  %v3595_v32 = vsel %vm1616_vm4, %v5026_v31, 0.0 }
0x13bf   : > { %v3836_v33 = vsub.f32 %v3823_v0, %v3832_v8  ;;  %3596 = vadd.xlane.f32.xlu1 %v3595_v32  ;;  %v4982_v32 = vld [vmem:[%s6082_s17 + $0x8] sm:$0xff]  }
0x13c0   : > { %v3835_v34 = vpop.xlane.xlu0 %3834  ;;  %4809 = vmatpush3.bf16.msra.mxu1 %v4982_v32 }
0x13c1   : > { %v5028_v35 = vpop.eup %5027  ;;  %v3838_v36 = vmul.f32 1.442695, %v3836_v33  ;;  %v3837_v37 = vsub.f32 %v3826_v4, %v3835_v34 }
0x13c2   : > { %v3598_v38 = vsel %vm1616_vm4, %v5028_v35, 0.0 }
0x13c3   : > { %5033 = vpow2.f32 %v3838_v36  ;;  %v3840_v40 = vmul.f32 1.442695, %v3837_v37  ;;  %3599 = vadd.xlane.f32.xlu0 %v3598_v38 }
0x13c5   : > { %v5030_v41 = vpop.eup %5029  ;;  %5035 = vpow2.f32 %v3840_v40 }
0x13c6   : > { %v3719_v42 = vsel %vm1616_vm4, %v5030_v41, 0.0 }
0x13c7   : > { %v5032_v43 = vpop.eup %5031  ;;  %3720 = vadd.xlane.f32.xlu1 %v3719_v42 }
0x13c8   : > { %v3722_v44 = vsel %vm1616_vm4, %v5032_v43, 0.0 }
0x13c9   : > { %3723 = vadd.xlane.f32.xlu0 %v3722_v44 }
0x13cd   : > { %v5034_v45 = vpop.eup %5033 }
0x13ce   : > { %v3842_v46 = vsel %vm1616_vm4, %v5034_v45, 0.0 }
0x13cf   : > { %v5036_v47 = vpop.eup %5035  ;;  %3843 = vadd.xlane.f32.xlu1 %v3842_v46 }
0x13d0   : > { %v3845_v48 = vsel %vm1616_vm4, %v5036_v47, 0.0 }
0x13d1   : > { %3846 = vadd.xlane.f32.xlu0 %v3845_v48 }
0x13d9   : > { %v3474_v49 = vpop.xlane.xlu1 %3473 }
0x13da   : > { %5037 = vrcp.f32 %v3474_v49 }
0x13db   : > { %v3477_v50 = vpop.xlane.xlu0 %3476 }
0x13dc   : > { %5039 = vrcp.f32 %v3477_v50 }
0x13dd   : > { %v3608_v56 = vpop.permute.xlu1 %3607 }
0x13de   : > { %v3613_v58 = vsel %vm1632_vm3, %v3608_v56, 0 }
0x13e0   : > { %3853 = vrot.lane.b32.xlu1 %v5830_v29, %s6081_s5 }
0x13e4   : > { %v5038_v51 = vpop.eup %5037 }
0x13e5   : > { %v3480_v54 = vmul.f32 %v5038_v51, %v5022_v14 }
0x13e6   : > { %v5040_v52 = vpop.eup %5039 }
0x13e7   : > { %v3481_v55 = vmul.f32 %v5040_v52, %v5024_v16  ;;  %3730 = vrot.lane.b32.xlu0 %v5830_v29, %s6060_s3  ;;  %s6083_s3 = smov 8  }
0x13e9   : > { %v3482_v57 = vpack.c.bf16 %v3481_v55, %v3480_v54 }
0x13eb   : > { %4767 = vmatmul.mubr.msk.bf16.vlgmr.msra.gmra.mrb[56].mxu0 %vm1616_vm4, %v3482_v57  ;;  %v4368_v57 = vld [vmem:[%s6085_s13] ss:$0 sm:$0xff] }
0x13ec   : > { %4777 = vmatpush3.bf16.msra.mxu0 %v3613_v58  ;;  %4778 = vmatprep.mubr.msk.bf16.mxu0 %vm5198_vm0, %v5197_v1 }
0x13ed   : > { %4788 = vmatprep.subr.bf16.mxu0 %v5197_v1 }
0x144c   : > { %v3597_v59 = vpop.xlane.xlu1 %3596 }
0x144d   : > { %5041 = vrcp.f32 %v3597_v59 }
0x1450   : > { %v3600_v39 = vpop.xlane.xlu0 %3599 }
0x1451   : > { %5043 = vrcp.f32 %v3600_v39 }
0x1454   : > { %v3721_v60 = vpop.xlane.xlu1 %3720 }
0x1455   : > { %5045 = vrcp.f32 %v3721_v60 }
0x1456   : > { %v3724_v61 = vpop.xlane.xlu0 %3723 }
0x1457   : > { %5047 = vrcp.f32 %v3724_v61  ;;  %v5042_v29 = vpop.eup %5041 }
0x1458   : > { %v3603_v63 = vmul.f32 %v5042_v29, %v5026_v31 }
0x145b   : > { %v5044_v62 = vpop.eup %5043 }
0x145c   : > { %v3604_v10 = vmul.f32 %v5044_v62, %v5028_v35  ;;  %v3844_v0 = vpop.xlane.xlu1 %3843  ;;  %v5058_v62 = vld [vmem:[%s5623_s16] sm:$0xff] }
0x145d   : > { %5049 = vrcp.f32 %v3844_v0  ;;  %v5059_v0 = vld [vmem:[%s5623_s16 + $0x8] sm:$0xff]  ;;  %s4376_s16 = sshll.u32 %s5448_s0, 7 }
0x145e   : > { %v3847_v2 = vpop.xlane.xlu0 %3846  ;;  %v3605_v3 = vpack.c.bf16 %v3604_v10, %v3603_v63  ;;  %s5920_s9 = scalar_lea.hbm %s5420_s30, %s4376_s16 }
0x145f   : > { %5051 = vrcp.f32 %v3847_v2  ;;  %v5046_v4 = vpop.eup %5045 }
0x1460   : > { %4779 = vmatmul.mubr.msk.bf16.vlgmr.msra.gmra.mrb[60].mxu0 %vm1616_vm4, %v3605_v3  ;;  %v3727_v9 = vmul.f32 %v5046_v4, %v5030_v41  ;;  %v3854_v11 = vpop.permute.xlu1 %3853 }
0x1461   : > { %v5048_v5 = vpop.eup %5047  ;;  %4790 = vmatprep.mubr.msk.bf16.mxu0 %vm5198_vm0, %v5197_v1  ;;  %v3859_v14 = vsel %vm1632_vm3, %v3854_v11, 0 }
0x1462   : > { %v3728_v6 = vmul.f32 %v5048_v5, %v5032_v43  ;;  %v3731_v7 = vpop.permute.xlu0 %3730 }
0x1463   : > { %v3736_v53 = vsel %vm1632_vm3, %v3731_v7, 0 }
0x1464   : > { %4789 = vmatpush3.bf16.msra.mxu0 %v3736_v53  ;;  %v3729_v12 = vpack.c.bf16 %v3728_v6, %v3727_v9 }
0x1465   : > { %4800 = vmatprep.subr.bf16.mxu0 %v5197_v1 }
0x1467   : > { %v5050_v13 = vpop.eup %5049 }
0x1468   : > { %4791 = vmatmul.mubr.msk.bf16.vlgmr.msra.gmra.mrb[64].mxu0 %vm1616_vm4, %v3729_v12  ;;  %v3850_v17 = vmul.f32 %v5050_v13, %v5034_v45 }
0x1469   : > { %v5052_v15 = vpop.eup %5051  ;;  %4801 = vmatpush3.bf16.msra.mxu0 %v3859_v14  ;;  %4802 = vmatprep.mubr.msk.bf16.mxu0 %vm5198_vm0, %v5197_v1 }
0x146a   : > { %v3851_v16 = vmul.f32 %v5052_v15, %v5036_v47 }
0x146c   : > { %v3852_v18 = vpack.c.bf16 %v3851_v16, %v3850_v17 }
0x1470   : > { %4803 = vmatmul.mubr.msk.bf16.vlgmr.msra.gmra.mrb[68].mxu0 %vm1616_vm4, %v3852_v18 }
0x14be   : > { %v3523_v19 = vpop.f32.mrb[56].mxu0 }
0x14bf   : > { %v4768_v20 = vpop.f32.mrb[57].mxu0 }
0x14c0   : > { %v3526_v21 = vpop.f32.mrb[58].mxu0 }
0x14c1   : > { %v4769_v22 = vpop.f32.mrb[59].mxu0 }
0x1533   : > { %v3649_v23 = vpop.f32.mrb[60].mxu0 }
0x1534   : > { %v4780_v24 = vpop.f32.mrb[61].mxu0 }
0x1535   : > { %v3652_v25 = vpop.f32.mrb[62].mxu0 }
0x1536   : > { %v4912_v27 = vpack.i.bf16 %v3652_v25, %v3649_v23  ;;  %v4781_v28 = vpop.f32.mrb[63].mxu0 }
0x1538   : > { %4913 = vrot.lane.b32.xlu1 %v4912_v27, %s6083_s3 }
0x153b   : > { %v3772_v30 = vpop.f32.mrb[64].mxu0 }
0x153c   : > { %v4792_v31 = vpop.f32.mrb[65].mxu0 }
0x153d   : > { %v3775_v8 = vpop.f32.mrb[66].mxu0 }
0x153e   : > { %v4917_v33 = vpack.i.bf16 %v3775_v8, %v3772_v30  ;;  %v4793_v34 = vpop.f32.mrb[67].mxu0 }
0x1540   : > { %4918 = vrot.lane.b32.xlu0 %v4917_v33, %s6064_s2  ;;  %s4063_s2 = sshll.u32 %s5816_s14, 4  ;;  %s4064_s2 = int_to_ptr.vmem [resolvable:$true] %s4063_s2 }
0x1541   : > { %s5060_s5 = scalar_lea.vmem %s4064_s2, 128 }
0x1542   : > { %p5061_p11 = scmp.ne.s32.totalorder %s4064_s2, %s5060_s5 }
0x1543   : > { %v3895_v35 = vpop.f32.mrb[68].mxu0 }
0x1544   : > { %v4804_v36 = vpop.f32.mrb[69].mxu0  ;;  %p5062_p12 = pnand %p5061_p11, %p5465_p5 }
0x1545   : > { %v3898_v37 = vpop.f32.mrb[70].mxu0 }
0x1546   : > { %v4922_v38 = vpack.i.bf16 %v3898_v37, %v3895_v35  ;;  %v4805_v40 = vpop.f32.mrb[71].mxu0  ;;  %p5063_p13 = pneg %p5062_p12 }
0x1548   : > { %4923 = vrot.lane.b32.xlu1 %v4922_v38, %s6084_s12  ;;  %s5209_s12 = smov [#allocation2]  }
0x1549   : > { %s5064_s13 = sshll.u32 %s5209_s12, 4  ;;  %s5065_s13 = int_to_ptr.vmem [resolvable:$false] %s5064_s13 }
0x154a   : > { %s5066_s17 = scalar_lea.vmem %s5065_s13, 256  ;;  %p5067_p0 = scmp.lt.s32.totalorder %s4064_s2, %s5065_s13 }
0x154b   : > { %p5068_p1 = scmp.lt.s32.totalorder %s5066_s17, %s5060_s5 }
0x154d   : > { %p5069_p2 = por %p5068_p1, %p5067_p0 }
0x154f   : > { %p5070_p3 = pnand %p5069_p2, %p5063_p13 }
0x15aa   : > { %v4914_v41 = vpop.permute.xlu1 %4913 }
0x15ab   : > { %v4916_v1 = vunpack.i.h.bf16 %v4914_v41  ;;  %v4915_v43 = vunpack.i.l.bf16 %v4914_v41 }
0x15ad   : > { %v3927_v47 = vsel %vm1616_vm4, %v3526_v21, %v4916_v1  ;;  %v3926_v48 = vsel %vm1616_vm4, %v3523_v19, %v4915_v43 }
0x15b2   : > { %v4919_v42 = vpop.permute.xlu0 %4918 }
0x15b3   : > { %v4921_v44 = vunpack.i.h.bf16 %v4919_v42  ;;  %v4920_v45 = vunpack.i.l.bf16 %v4919_v42 }
0x15b5   : > { %v3929_v51 = vsel %vm1569_vm2, %v3927_v47, %v4921_v44  ;;  %v3928_v52 = vsel %vm1569_vm2, %v3926_v48, %v4920_v45 }
0x15ba   : > { %v4924_v46 = vpop.permute.xlu1 %4923 }
0x15bb   : > { %v4926_v49 = vunpack.i.h.bf16 %v4924_v46  ;;  %v4925_v50 = vunpack.i.l.bf16 %v4924_v46 }
0x15bd   : > { %v3931_v54 = vsel %vm2836_vm7, %v3929_v51, %v4926_v49  ;;  %v3930_v55 = vsel %vm2836_vm7, %v3928_v52, %v4925_v50 }
0x15be   : > { %v3932_v56 = vpack.c.bf16 %v3931_v54, %v3930_v55 }
0x15c0   : > { %4811 = vmatmul.mubr.msk.bf16.vlgmr.msra.gmra.mrb[76].mxu1 %vm2022_vm5, %v3932_v56 }
0x1693   : > { %v3988_v58 = vpop.f32.mrb[76].mxu1 }
0x1694   : > { %v3989_v59 = vadd.f32 %v4368_v57, %v3988_v58  ;;  %v4812_v39 = vpop.f32.mrb[77].mxu1 }
0x1695   : > { %v3991_v60 = vpop.f32.mrb[78].mxu1 }
0x1696   : > { %v3992_v61 = vadd.f32 %v4368_v57, %v3991_v60  ;;  %v4813_v29 = vpop.f32.mrb[79].mxu1  ;;  %v3995_v63 = vadd.f32 %v5058_v62, %v3989_v59 }
0x1698   : > { %v3999_v10 = vsel %vm1377_vm1, %v3995_v63, 0.0  ;;  %v3996_v2 = vadd.f32 %v5059_v0, %v3992_v61 }
0x1699   : > { %4000 = vadd.xlane.f32.xlu0 %v3999_v10 }
0x169a   : > { %v4002_v3 = vsel %vm1377_vm1, %v3996_v2, 0.0 }
0x169b   : > { %4003 = vadd.xlane.f32.xlu1 %v4002_v3 }
0x1726   : > { %v4001_v4 = vpop.xlane.xlu0 %4000 }
0x1727   : > { %v4005_v5 = vmul.f32 0.015625, %v4001_v4 }
0x1728   : > { %v4004_v6 = vpop.xlane.xlu1 %4003 }
0x1729   : > { %v4007_v7 = vsub.f32 %v3995_v63, %v4005_v5  ;;  %v4006_v53 = vmul.f32 0.015625, %v4004_v6 }
0x172b   : > { %v4008_v9 = vsub.f32 %v3996_v2, %v4006_v53  ;;  %v4009_v11 = vmul.f32 %v4007_v7, %v4007_v7 }
0x172d   : > { %v4011_v12 = vsel %vm1377_vm1, %v4009_v11, 0.0  ;;  %v4010_v13 = vmul.f32 %v4008_v9, %v4008_v9 }
0x172e   : > { %4012 = vadd.xlane.f32.xlu0 %v4011_v12 }
0x172f   : > { %v4014_v14 = vsel %vm1377_vm1, %v4010_v13, 0.0 }
0x1732   : > { %4015 = vadd.xlane.f32.xlu0 %v4014_v14 }
0x1733   : > { %5073 = shalt.err (!%p5070_p3)
}
0x1734   : > { %s5074_s14 = scalar_lea.hbm %s5920_s9, 128  ;;  %s5078_s16 = scalar_lea.hbm %s5420_s30, 256 }
0x1735   : > { %p5075_p4 = scmp.ne.s32.totalorder %s5920_s9, %s5074_s14  ;;  %p5079_p9 = scmp.lt.u32.totalorder %s5920_s9, %s5420_s30 }
0x1736   : > { %p5080_p10 = scmp.lt.u32.totalorder %s5078_s16, %s5074_s14  ;;  %p5082_p12 = scmp.lt.u32.totalorder %s5074_s14, %s5920_s9 }
0x1737   : > { %p5076_p7 = pnand %p5075_p4, %p5465_p5 }
0x1738   : > { %p5081_p11 = por %p5080_p10, %p5079_p9 }
0x1739   : > { %p5077_p8 = pneg %p5076_p7 }
0x173a   : > { %p5083_p0 = por %p5082_p12, %p5081_p11 }
0x173c   : > { %p5084_p13 = pnand %p5083_p0, %p5077_p8 }
0x173e   : > { %5087 = shalt.err (!%p5084_p13)
}
0x173f   : > { %4814 = dma.vmem_to_hbm [thread:$0]  (%p5465_p5), %s4064_s2, 128, %s5920_s9, %s4045_s23   ;;  %v4372_v22 = vld [vmem:[%s5410_s6] ss:$0 sm:$0xff] }
0x1740   : > { %s4252_s17 = sshll.u32 %s5810_s8, 4  ;;  %v4373_v24 = vld [vmem:[%s5415_s20] ss:$0 sm:$0xff]  ;;  %s4383_s2 = sshll.u32 %s5448_s0, 8 }
0x1741   : > { %s1283_s9 = scalar_lea.vmem [#allocation4], %s4252_s17  ;;  %s5942_s5 = scalar_lea.hbm %s5425_s4, %s4383_s2 }
0x1742   : > { %s4076_s23 = sshll.u32 %s1283_s9, 4  ;;  %s4050_s12 = scalar_lea.sflag [#allocation5], %s5810_s8  ;;  %s5944_s23 = int_to_ptr.vmem [resolvable:$true] %s4076_s23 }
0x1743   : > { %s5088_s13 = scalar_lea.vmem %s5944_s23, 256  ;;  %s5210_s0 = smov [#allocation4]  }
0x1744   : > { %p5089_p1 = scmp.ne.s32.totalorder %s5944_s23, %s5088_s13  ;;  %s5092_s14 = sshll.u32 %s5210_s0, 4  ;;  %s5093_s14 = int_to_ptr.vmem [resolvable:$false] %s5092_s14 }
0x1745   : > { %s5094_s16 = scalar_lea.vmem %s5093_s14, 512  ;;  %p5095_p4 = scmp.lt.s32.totalorder %s5944_s23, %s5093_s14 }
0x1746   : > { %p5090_p2 = pnand %p5089_p1, %p5465_p5  ;;  %p5096_p7 = scmp.lt.s32.totalorder %s5094_s16, %s5088_s13 }
0x1748   : > { %p5091_p3 = pneg %p5090_p2  ;;  %p5097_p8 = por %p5096_p7, %p5095_p4 }
0x174a   : > { %p5098_p9 = pnand %p5097_p8, %p5091_p3 }
0x17bb   : > { %v4013_v15 = vpop.xlane.xlu0 %4012 }
0x17bc   : > { %v4017_v16 = vmul.f32 0.015625, %v4013_v15 }
0x17be   : > { %v4019_v17 = vadd.f32 1e-06, %v4017_v16 }
0x17bf   : > { %v4016_v18 = vpop.xlane.xlu0 %4015 }
0x17c0   : > { %5053 = vrsqrt.f32 %v4019_v17  ;;  %v4018_v19 = vmul.f32 0.015625, %v4016_v18 }
0x17c2   : > { %v4020_v20 = vadd.f32 1e-06, %v4018_v19 }
0x17c4   : > { %5055 = vrsqrt.f32 %v4020_v20 }
0x17ca   : > { %v5054_v21 = vpop.eup %5053 }
0x17cb   : > { %v4023_v23 = vmul.f32 %v5054_v21, %v4007_v7 }
0x17cd   : > { %v4031_v25 = vmul.f32 %v4372_v22, %v4023_v23 }
0x17ce   : > { %v5056_v26 = vpop.eup %5055 }
0x17cf   : > { %v4024_v27 = vmul.f32 %v5056_v26, %v4008_v9  ;;  %v4039_v28 = vadd.f32 %v4373_v24, %v4031_v25 }
0x17d1   : > { %v4032_v30 = vmul.f32 %v4372_v22, %v4024_v27  ;;  %4042 = vst.msk [vmem:[%s1283_s9] sm:$0xff] %vm1377_vm1, %v4039_v28 }
0x17d3   : > { %v4040_v31 = vadd.f32 %v4373_v24, %v4032_v30 }
0x17d5   : > { %4043 = vst.msk [vmem:[%s1283_s9 + $0x8] sm:$0xff] %vm1377_vm1, %v4040_v31 }
0x17d6   : > { %5101 = shalt.err (!%p5098_p9)
}
0x17d7   : > { %s5102_s17 = scalar_lea.hbm %s5942_s5, 256  ;;  %s5106_s2 = scalar_lea.hbm %s5425_s4, 512 }
0x17d8   : > { %p5103_p10 = scmp.ne.s32.totalorder %s5942_s5, %s5102_s17  ;;  %p5107_p0 = scmp.lt.u32.totalorder %s5942_s5, %s5425_s4 }
0x17d9   : > { %p5108_p13 = scmp.lt.u32.totalorder %s5106_s2, %s5102_s17  ;;  %p5110_p2 = scmp.lt.u32.totalorder %s5102_s17, %s5942_s5 }
0x17da   : > { %p5104_p11 = pnand %p5103_p10, %p5465_p5 }
0x17db   : > { %p5109_p1 = por %p5108_p13, %p5107_p0 }
0x17dc   : > { %p5105_p12 = pneg %p5104_p11 }
0x17dd   : > { %p5111_p4 = por %p5110_p2, %p5109_p1 }
0x17df   : > { %p5112_p3 = pnand %p5111_p4, %p5105_p12 }
0x17e1   : > { %5115 = shalt.err (!%p5112_p3)
}
0x17e2   : > { %s5211_s9 = smov 128  }
0x17e3   : > { %4815 = dma.vmem_to_hbm [thread:$0]  (%p5465_p5), %s5944_s23, 256, %s5942_s5, %s4050_s12, %s5211_s9, %s5211_s9, %s6083_s3  }
0x17e4 PF: > { %p4825_p7 = scmp.ge.s32.totalorder %s5154_s15, 2  ;;  %s4091_s13 = sand.u32 1, %s5142_s7  }
0x17e5   : > { %s4092_s0 = scalar_lea.sflag [#allocation3], %s4091_s13 }
0x17e6   : > { %p4819_p8 = pnand %p4825_p7, %p5469_p6 }
0x17e8   : > { %5133 = dma.done.wait (!%p4819_p8), %s4092_s0, 128  }
0x17e9   : > { %5135 = vsyncadd (!%p4819_p8), %s4092_s0, 4294967168  ;;  %s4101_s14 = scalar_lea.sflag [#allocation5], %s4091_s13 }
0x17ea   : > { %5137 = dma.done.wait (!%p4819_p8), %s4101_s14, 256  }
0x17eb   : > { %5139 = vsyncadd (!%p4819_p8), %s4101_s14, 4294967040  ;;  %p97_p5 = scmp.ge.s32.totalorder %s5452_s18, 4   ;;  %s6086_s7 = smov %s5146_s10 }
0x17ec   : > { %s6087_s10 = smov %s5150_s11  ;;  %s6088_s11 = smov %s5463_s26 }
0x17ed   : > { %s6089_s15 = smov %s5452_s18  ;;  %99 = sbr.rel (!%p97_p5) target bundleno = 80 (0x50), region = 282 }
0x17f4   :  { %4106 = vsyncpa [#allocation3], 1 }
0x17f5   :  { %4108 = vsyncpa [#allocation3 + $0x1], 1 }
0x17f6   :  { %4109 = vsyncpa [#allocation5], 1 }
0x17f7   :  { %4111 = vsyncpa [#allocation5 + $0x1], 1 }

</bundles_post_ra>
